<compile_context>
chip_gen: v7x
topology: tpu7x:2x2x1
jax: 0.10.0
libtpu: 0.0.40
codegen_flags: <defaults>
</compile_context>

<pallas_src>
import functools

import jax
import jax.numpy as jnp
import numpy as np
from jax.experimental import pallas as pl
from jax.experimental.pallas import tpu as pltpu

EPS = 1e-5
PADMAX = 2      # max conv padding in the block (conv2 has pad=2)
B = 128         # canvas zero-margin, rounded up to a full vreg lane width


# ----------------------------------------------------------------------------
# one conv (stride 1, zero-ring 'same' padding) + training-mode BatchNorm
# ----------------------------------------------------------------------------
def _conv_bn(src_ref, w_ref, g_ref, b_ref, col_ref, mask,
             *, K, pad, cin, Wc, Lp, inv_m):
    """src_ref : (cin, Lp + 2B) zero-margined canvas, payload at lanes [B, B+Lp)
    w_ref   : (cout, K*K*cin) im2col-ordered weights
    col_ref : (>= K*K*cin, Lp) shared im2col staging scratch
    mask    : (1, Lp) 1.0 on valid pixels, 0.0 on ring / tail lanes
    Returns the masked BN output (cout, Lp); ring / tail lanes are exactly 0.
    """
    # --- stage the K*K lane-shifted slices (im2col) --------------------------
    for kh in range(K):
        for kw in range(K):
            t = kh * K + kw
            s = (kh - pad) * Wc + (kw - pad)          # flat lane shift on canvas
            col_ref[t * cin:(t + 1) * cin, :] = src_ref[:, B + s:B + s + Lp]
    rows = K * K * cin

    # --- single MXU matmul for the whole layer --------------------------------
    acc = jnp.dot(w_ref[...], col_ref[:rows, :],
                  preferred_element_type=jnp.float32)           # (cout, Lp)

    # --- training-mode BN over valid pixels only ------------------------------
    y = acc * mask                                              # ring -> 0
    mean = jnp.sum(y, axis=1, keepdims=True) * inv_m            # (cout, 1)
    var = jnp.sum(y * y, axis=1, keepdims=True) * inv_m - mean * mean
    scale = jax.lax.rsqrt(var + EPS) * g_ref[...]               # (cout, 1)
    shift = b_ref[...] - mean * scale                           # (cout, 1)
    return y * scale + shift * mask                             # ring stays 0


def _conv_block_kernel(x_ref, mask_ref,
                       w1_ref, g1_ref, b1_ref,
                       w2_ref, g2_ref, b2_ref,
                       w3_ref, g3_ref, b3_ref,
                       o_ref, act1_ref, act2_ref, col_ref,
                       *, C, M, Wc, Lp):
    inv_m = 1.0 / M
    mask = mask_ref[...]                                        # (1, Lp)

    # zero only the margins; interior [B:B+Lp) is fully overwritten below.
    act1_ref[:, :B] = jnp.zeros((act1_ref.shape[0], B), jnp.float32)
    act1_ref[:, B + Lp:B + Lp + B] = jnp.zeros((act1_ref.shape[0], B), jnp.float32)
    act2_ref[:, :B] = jnp.zeros((act2_ref.shape[0], B), jnp.float32)
    act2_ref[:, B + Lp:B + Lp + B] = jnp.zeros((act2_ref.shape[0], B), jnp.float32)

    # layer 1: conv3x3 (4C -> C), pad 1, + BN1   (input canvas lives in x_ref)
    act1_ref[:, B:B + Lp] = _conv_bn(x_ref, w1_ref, g1_ref, b1_ref, col_ref,
                                     mask, K=3, pad=1, cin=4 * C,
                                     Wc=Wc, Lp=Lp, inv_m=inv_m)

    # layer 2: conv5x5 (C -> 2C), pad 2, + BN2
    act2_ref[:, B:B + Lp] = _conv_bn(act1_ref, w2_ref, g2_ref, b2_ref, col_ref,
                                     mask, K=5, pad=2, cin=C,
                                     Wc=Wc, Lp=Lp, inv_m=inv_m)

    # layer 3: conv3x3 (2C -> 4C), pad 1, + BN3  -> single lane-dense store
    o_ref[...] = _conv_bn(act2_ref, w3_ref, g3_ref, b3_ref, col_ref,
                          mask, K=3, pad=1, cin=2 * C,
                          Wc=Wc, Lp=Lp, inv_m=inv_m)


# ----------------------------------------------------------------------------
# Conv_Block forward (Pallas) and pure-JAX reference
# ----------------------------------------------------------------------------
def _w2d(w):
    """PyTorch OIHW conv weight -> (Cout, KH*KW*Cin) im2col order (tap-major)."""
    O, I, KH, KW = w.shape
    return jnp.transpose(w, (0, 2, 3, 1)).reshape(O, KH * KW * I)


def conv_block_forward(params, in1, in2, in3, in4):
    N, C, H, W = in1.shape
    C4 = 4 * C
    Hc, Wc = H + 2 * PADMAX, W + 2 * PADMAX
    L = N * Hc * Wc                          # flattened canvas payload (lanes)
    Lp = ((L + 127) // 128) * 128            # lane-dense padded payload length
    L_ext = Lp + 2 * B                       # + 128-lane zero margins both sides
    assert PADMAX * Wc + PADMAX <= B, "tap shift exceeds canvas margin"

    # --- layout plumbing (tiny, one-shot, XLA): channels -> sublanes,
    #     zero-ringed padded spatial -> lanes, 128-aligned zero margins.
    fuse = jnp.concatenate((in1, in2, in3, in4), axis=1)            # (N, 4C, H, W)
    x = jnp.transpose(fuse, (1, 0, 2, 3))                           # (4C, N, H, W)
    x = jnp.pad(x, ((0, 0), (0, 0), (PADMAX, PADMAX), (PADMAX, PADMAX)))
    x = x.reshape(C4, L)
    x = jnp.pad(x, ((0, 0), (B, B + Lp - L)))                       # (4C, L_ext)

    # valid-pixel mask (shape-only -> constant-folded under jit)
    mask = jnp.pad(jnp.ones((1, N, H, W), jnp.float32),
                   ((0, 0), (0, 0), (PADMAX, PADMAX), (PADMAX, PADMAX)))
    mask = jnp.pad(mask.reshape(1, L), ((0, 0), (0, Lp - L)))       # (1, Lp)

    w1 = _w2d(params["w1"]); w2 = _w2d(params["w2"]); w3 = _w2d(params["w3"])
    g1 = params["g1"].reshape(C, 1);      b1 = params["b1"].reshape(C, 1)
    g2 = params["g2"].reshape(2 * C, 1);  b2 = params["b2"].reshape(2 * C, 1)
    g3 = params["g3"].reshape(C4, 1);     b3 = params["b3"].reshape(C4, 1)

    kernel = functools.partial(_conv_block_kernel,
                               C=C, M=N * H * W, Wc=Wc, Lp=Lp)

    kk_max = max(9 * C4, 25 * C, 9 * 2 * C)            # im2col row budget
    flops = 2 * Lp * (C * 9 * C4 + 2 * C * 25 * C + C4 * 9 * 2 * C)
    bytes_accessed = 4 * (x.size + mask.size + w1.size + w2.size + w3.size
                          + 2 * (C + 2 * C + C4) + C4 * Lp)

    o = pl.pallas_call(
        kernel,
        out_shape=jax.ShapeDtypeStruct((C4, Lp), jnp.float32),
        grid=(1,),
        in_specs=[
            pl.BlockSpec((C4, L_ext), lambda i: (0, 0)),            # input canvas
            pl.BlockSpec((1, Lp), lambda i: (0, 0)),                # valid mask
            pl.BlockSpec(w1.shape, lambda i: (0, 0)),               # w1 (C, 9*4C)
            pl.BlockSpec((C, 1), lambda i: (0, 0)),                 # gamma1
            pl.BlockSpec((C, 1), lambda i: (0, 0)),                 # beta1
            pl.BlockSpec(w2.shape, lambda i: (0, 0)),               # w2 (2C, 25*C)
            pl.BlockSpec((2 * C, 1), lambda i: (0, 0)),             # gamma2
            pl.BlockSpec((2 * C, 1), lambda i: (0, 0)),             # beta2
            pl.BlockSpec(w3.shape, lambda i: (0, 0)),               # w3 (4C, 9*2C)
            pl.BlockSpec((C4, 1), lambda i: (0, 0)),                # gamma3
            pl.BlockSpec((C4, 1), lambda i: (0, 0)),                # beta3
        ],
        out_specs=pl.BlockSpec((C4, Lp), lambda i: (0, 0)),
        scratch_shapes=[
            pltpu.VMEM((C, L_ext), jnp.float32),        # post-BN1 canvas
            pltpu.VMEM((2 * C, L_ext), jnp.float32),    # post-BN2 canvas
            pltpu.VMEM((kk_max, Lp), jnp.float32),      # shared im2col staging
        ],
        compiler_params=pltpu.CompilerParams(
            dimension_semantics=("arbitrary",)),
        cost_estimate=pl.CostEstimate(flops=flops, transcendentals=0,
                                      bytes_accessed=bytes_accessed),
    )(x, mask, w1, g1, b1, w2, g2, b2, w3, g3, b3)

    # extract valid center from the canvas and return NCHW (layout plumbing)
    out = o[:, :L].reshape(C4, N, Hc, Wc)[:, :, PADMAX:PADMAX + H,
                                          PADMAX:PADMAX + W]
    return jnp.transpose(out, (1, 0, 2, 3))


def _ref_conv(x_nchw, w_oihw, pad):
    return jax.lax.conv_general_dilated(
        x_nchw, w_oihw, window_strides=(1, 1),
        padding=[(pad, pad), (pad, pad)],
        dimension_numbers=("NCHW", "OIHW", "NCHW"))


def _ref_bn(y_nchw, gamma, beta):
    mean = jnp.mean(y_nchw, axis=(0, 2, 3), keepdims=True)
    var = jnp.mean((y_nchw - mean) ** 2, axis=(0, 2, 3), keepdims=True)
    g = gamma.reshape(1, -1, 1, 1)
    b = beta.reshape(1, -1, 1, 1)
    return (y_nchw - mean) * jax.lax.rsqrt(var + EPS) * g + b


def conv_block_reference(params, in1, in2, in3, in4):
    x = jnp.concatenate((in1, in2, in3, in4), axis=1)
    x = _ref_bn(_ref_conv(x, params["w1"], 1), params["g1"], params["b1"])
    x = _ref_bn(_ref_conv(x, params["w2"], 2), params["g2"], params["b2"])
    x = _ref_bn(_ref_conv(x, params["w3"], 1), params["g3"], params["b3"])
    return x


# ----------------------------------------------------------------------------
def init_params(key, channels):
    C = channels
    ks = jax.random.split(key, 9)

    def conv_w(k, cout, cin, ksz):                  # PyTorch OIHW layout
        fan_in = ksz * ksz * cin
        std = np.sqrt(2.0 / fan_in)
        return jax.random.normal(k, (cout, cin, ksz, ksz), jnp.float32) * std

    return {
        "w1": conv_w(ks[0], C, 4 * C, 3),
        "g1": 1.0 + 0.1 * jax.random.normal(ks[1], (C,), jnp.float32),
        "b1": 0.1 * jax.random.normal(ks[2], (C,), jnp.float32),
        "w2": conv_w(ks[3], 2 * C, C, 5),
        "g2": 1.0 + 0.1 * jax.random.normal(ks[4], (2 * C,), jnp.float32),
        "b2": 0.1 * jax.random.normal(ks[5], (2 * C,), jnp.float32),
        "w3": conv_w(ks[6], 4 * C, 2 * C, 3),
        "g3": 1.0 + 0.1 * jax.random.normal(ks[7], (4 * C,), jnp.float32),
        "b3": 0.1 * jax.random.normal(ks[8], (4 * C,), jnp.float32),
    }


if __name__ == "__main__":
    channels, N, H, W = 4, 2, 16, 16
    key = jax.random.PRNGKey(0)
    k_p, k1, k2, k3, k4 = jax.random.split(key, 5)

    params = init_params(k_p, channels)
    in1 = jax.random.normal(k1, (N, channels, H, W), jnp.float32)
    in2 = jax.random.normal(k2, (N, channels, H, W), jnp.float32)
    in3 = jax.random.normal(k3, (N, channels, H, W), jnp.float32)
    in4 = jax.random.normal(k4, (N, channels, H, W), jnp.float32)

    out = jax.block_until_ready(
        jax.jit(conv_block_forward)(params, in1, in2, in3, in4))
    ref = jax.block_until_ready(
        jax.jit(conv_block_reference)(params, in1, in2, in3, in4))

    assert out.shape == (N, 4 * channels, H, W), out.shape
    np.testing.assert_allclose(np.asarray(out), np.asarray(ref),
                               atol=1e-3, rtol=1e-3)
    print("KERNEL_OK")
</pallas_src>

<mosaic_0001>
module attributes {stable_mosaic.version = 11 : i64} {
  func.func @_conv_block_kernel(%arg0: i32, %arg1: memref<16x1152xf32, #tpu.memory_space<vmem>>, %arg2: memref<1x896xf32, #tpu.memory_space<vmem>>, %arg3: memref<4x144xf32, #tpu.memory_space<vmem>>, %arg4: memref<4x1xf32, #tpu.memory_space<vmem>>, %arg5: memref<4x1xf32, #tpu.memory_space<vmem>>, %arg6: memref<8x100xf32, #tpu.memory_space<vmem>>, %arg7: memref<8x1xf32, #tpu.memory_space<vmem>>, %arg8: memref<8x1xf32, #tpu.memory_space<vmem>>, %arg9: memref<16x72xf32, #tpu.memory_space<vmem>>, %arg10: memref<16x1xf32, #tpu.memory_space<vmem>>, %arg11: memref<16x1xf32, #tpu.memory_space<vmem>>, %arg12: memref<16x896xf32, #tpu.memory_space<vmem>>, %arg13: memref<4x1152xf32, #tpu.memory_space<vmem>>, %arg14: memref<8x1152xf32, #tpu.memory_space<vmem>>, %arg15: memref<144x896xf32, #tpu.memory_space<vmem>>) attributes {dimension_semantics = [#tpu.dimension_semantics<arbitrary>], iteration_bounds = array<i64: 1>, scalar_prefetch = 0 : i64, scratch_operands = 3 : i64, tpu.core_type = #tpu.core_type<tc>, window_params = [{pipeline_mode = #tpu.pipeline_mode<synchronous>, transform_indices = @transform_0, window_bounds = array<i64: 16, 1152>}, {pipeline_mode = #tpu.pipeline_mode<synchronous>, transform_indices = @transform_1, window_bounds = array<i64: 1, 896>}, {pipeline_mode = #tpu.pipeline_mode<synchronous>, transform_indices = @transform_2, window_bounds = array<i64: 4, 144>}, {pipeline_mode = #tpu.pipeline_mode<synchronous>, transform_indices = @transform_3, window_bounds = array<i64: 4, 1>}, {pipeline_mode = #tpu.pipeline_mode<synchronous>, transform_indices = @transform_4, window_bounds = array<i64: 4, 1>}, {pipeline_mode = #tpu.pipeline_mode<synchronous>, transform_indices = @transform_5, window_bounds = array<i64: 8, 100>}, {pipeline_mode = #tpu.pipeline_mode<synchronous>, transform_indices = @transform_6, window_bounds = array<i64: 8, 1>}, {pipeline_mode = #tpu.pipeline_mode<synchronous>, transform_indices = @transform_7, window_bounds = array<i64: 8, 1>}, {pipeline_mode = #tpu.pipeline_mode<synchronous>, transform_indices = @transform_8, window_bounds = array<i64: 16, 72>}, {pipeline_mode = #tpu.pipeline_mode<synchronous>, transform_indices = @transform_9, window_bounds = array<i64: 16, 1>}, {pipeline_mode = #tpu.pipeline_mode<synchronous>, transform_indices = @transform_10, window_bounds = array<i64: 16, 1>}, {pipeline_mode = #tpu.pipeline_mode<synchronous>, transform_indices = @transform_11, window_bounds = array<i64: 16, 896>}]} {
    %c0 = arith.constant 0 : index
    %c0_0 = arith.constant 0 : index
    %0 = vector.load %arg2[%c0, %c0_0] : memref<1x896xf32, #tpu.memory_space<vmem>>, vector<1x896xf32>
    %cst = arith.constant 0.000000e+00 : f32
    %1 = vector.broadcast %cst : f32 to vector<4x128xf32>
    %c0_1 = arith.constant 0 : index
    %c0_2 = arith.constant 0 : index
    %2 = vector.load %arg13[%c0_1, %c0_2] : memref<4x1152xf32, #tpu.memory_space<vmem>>, vector<4x128xf32>
    tpu.vector_store %arg13[%c0_1, %c0_2], %1 {strides = array<i32>} : memref<4x1152xf32, #tpu.memory_space<vmem>>, vector<4x128xf32>,
    %cst_3 = arith.constant 0.000000e+00 : f32
    %3 = vector.broadcast %cst_3 : f32 to vector<4x128xf32>
    %c0_4 = arith.constant 0 : index
    %c1024 = arith.constant 1024 : index
    %4 = vector.load %arg13[%c0_4, %c1024] : memref<4x1152xf32, #tpu.memory_space<vmem>>, vector<4x128xf32>
    tpu.vector_store %arg13[%c0_4, %c1024], %3 {strides = array<i32>} : memref<4x1152xf32, #tpu.memory_space<vmem>>, vector<4x128xf32>,
    %cst_5 = arith.constant 0.000000e+00 : f32
    %5 = vector.broadcast %cst_5 : f32 to vector<8x128xf32>
    %c0_6 = arith.constant 0 : index
    %c0_7 = arith.constant 0 : index
    %6 = vector.load %arg14[%c0_6, %c0_7] : memref<8x1152xf32, #tpu.memory_space<vmem>>, vector<8x128xf32>
    tpu.vector_store %arg14[%c0_6, %c0_7], %5 {strides = array<i32>} : memref<8x1152xf32, #tpu.memory_space<vmem>>, vector<8x128xf32>,
    %cst_8 = arith.constant 0.000000e+00 : f32
    %7 = vector.broadcast %cst_8 : f32 to vector<8x128xf32>
    %c0_9 = arith.constant 0 : index
    %c1024_10 = arith.constant 1024 : index
    %8 = vector.load %arg14[%c0_9, %c1024_10] : memref<8x1152xf32, #tpu.memory_space<vmem>>, vector<8x128xf32>
    tpu.vector_store %arg14[%c0_9, %c1024_10], %7 {strides = array<i32>} : memref<8x1152xf32, #tpu.memory_space<vmem>>, vector<8x128xf32>,
    %c0_11 = arith.constant 0 : index
    %c107 = arith.constant 107 : index
    %9 = vector.load %arg1[%c0_11, %c107] : memref<16x1152xf32, #tpu.memory_space<vmem>>, vector<16x896xf32>
    %c0_12 = arith.constant 0 : index
    %c0_13 = arith.constant 0 : index
    %10 = vector.load %arg15[%c0_12, %c0_13] : memref<144x896xf32, #tpu.memory_space<vmem>>, vector<16x896xf32>
    tpu.vector_store %arg15[%c0_12, %c0_13], %9 {strides = array<i32>} : memref<144x896xf32, #tpu.memory_space<vmem>>, vector<16x896xf32>,
    %c0_14 = arith.constant 0 : index
    %c108 = arith.constant 108 : index
    %11 = vector.load %arg1[%c0_14, %c108] : memref<16x1152xf32, #tpu.memory_space<vmem>>, vector<16x896xf32>
    %c16 = arith.constant 16 : index
    %c0_15 = arith.constant 0 : index
    %12 = vector.load %arg15[%c16, %c0_15] : memref<144x896xf32, #tpu.memory_space<vmem>>, vector<16x896xf32>
    tpu.vector_store %arg15[%c16, %c0_15], %11 {strides = array<i32>} : memref<144x896xf32, #tpu.memory_space<vmem>>, vector<16x896xf32>,
    %c0_16 = arith.constant 0 : index
    %c109 = arith.constant 109 : index
    %13 = vector.load %arg1[%c0_16, %c109] : memref<16x1152xf32, #tpu.memory_space<vmem>>, vector<16x896xf32>
    %c32 = arith.constant 32 : index
    %c0_17 = arith.constant 0 : index
    %14 = vector.load %arg15[%c32, %c0_17] : memref<144x896xf32, #tpu.memory_space<vmem>>, vector<16x896xf32>
    tpu.vector_store %arg15[%c32, %c0_17], %13 {strides = array<i32>} : memref<144x896xf32, #tpu.memory_space<vmem>>, vector<16x896xf32>,
    %c0_18 = arith.constant 0 : index
    %c127 = arith.constant 127 : index
    %15 = vector.load %arg1[%c0_18, %c127] : memref<16x1152xf32, #tpu.memory_space<vmem>>, vector<16x896xf32>
    %c48 = arith.constant 48 : index
    %c0_19 = arith.constant 0 : index
    %16 = vector.load %arg15[%c48, %c0_19] : memref<144x896xf32, #tpu.memory_space<vmem>>, vector<16x896xf32>
    tpu.vector_store %arg15[%c48, %c0_19], %15 {strides = array<i32>} : memref<144x896xf32, #tpu.memory_space<vmem>>, vector<16x896xf32>,
    %c0_20 = arith.constant 0 : index
    %c128 = arith.constant 128 : index
    %17 = vector.load %arg1[%c0_20, %c128] : memref<16x1152xf32, #tpu.memory_space<vmem>>, vector<16x896xf32>
    %c64 = arith.constant 64 : index
    %c0_21 = arith.constant 0 : index
    %18 = vector.load %arg15[%c64, %c0_21] : memref<144x896xf32, #tpu.memory_space<vmem>>, vector<16x896xf32>
    tpu.vector_store %arg15[%c64, %c0_21], %17 {strides = array<i32>} : memref<144x896xf32, #tpu.memory_space<vmem>>, vector<16x896xf32>,
    %c0_22 = arith.constant 0 : index
    %c129 = arith.constant 129 : index
    %19 = vector.load %arg1[%c0_22, %c129] : memref<16x1152xf32, #tpu.memory_space<vmem>>, vector<16x896xf32>
    %c80 = arith.constant 80 : index
    %c0_23 = arith.constant 0 : index
    %20 = vector.load %arg15[%c80, %c0_23] : memref<144x896xf32, #tpu.memory_space<vmem>>, vector<16x896xf32>
    tpu.vector_store %arg15[%c80, %c0_23], %19 {strides = array<i32>} : memref<144x896xf32, #tpu.memory_space<vmem>>, vector<16x896xf32>,
    %c0_24 = arith.constant 0 : index
    %c147 = arith.constant 147 : index
    %21 = vector.load %arg1[%c0_24, %c147] : memref<16x1152xf32, #tpu.memory_space<vmem>>, vector<16x896xf32>
    %c96 = arith.constant 96 : index
    %c0_25 = arith.constant 0 : index
    %22 = vector.load %arg15[%c96, %c0_25] : memref<144x896xf32, #tpu.memory_space<vmem>>, vector<16x896xf32>
    tpu.vector_store %arg15[%c96, %c0_25], %21 {strides = array<i32>} : memref<144x896xf32, #tpu.memory_space<vmem>>, vector<16x896xf32>,
    %c0_26 = arith.constant 0 : index
    %c148 = arith.constant 148 : index
    %23 = vector.load %arg1[%c0_26, %c148] : memref<16x1152xf32, #tpu.memory_space<vmem>>, vector<16x896xf32>
    %c112 = arith.constant 112 : index
    %c0_27 = arith.constant 0 : index
    %24 = vector.load %arg15[%c112, %c0_27] : memref<144x896xf32, #tpu.memory_space<vmem>>, vector<16x896xf32>
    tpu.vector_store %arg15[%c112, %c0_27], %23 {strides = array<i32>} : memref<144x896xf32, #tpu.memory_space<vmem>>, vector<16x896xf32>,
    %c0_28 = arith.constant 0 : index
    %c149 = arith.constant 149 : index
    %25 = vector.load %arg1[%c0_28, %c149] : memref<16x1152xf32, #tpu.memory_space<vmem>>, vector<16x896xf32>
    %c128_29 = arith.constant 128 : index
    %c0_30 = arith.constant 0 : index
    %26 = vector.load %arg15[%c128_29, %c0_30] : memref<144x896xf32, #tpu.memory_space<vmem>>, vector<16x896xf32>
    tpu.vector_store %arg15[%c128_29, %c0_30], %25 {strides = array<i32>} : memref<144x896xf32, #tpu.memory_space<vmem>>, vector<16x896xf32>,
    %c0_31 = arith.constant 0 : index
    %c0_32 = arith.constant 0 : index
    %27 = vector.load %arg3[%c0_31, %c0_32] : memref<4x144xf32, #tpu.memory_space<vmem>>, vector<4x144xf32>
    %c0_33 = arith.constant 0 : index
    %c0_34 = arith.constant 0 : index
    %28 = vector.load %arg15[%c0_33, %c0_34] : memref<144x896xf32, #tpu.memory_space<vmem>>, vector<144x896xf32>
    %cst_35 = arith.constant dense<0.000000e+00> : vector<4x896xf32>
    %29 = tpu.matmul %27, %28, %cst_35 {dimension_numbers = #tpu.dot_dimension_numbers<[1], [0], [0], [1], [0, 0, 1, 1], [], []>} : vector<4x144xf32>, vector<144x896xf32>, vector<4x896xf32> -> vector<4x896xf32>
    %30 = vector.broadcast %0 : vector<1x896xf32> to vector<4x896xf32>
    %31 = arith.mulf %29, %30 : vector<4x896xf32>
    %cst_36 = arith.constant dense<0.000000e+00> : vector<4xf32>
    %32 = vector.multi_reduction <add>, %31, %cst_36 [1] : vector<4x896xf32> to vector<4xf32>
    %33 = vector.shape_cast %32 : vector<4xf32> to vector<4x1xf32>
    %cst_37 = arith.constant 0.001953125 : f32
    %34 = vector.broadcast %cst_37 : f32 to vector<4x1xf32>
    %35 = arith.mulf %33, %34 : vector<4x1xf32>
    %36 = arith.mulf %31, %31 : vector<4x896xf32>
    %cst_38 = arith.constant dense<0.000000e+00> : vector<4xf32>
    %37 = vector.multi_reduction <add>, %36, %cst_38 [1] : vector<4x896xf32> to vector<4xf32>
    %38 = vector.shape_cast %37 : vector<4xf32> to vector<4x1xf32>
    %cst_39 = arith.constant 0.001953125 : f32
    %39 = vector.broadcast %cst_39 : f32 to vector<4x1xf32>
    %40 = arith.mulf %38, %39 : vector<4x1xf32>
    %41 = arith.mulf %35, %35 : vector<4x1xf32>
    %42 = arith.subf %40, %41 : vector<4x1xf32>
    %cst_40 = arith.constant 9.99999974E-6 : f32
    %43 = vector.broadcast %cst_40 : f32 to vector<4x1xf32>
    %44 = arith.addf %42, %43 : vector<4x1xf32>
    %45 = math.rsqrt %44 : vector<4x1xf32>
    %c0_41 = arith.constant 0 : index
    %c0_42 = arith.constant 0 : index
    %46 = vector.load %arg4[%c0_41, %c0_42] : memref<4x1xf32, #tpu.memory_space<vmem>>, vector<4x1xf32>
    %47 = arith.mulf %45, %46 : vector<4x1xf32>
    %c0_43 = arith.constant 0 : index
    %c0_44 = arith.constant 0 : index
    %48 = vector.load %arg5[%c0_43, %c0_44] : memref<4x1xf32, #tpu.memory_space<vmem>>, vector<4x1xf32>
    %49 = arith.mulf %35, %47 : vector<4x1xf32>
    %50 = arith.subf %48, %49 : vector<4x1xf32>
    %51 = vector.broadcast %47 : vector<4x1xf32> to vector<4x896xf32>
    %52 = arith.mulf %31, %51 : vector<4x896xf32>
    %53 = vector.broadcast %50 : vector<4x1xf32> to vector<4x896xf32>
    %54 = vector.broadcast %0 : vector<1x896xf32> to vector<4x896xf32>
    %55 = arith.mulf %53, %54 : vector<4x896xf32>
    %56 = arith.addf %52, %55 : vector<4x896xf32>
    %c0_45 = arith.constant 0 : index
    %c128_46 = arith.constant 128 : index
    %57 = vector.load %arg13[%c0_45, %c128_46] : memref<4x1152xf32, #tpu.memory_space<vmem>>, vector<4x896xf32>
    tpu.vector_store %arg13[%c0_45, %c128_46], %56 {strides = array<i32>} : memref<4x1152xf32, #tpu.memory_space<vmem>>, vector<4x896xf32>,
    %c0_47 = arith.constant 0 : index
    %c86 = arith.constant 86 : index
    %58 = vector.load %arg13[%c0_47, %c86] : memref<4x1152xf32, #tpu.memory_space<vmem>>, vector<4x896xf32>
    %c0_48 = arith.constant 0 : index
    %c0_49 = arith.constant 0 : index
    %59 = vector.load %arg15[%c0_48, %c0_49] : memref<144x896xf32, #tpu.memory_space<vmem>>, vector<4x896xf32>
    tpu.vector_store %arg15[%c0_48, %c0_49], %58 {strides = array<i32>} : memref<144x896xf32, #tpu.memory_space<vmem>>, vector<4x896xf32>,
    %c0_50 = arith.constant 0 : index
    %c87 = arith.constant 87 : index
    %60 = vector.load %arg13[%c0_50, %c87] : memref<4x1152xf32, #tpu.memory_space<vmem>>, vector<4x896xf32>
    %c4 = arith.constant 4 : index
    %c0_51 = arith.constant 0 : index
    %61 = vector.load %arg15[%c4, %c0_51] : memref<144x896xf32, #tpu.memory_space<vmem>>, vector<4x896xf32>
    tpu.vector_store %arg15[%c4, %c0_51], %60 {strides = array<i32>} : memref<144x896xf32, #tpu.memory_space<vmem>>, vector<4x896xf32>,
    %c0_52 = arith.constant 0 : index
    %c88 = arith.constant 88 : index
    %62 = vector.load %arg13[%c0_52, %c88] : memref<4x1152xf32, #tpu.memory_space<vmem>>, vector<4x896xf32>
    %c8 = arith.constant 8 : index
    %c0_53 = arith.constant 0 : index
    %63 = vector.load %arg15[%c8, %c0_53] : memref<144x896xf32, #tpu.memory_space<vmem>>, vector<4x896xf32>
    tpu.vector_store %arg15[%c8, %c0_53], %62 {strides = array<i32>} : memref<144x896xf32, #tpu.memory_space<vmem>>, vector<4x896xf32>,
    %c0_54 = arith.constant 0 : index
    %c89 = arith.constant 89 : index
    %64 = vector.load %arg13[%c0_54, %c89] : memref<4x1152xf32, #tpu.memory_space<vmem>>, vector<4x896xf32>
    %c12 = arith.constant 12 : index
    %c0_55 = arith.constant 0 : index
    %65 = vector.load %arg15[%c12, %c0_55] : memref<144x896xf32, #tpu.memory_space<vmem>>, vector<4x896xf32>
    tpu.vector_store %arg15[%c12, %c0_55], %64 {strides = array<i32>} : memref<144x896xf32, #tpu.memory_space<vmem>>, vector<4x896xf32>,
    %c0_56 = arith.constant 0 : index
    %c90 = arith.constant 90 : index
    %66 = vector.load %arg13[%c0_56, %c90] : memref<4x1152xf32, #tpu.memory_space<vmem>>, vector<4x896xf32>
    %c16_57 = arith.constant 16 : index
    %c0_58 = arith.constant 0 : index
    %67 = vector.load %arg15[%c16_57, %c0_58] : memref<144x896xf32, #tpu.memory_space<vmem>>, vector<4x896xf32>
    tpu.vector_store %arg15[%c16_57, %c0_58], %66 {strides = array<i32>} : memref<144x896xf32, #tpu.memory_space<vmem>>, vector<4x896xf32>,
    %c0_59 = arith.constant 0 : index
    %c106 = arith.constant 106 : index
    %68 = vector.load %arg13[%c0_59, %c106] : memref<4x1152xf32, #tpu.memory_space<vmem>>, vector<4x896xf32>
    %c20 = arith.constant 20 : index
    %c0_60 = arith.constant 0 : index
    %69 = vector.load %arg15[%c20, %c0_60] : memref<144x896xf32, #tpu.memory_space<vmem>>, vector<4x896xf32>
    tpu.vector_store %arg15[%c20, %c0_60], %68 {strides = array<i32>} : memref<144x896xf32, #tpu.memory_space<vmem>>, vector<4x896xf32>,
    %c0_61 = arith.constant 0 : index
    %c107_62 = arith.constant 107 : index
    %70 = vector.load %arg13[%c0_61, %c107_62] : memref<4x1152xf32, #tpu.memory_space<vmem>>, vector<4x896xf32>
    %c24 = arith.constant 24 : index
    %c0_63 = arith.constant 0 : index
    %71 = vector.load %arg15[%c24, %c0_63] : memref<144x896xf32, #tpu.memory_space<vmem>>, vector<4x896xf32>
    tpu.vector_store %arg15[%c24, %c0_63], %70 {strides = array<i32>} : memref<144x896xf32, #tpu.memory_space<vmem>>, vector<4x896xf32>,
    %c0_64 = arith.constant 0 : index
    %c108_65 = arith.constant 108 : index
    %72 = vector.load %arg13[%c0_64, %c108_65] : memref<4x1152xf32, #tpu.memory_space<vmem>>, vector<4x896xf32>
    %c28 = arith.constant 28 : index
    %c0_66 = arith.constant 0 : index
    %73 = vector.load %arg15[%c28, %c0_66] : memref<144x896xf32, #tpu.memory_space<vmem>>, vector<4x896xf32>
    tpu.vector_store %arg15[%c28, %c0_66], %72 {strides = array<i32>} : memref<144x896xf32, #tpu.memory_space<vmem>>, vector<4x896xf32>,
    %c0_67 = arith.constant 0 : index
    %c109_68 = arith.constant 109 : index
    %74 = vector.load %arg13[%c0_67, %c109_68] : memref<4x1152xf32, #tpu.memory_space<vmem>>, vector<4x896xf32>
    %c32_69 = arith.constant 32 : index
    %c0_70 = arith.constant 0 : index
    %75 = vector.load %arg15[%c32_69, %c0_70] : memref<144x896xf32, #tpu.memory_space<vmem>>, vector<4x896xf32>
    tpu.vector_store %arg15[%c32_69, %c0_70], %74 {strides = array<i32>} : memref<144x896xf32, #tpu.memory_space<vmem>>, vector<4x896xf32>,
    %c0_71 = arith.constant 0 : index
    %c110 = arith.constant 110 : index
    %76 = vector.load %arg13[%c0_71, %c110] : memref<4x1152xf32, #tpu.memory_space<vmem>>, vector<4x896xf32>
    %c36 = arith.constant 36 : index
    %c0_72 = arith.constant 0 : index
    %77 = vector.load %arg15[%c36, %c0_72] : memref<144x896xf32, #tpu.memory_space<vmem>>, vector<4x896xf32>
    tpu.vector_store %arg15[%c36, %c0_72], %76 {strides = array<i32>} : memref<144x896xf32, #tpu.memory_space<vmem>>, vector<4x896xf32>,
    %c0_73 = arith.constant 0 : index
    %c126 = arith.constant 126 : index
    %78 = vector.load %arg13[%c0_73, %c126] : memref<4x1152xf32, #tpu.memory_space<vmem>>, vector<4x896xf32>
    %c40 = arith.constant 40 : index
    %c0_74 = arith.constant 0 : index
    %79 = vector.load %arg15[%c40, %c0_74] : memref<144x896xf32, #tpu.memory_space<vmem>>, vector<4x896xf32>
    tpu.vector_store %arg15[%c40, %c0_74], %78 {strides = array<i32>} : memref<144x896xf32, #tpu.memory_space<vmem>>, vector<4x896xf32>,
    %c0_75 = arith.constant 0 : index
    %c127_76 = arith.constant 127 : index
    %80 = vector.load %arg13[%c0_75, %c127_76] : memref<4x1152xf32, #tpu.memory_space<vmem>>, vector<4x896xf32>
    %c44 = arith.constant 44 : index
    %c0_77 = arith.constant 0 : index
    %81 = vector.load %arg15[%c44, %c0_77] : memref<144x896xf32, #tpu.memory_space<vmem>>, vector<4x896xf32>
    tpu.vector_store %arg15[%c44, %c0_77], %80 {strides = array<i32>} : memref<144x896xf32, #tpu.memory_space<vmem>>, vector<4x896xf32>,
    %c0_78 = arith.constant 0 : index
    %c128_79 = arith.constant 128 : index
    %82 = vector.load %arg13[%c0_78, %c128_79] : memref<4x1152xf32, #tpu.memory_space<vmem>>, vector<4x896xf32>
    %c48_80 = arith.constant 48 : index
    %c0_81 = arith.constant 0 : index
    %83 = vector.load %arg15[%c48_80, %c0_81] : memref<144x896xf32, #tpu.memory_space<vmem>>, vector<4x896xf32>
    tpu.vector_store %arg15[%c48_80, %c0_81], %82 {strides = array<i32>} : memref<144x896xf32, #tpu.memory_space<vmem>>, vector<4x896xf32>,
    %c0_82 = arith.constant 0 : index
    %c129_83 = arith.constant 129 : index
    %84 = vector.load %arg13[%c0_82, %c129_83] : memref<4x1152xf32, #tpu.memory_space<vmem>>, vector<4x896xf32>
    %c52 = arith.constant 52 : index
    %c0_84 = arith.constant 0 : index
    %85 = vector.load %arg15[%c52, %c0_84] : memref<144x896xf32, #tpu.memory_space<vmem>>, vector<4x896xf32>
    tpu.vector_store %arg15[%c52, %c0_84], %84 {strides = array<i32>} : memref<144x896xf32, #tpu.memory_space<vmem>>, vector<4x896xf32>,
    %c0_85 = arith.constant 0 : index
    %c130 = arith.constant 130 : index
    %86 = vector.load %arg13[%c0_85, %c130] : memref<4x1152xf32, #tpu.memory_space<vmem>>, vector<4x896xf32>
    %c56 = arith.constant 56 : index
    %c0_86 = arith.constant 0 : index
    %87 = vector.load %arg15[%c56, %c0_86] : memref<144x896xf32, #tpu.memory_space<vmem>>, vector<4x896xf32>
    tpu.vector_store %arg15[%c56, %c0_86], %86 {strides = array<i32>} : memref<144x896xf32, #tpu.memory_space<vmem>>, vector<4x896xf32>,
    %c0_87 = arith.constant 0 : index
    %c146 = arith.constant 146 : index
    %88 = vector.load %arg13[%c0_87, %c146] : memref<4x1152xf32, #tpu.memory_space<vmem>>, vector<4x896xf32>
    %c60 = arith.constant 60 : index
    %c0_88 = arith.constant 0 : index
    %89 = vector.load %arg15[%c60, %c0_88] : memref<144x896xf32, #tpu.memory_space<vmem>>, vector<4x896xf32>
    tpu.vector_store %arg15[%c60, %c0_88], %88 {strides = array<i32>} : memref<144x896xf32, #tpu.memory_space<vmem>>, vector<4x896xf32>,
    %c0_89 = arith.constant 0 : index
    %c147_90 = arith.constant 147 : index
    %90 = vector.load %arg13[%c0_89, %c147_90] : memref<4x1152xf32, #tpu.memory_space<vmem>>, vector<4x896xf32>
    %c64_91 = arith.constant 64 : index
    %c0_92 = arith.constant 0 : index
    %91 = vector.load %arg15[%c64_91, %c0_92] : memref<144x896xf32, #tpu.memory_space<vmem>>, vector<4x896xf32>
    tpu.vector_store %arg15[%c64_91, %c0_92], %90 {strides = array<i32>} : memref<144x896xf32, #tpu.memory_space<vmem>>, vector<4x896xf32>,
    %c0_93 = arith.constant 0 : index
    %c148_94 = arith.constant 148 : index
    %92 = vector.load %arg13[%c0_93, %c148_94] : memref<4x1152xf32, #tpu.memory_space<vmem>>, vector<4x896xf32>
    %c68 = arith.constant 68 : index
    %c0_95 = arith.constant 0 : index
    %93 = vector.load %arg15[%c68, %c0_95] : memref<144x896xf32, #tpu.memory_space<vmem>>, vector<4x896xf32>
    tpu.vector_store %arg15[%c68, %c0_95], %92 {strides = array<i32>} : memref<144x896xf32, #tpu.memory_space<vmem>>, vector<4x896xf32>,
    %c0_96 = arith.constant 0 : index
    %c149_97 = arith.constant 149 : index
    %94 = vector.load %arg13[%c0_96, %c149_97] : memref<4x1152xf32, #tpu.memory_space<vmem>>, vector<4x896xf32>
    %c72 = arith.constant 72 : index
    %c0_98 = arith.constant 0 : index
    %95 = vector.load %arg15[%c72, %c0_98] : memref<144x896xf32, #tpu.memory_space<vmem>>, vector<4x896xf32>
    tpu.vector_store %arg15[%c72, %c0_98], %94 {strides = array<i32>} : memref<144x896xf32, #tpu.memory_space<vmem>>, vector<4x896xf32>,
    %c0_99 = arith.constant 0 : index
    %c150 = arith.constant 150 : index
    %96 = vector.load %arg13[%c0_99, %c150] : memref<4x1152xf32, #tpu.memory_space<vmem>>, vector<4x896xf32>
    %c76 = arith.constant 76 : index
    %c0_100 = arith.constant 0 : index
    %97 = vector.load %arg15[%c76, %c0_100] : memref<144x896xf32, #tpu.memory_space<vmem>>, vector<4x896xf32>
    tpu.vector_store %arg15[%c76, %c0_100], %96 {strides = array<i32>} : memref<144x896xf32, #tpu.memory_space<vmem>>, vector<4x896xf32>,
    %c0_101 = arith.constant 0 : index
    %c166 = arith.constant 166 : index
    %98 = vector.load %arg13[%c0_101, %c166] : memref<4x1152xf32, #tpu.memory_space<vmem>>, vector<4x896xf32>
    %c80_102 = arith.constant 80 : index
    %c0_103 = arith.constant 0 : index
    %99 = vector.load %arg15[%c80_102, %c0_103] : memref<144x896xf32, #tpu.memory_space<vmem>>, vector<4x896xf32>
    tpu.vector_store %arg15[%c80_102, %c0_103], %98 {strides = array<i32>} : memref<144x896xf32, #tpu.memory_space<vmem>>, vector<4x896xf32>,
    %c0_104 = arith.constant 0 : index
    %c167 = arith.constant 167 : index
    %100 = vector.load %arg13[%c0_104, %c167] : memref<4x1152xf32, #tpu.memory_space<vmem>>, vector<4x896xf32>
    %c84 = arith.constant 84 : index
    %c0_105 = arith.constant 0 : index
    %101 = vector.load %arg15[%c84, %c0_105] : memref<144x896xf32, #tpu.memory_space<vmem>>, vector<4x896xf32>
    tpu.vector_store %arg15[%c84, %c0_105], %100 {strides = array<i32>} : memref<144x896xf32, #tpu.memory_space<vmem>>, vector<4x896xf32>,
    %c0_106 = arith.constant 0 : index
    %c168 = arith.constant 168 : index
    %102 = vector.load %arg13[%c0_106, %c168] : memref<4x1152xf32, #tpu.memory_space<vmem>>, vector<4x896xf32>
    %c88_107 = arith.constant 88 : index
    %c0_108 = arith.constant 0 : index
    %103 = vector.load %arg15[%c88_107, %c0_108] : memref<144x896xf32, #tpu.memory_space<vmem>>, vector<4x896xf32>
    tpu.vector_store %arg15[%c88_107, %c0_108], %102 {strides = array<i32>} : memref<144x896xf32, #tpu.memory_space<vmem>>, vector<4x896xf32>,
    %c0_109 = arith.constant 0 : index
    %c169 = arith.constant 169 : index
    %104 = vector.load %arg13[%c0_109, %c169] : memref<4x1152xf32, #tpu.memory_space<vmem>>, vector<4x896xf32>
    %c92 = arith.constant 92 : index
    %c0_110 = arith.constant 0 : index
    %105 = vector.load %arg15[%c92, %c0_110] : memref<144x896xf32, #tpu.memory_space<vmem>>, vector<4x896xf32>
    tpu.vector_store %arg15[%c92, %c0_110], %104 {strides = array<i32>} : memref<144x896xf32, #tpu.memory_space<vmem>>, vector<4x896xf32>,
    %c0_111 = arith.constant 0 : index
    %c170 = arith.constant 170 : index
    %106 = vector.load %arg13[%c0_111, %c170] : memref<4x1152xf32, #tpu.memory_space<vmem>>, vector<4x896xf32>
    %c96_112 = arith.constant 96 : index
    %c0_113 = arith.constant 0 : index
    %107 = vector.load %arg15[%c96_112, %c0_113] : memref<144x896xf32, #tpu.memory_space<vmem>>, vector<4x896xf32>
    tpu.vector_store %arg15[%c96_112, %c0_113], %106 {strides = array<i32>} : memref<144x896xf32, #tpu.memory_space<vmem>>, vector<4x896xf32>,
    %c0_114 = arith.constant 0 : index
    %c0_115 = arith.constant 0 : index
    %108 = vector.load %arg6[%c0_114, %c0_115] : memref<8x100xf32, #tpu.memory_space<vmem>>, vector<8x100xf32>
    %c0_116 = arith.constant 0 : index
    %c0_117 = arith.constant 0 : index
    %109 = vector.load %arg15[%c0_116, %c0_117] : memref<144x896xf32, #tpu.memory_space<vmem>>, vector<100x896xf32>
    %cst_118 = arith.constant dense<0.000000e+00> : vector<8x896xf32>
    %110 = tpu.matmul %108, %109, %cst_118 {dimension_numbers = #tpu.dot_dimension_numbers<[1], [0], [0], [1], [0, 0, 1, 1], [], []>} : vector<8x100xf32>, vector<100x896xf32>, vector<8x896xf32> -> vector<8x896xf32>
    %111 = vector.broadcast %0 : vector<1x896xf32> to vector<8x896xf32>
    %112 = arith.mulf %110, %111 : vector<8x896xf32>
    %cst_119 = arith.constant dense<0.000000e+00> : vector<8xf32>
    %113 = vector.multi_reduction <add>, %112, %cst_119 [1] : vector<8x896xf32> to vector<8xf32>
    %114 = vector.shape_cast %113 : vector<8xf32> to vector<8x1xf32>
    %cst_120 = arith.constant 0.001953125 : f32
    %115 = vector.broadcast %cst_120 : f32 to vector<8x1xf32>
    %116 = arith.mulf %114, %115 : vector<8x1xf32>
    %117 = arith.mulf %112, %112 : vector<8x896xf32>
    %cst_121 = arith.constant dense<0.000000e+00> : vector<8xf32>
    %118 = vector.multi_reduction <add>, %117, %cst_121 [1] : vector<8x896xf32> to vector<8xf32>
    %119 = vector.shape_cast %118 : vector<8xf32> to vector<8x1xf32>
    %cst_122 = arith.constant 0.001953125 : f32
    %120 = vector.broadcast %cst_122 : f32 to vector<8x1xf32>
    %121 = arith.mulf %119, %120 : vector<8x1xf32>
    %122 = arith.mulf %116, %116 : vector<8x1xf32>
    %123 = arith.subf %121, %122 : vector<8x1xf32>
    %cst_123 = arith.constant 9.99999974E-6 : f32
    %124 = vector.broadcast %cst_123 : f32 to vector<8x1xf32>
    %125 = arith.addf %123, %124 : vector<8x1xf32>
    %126 = math.rsqrt %125 : vector<8x1xf32>
    %c0_124 = arith.constant 0 : index
    %c0_125 = arith.constant 0 : index
    %127 = vector.load %arg7[%c0_124, %c0_125] : memref<8x1xf32, #tpu.memory_space<vmem>>, vector<8x1xf32>
    %128 = arith.mulf %126, %127 : vector<8x1xf32>
    %c0_126 = arith.constant 0 : index
    %c0_127 = arith.constant 0 : index
    %129 = vector.load %arg8[%c0_126, %c0_127] : memref<8x1xf32, #tpu.memory_space<vmem>>, vector<8x1xf32>
    %130 = arith.mulf %116, %128 : vector<8x1xf32>
    %131 = arith.subf %129, %130 : vector<8x1xf32>
    %132 = vector.broadcast %128 : vector<8x1xf32> to vector<8x896xf32>
    %133 = arith.mulf %112, %132 : vector<8x896xf32>
    %134 = vector.broadcast %131 : vector<8x1xf32> to vector<8x896xf32>
    %135 = vector.broadcast %0 : vector<1x896xf32> to vector<8x896xf32>
    %136 = arith.mulf %134, %135 : vector<8x896xf32>
    %137 = arith.addf %133, %136 : vector<8x896xf32>
    %c0_128 = arith.constant 0 : index
    %c128_129 = arith.constant 128 : index
    %138 = vector.load %arg14[%c0_128, %c128_129] : memref<8x1152xf32, #tpu.memory_space<vmem>>, vector<8x896xf32>
    tpu.vector_store %arg14[%c0_128, %c128_129], %137 {strides = array<i32>} : memref<8x1152xf32, #tpu.memory_space<vmem>>, vector<8x896xf32>,
    %c0_130 = arith.constant 0 : index
    %c107_131 = arith.constant 107 : index
    %139 = vector.load %arg14[%c0_130, %c107_131] : memref<8x1152xf32, #tpu.memory_space<vmem>>, vector<8x896xf32>
    %c0_132 = arith.constant 0 : index
    %c0_133 = arith.constant 0 : index
    %140 = vector.load %arg15[%c0_132, %c0_133] : memref<144x896xf32, #tpu.memory_space<vmem>>, vector<8x896xf32>
    tpu.vector_store %arg15[%c0_132, %c0_133], %139 {strides = array<i32>} : memref<144x896xf32, #tpu.memory_space<vmem>>, vector<8x896xf32>,
    %c0_134 = arith.constant 0 : index
    %c108_135 = arith.constant 108 : index
    %141 = vector.load %arg14[%c0_134, %c108_135] : memref<8x1152xf32, #tpu.memory_space<vmem>>, vector<8x896xf32>
    %c8_136 = arith.constant 8 : index
    %c0_137 = arith.constant 0 : index
    %142 = vector.load %arg15[%c8_136, %c0_137] : memref<144x896xf32, #tpu.memory_space<vmem>>, vector<8x896xf32>
    tpu.vector_store %arg15[%c8_136, %c0_137], %141 {strides = array<i32>} : memref<144x896xf32, #tpu.memory_space<vmem>>, vector<8x896xf32>,
    %c0_138 = arith.constant 0 : index
    %c109_139 = arith.constant 109 : index
    %143 = vector.load %arg14[%c0_138, %c109_139] : memref<8x1152xf32, #tpu.memory_space<vmem>>, vector<8x896xf32>
    %c16_140 = arith.constant 16 : index
    %c0_141 = arith.constant 0 : index
    %144 = vector.load %arg15[%c16_140, %c0_141] : memref<144x896xf32, #tpu.memory_space<vmem>>, vector<8x896xf32>
    tpu.vector_store %arg15[%c16_140, %c0_141], %143 {strides = array<i32>} : memref<144x896xf32, #tpu.memory_space<vmem>>, vector<8x896xf32>,
    %c0_142 = arith.constant 0 : index
    %c127_143 = arith.constant 127 : index
    %145 = vector.load %arg14[%c0_142, %c127_143] : memref<8x1152xf32, #tpu.memory_space<vmem>>, vector<8x896xf32>
    %c24_144 = arith.constant 24 : index
    %c0_145 = arith.constant 0 : index
    %146 = vector.load %arg15[%c24_144, %c0_145] : memref<144x896xf32, #tpu.memory_space<vmem>>, vector<8x896xf32>
    tpu.vector_store %arg15[%c24_144, %c0_145], %145 {strides = array<i32>} : memref<144x896xf32, #tpu.memory_space<vmem>>, vector<8x896xf32>,
    %c0_146 = arith.constant 0 : index
    %c128_147 = arith.constant 128 : index
    %147 = vector.load %arg14[%c0_146, %c128_147] : memref<8x1152xf32, #tpu.memory_space<vmem>>, vector<8x896xf32>
    %c32_148 = arith.constant 32 : index
    %c0_149 = arith.constant 0 : index
    %148 = vector.load %arg15[%c32_148, %c0_149] : memref<144x896xf32, #tpu.memory_space<vmem>>, vector<8x896xf32>
    tpu.vector_store %arg15[%c32_148, %c0_149], %147 {strides = array<i32>} : memref<144x896xf32, #tpu.memory_space<vmem>>, vector<8x896xf32>,
    %c0_150 = arith.constant 0 : index
    %c129_151 = arith.constant 129 : index
    %149 = vector.load %arg14[%c0_150, %c129_151] : memref<8x1152xf32, #tpu.memory_space<vmem>>, vector<8x896xf32>
    %c40_152 = arith.constant 40 : index
    %c0_153 = arith.constant 0 : index
    %150 = vector.load %arg15[%c40_152, %c0_153] : memref<144x896xf32, #tpu.memory_space<vmem>>, vector<8x896xf32>
    tpu.vector_store %arg15[%c40_152, %c0_153], %149 {strides = array<i32>} : memref<144x896xf32, #tpu.memory_space<vmem>>, vector<8x896xf32>,
    %c0_154 = arith.constant 0 : index
    %c147_155 = arith.constant 147 : index
    %151 = vector.load %arg14[%c0_154, %c147_155] : memref<8x1152xf32, #tpu.memory_space<vmem>>, vector<8x896xf32>
    %c48_156 = arith.constant 48 : index
    %c0_157 = arith.constant 0 : index
    %152 = vector.load %arg15[%c48_156, %c0_157] : memref<144x896xf32, #tpu.memory_space<vmem>>, vector<8x896xf32>
    tpu.vector_store %arg15[%c48_156, %c0_157], %151 {strides = array<i32>} : memref<144x896xf32, #tpu.memory_space<vmem>>, vector<8x896xf32>,
    %c0_158 = arith.constant 0 : index
    %c148_159 = arith.constant 148 : index
    %153 = vector.load %arg14[%c0_158, %c148_159] : memref<8x1152xf32, #tpu.memory_space<vmem>>, vector<8x896xf32>
    %c56_160 = arith.constant 56 : index
    %c0_161 = arith.constant 0 : index
    %154 = vector.load %arg15[%c56_160, %c0_161] : memref<144x896xf32, #tpu.memory_space<vmem>>, vector<8x896xf32>
    tpu.vector_store %arg15[%c56_160, %c0_161], %153 {strides = array<i32>} : memref<144x896xf32, #tpu.memory_space<vmem>>, vector<8x896xf32>,
    %c0_162 = arith.constant 0 : index
    %c149_163 = arith.constant 149 : index
    %155 = vector.load %arg14[%c0_162, %c149_163] : memref<8x1152xf32, #tpu.memory_space<vmem>>, vector<8x896xf32>
    %c64_164 = arith.constant 64 : index
    %c0_165 = arith.constant 0 : index
    %156 = vector.load %arg15[%c64_164, %c0_165] : memref<144x896xf32, #tpu.memory_space<vmem>>, vector<8x896xf32>
    tpu.vector_store %arg15[%c64_164, %c0_165], %155 {strides = array<i32>} : memref<144x896xf32, #tpu.memory_space<vmem>>, vector<8x896xf32>,
    %c0_166 = arith.constant 0 : index
    %c0_167 = arith.constant 0 : index
    %157 = vector.load %arg9[%c0_166, %c0_167] : memref<16x72xf32, #tpu.memory_space<vmem>>, vector<16x72xf32>
    %c0_168 = arith.constant 0 : index
    %c0_169 = arith.constant 0 : index
    %158 = vector.load %arg15[%c0_168, %c0_169] : memref<144x896xf32, #tpu.memory_space<vmem>>, vector<72x896xf32>
    %cst_170 = arith.constant dense<0.000000e+00> : vector<16x896xf32>
    %159 = tpu.matmul %157, %158, %cst_170 {dimension_numbers = #tpu.dot_dimension_numbers<[1], [0], [0], [1], [0, 0, 1, 1], [], []>} : vector<16x72xf32>, vector<72x896xf32>, vector<16x896xf32> -> vector<16x896xf32>
    %160 = vector.broadcast %0 : vector<1x896xf32> to vector<16x896xf32>
    %161 = arith.mulf %159, %160 : vector<16x896xf32>
    %cst_171 = arith.constant dense<0.000000e+00> : vector<16xf32>
    %162 = vector.multi_reduction <add>, %161, %cst_171 [1] : vector<16x896xf32> to vector<16xf32>
    %163 = vector.shape_cast %162 : vector<16xf32> to vector<16x1xf32>
    %cst_172 = arith.constant 0.001953125 : f32
    %164 = vector.broadcast %cst_172 : f32 to vector<16x1xf32>
    %165 = arith.mulf %163, %164 : vector<16x1xf32>
    %166 = arith.mulf %161, %161 : vector<16x896xf32>
    %cst_173 = arith.constant dense<0.000000e+00> : vector<16xf32>
    %167 = vector.multi_reduction <add>, %166, %cst_173 [1] : vector<16x896xf32> to vector<16xf32>
    %168 = vector.shape_cast %167 : vector<16xf32> to vector<16x1xf32>
    %cst_174 = arith.constant 0.001953125 : f32
    %169 = vector.broadcast %cst_174 : f32 to vector<16x1xf32>
    %170 = arith.mulf %168, %169 : vector<16x1xf32>
    %171 = arith.mulf %165, %165 : vector<16x1xf32>
    %172 = arith.subf %170, %171 : vector<16x1xf32>
    %cst_175 = arith.constant 9.99999974E-6 : f32
    %173 = vector.broadcast %cst_175 : f32 to vector<16x1xf32>
    %174 = arith.addf %172, %173 : vector<16x1xf32>
    %175 = math.rsqrt %174 : vector<16x1xf32>
    %c0_176 = arith.constant 0 : index
    %c0_177 = arith.constant 0 : index
    %176 = vector.load %arg10[%c0_176, %c0_177] : memref<16x1xf32, #tpu.memory_space<vmem>>, vector<16x1xf32>
    %177 = arith.mulf %175, %176 : vector<16x1xf32>
    %c0_178 = arith.constant 0 : index
    %c0_179 = arith.constant 0 : index
    %178 = vector.load %arg11[%c0_178, %c0_179] : memref<16x1xf32, #tpu.memory_space<vmem>>, vector<16x1xf32>
    %179 = arith.mulf %165, %177 : vector<16x1xf32>
    %180 = arith.subf %178, %179 : vector<16x1xf32>
    %181 = vector.broadcast %177 : vector<16x1xf32> to vector<16x896xf32>
    %182 = arith.mulf %161, %181 : vector<16x896xf32>
    %183 = vector.broadcast %180 : vector<16x1xf32> to vector<16x896xf32>
    %184 = vector.broadcast %0 : vector<1x896xf32> to vector<16x896xf32>
    %185 = arith.mulf %183, %184 : vector<16x896xf32>
    %186 = arith.addf %182, %185 : vector<16x896xf32>
    %c0_180 = arith.constant 0 : index
    %c0_181 = arith.constant 0 : index
    %187 = vector.load %arg12[%c0_180, %c0_181] : memref<16x896xf32, #tpu.memory_space<vmem>>, vector<16x896xf32>
    tpu.vector_store %arg12[%c0_180, %c0_181], %186 {strides = array<i32>} : memref<16x896xf32, #tpu.memory_space<vmem>>, vector<16x896xf32>,
    return
  }
  func.func @transform_0(%arg0: i32) -> (i32, i32) {
    %c0_i32 = arith.constant 0 : i32
    %c0_i32_0 = arith.constant 0 : i32
    %c0_i32_1 = arith.constant 0 : i32
    return %c0_i32, %c0_i32_0 : i32, i32
  }
  func.func @transform_1(%arg0: i32) -> (i32, i32) {
    %c0_i32 = arith.constant 0 : i32
    %c0_i32_0 = arith.constant 0 : i32
    %c0_i32_1 = arith.constant 0 : i32
    return %c0_i32, %c0_i32_0 : i32, i32
  }
  func.func @transform_2(%arg0: i32) -> (i32, i32) {
    %c0_i32 = arith.constant 0 : i32
    %c0_i32_0 = arith.constant 0 : i32
    %c0_i32_1 = arith.constant 0 : i32
    return %c0_i32, %c0_i32_0 : i32, i32
  }
  func.func @transform_3(%arg0: i32) -> (i32, i32) {
    %c0_i32 = arith.constant 0 : i32
    %c0_i32_0 = arith.constant 0 : i32
    %c0_i32_1 = arith.constant 0 : i32
    return %c0_i32, %c0_i32_0 : i32, i32
  }
  func.func @transform_4(%arg0: i32) -> (i32, i32) {
    %c0_i32 = arith.constant 0 : i32
    %c0_i32_0 = arith.constant 0 : i32
    %c0_i32_1 = arith.constant 0 : i32
    return %c0_i32, %c0_i32_0 : i32, i32
  }
  func.func @transform_5(%arg0: i32) -> (i32, i32) {
    %c0_i32 = arith.constant 0 : i32
    %c0_i32_0 = arith.constant 0 : i32
    %c0_i32_1 = arith.constant 0 : i32
    return %c0_i32, %c0_i32_0 : i32, i32
  }
  func.func @transform_6(%arg0: i32) -> (i32, i32) {
    %c0_i32 = arith.constant 0 : i32
    %c0_i32_0 = arith.constant 0 : i32
    %c0_i32_1 = arith.constant 0 : i32
    return %c0_i32, %c0_i32_0 : i32, i32
  }
  func.func @transform_7(%arg0: i32) -> (i32, i32) {
    %c0_i32 = arith.constant 0 : i32
    %c0_i32_0 = arith.constant 0 : i32
    %c0_i32_1 = arith.constant 0 : i32
    return %c0_i32, %c0_i32_0 : i32, i32
  }
  func.func @transform_8(%arg0: i32) -> (i32, i32) {
    %c0_i32 = arith.constant 0 : i32
    %c0_i32_0 = arith.constant 0 : i32
    %c0_i32_1 = arith.constant 0 : i32
    return %c0_i32, %c0_i32_0 : i32, i32
  }
  func.func @transform_9(%arg0: i32) -> (i32, i32) {
    %c0_i32 = arith.constant 0 : i32
    %c0_i32_0 = arith.constant 0 : i32
    %c0_i32_1 = arith.constant 0 : i32
    return %c0_i32, %c0_i32_0 : i32, i32
  }
  func.func @transform_10(%arg0: i32) -> (i32, i32) {
    %c0_i32 = arith.constant 0 : i32
    %c0_i32_0 = arith.constant 0 : i32
    %c0_i32_1 = arith.constant 0 : i32
    return %c0_i32, %c0_i32_0 : i32, i32
  }
  func.func @transform_11(%arg0: i32) -> (i32, i32) {
    %c0_i32 = arith.constant 0 : i32
    %c0_i32_0 = arith.constant 0 : i32
    %c0_i32_1 = arith.constant 0 : i32
    return %c0_i32, %c0_i32_0 : i32, i32
  }
}

</mosaic_0001>

<bundles_post_ra>
// kernel: conv_block_forward.1
= control target key start
LH: loop header
LB: loop body
LE: loop exit
PB: predicated region body
PF: predicated region fallthrough
CT: control target
= control target key end

     0   :  { %s4594_s23 = smov 21   ;;  %s4595_s19 = smov 20   ;;  %vm6879_vm0 = vcmask 171008   ;;  %vm214_vm1 = vcmask 162816   ;;  %vm1056_vm2 = vcmask 130048   ;;  %vm6882_vm3 = vcmask 154624   ;;  %s6814_s0 = inlined_call_operand.vmem [shape: f32[16,1152], index: 0, kind: input, shape index: {}]   ;;  %s6815_s2 = inlined_call_operand.vmem [shape: f32[4,144], index: 2, kind: input, shape index: {}]   ;;  %s6816_s1 = inlined_call_operand.vmem [shape: f32[1,896], index: 1, kind: input, shape index: {}]   ;;  %s6817_s3 = inlined_call_operand.vmem [shape: f32[4,1], index: 3, kind: input, shape index: {}]   ;;  %s6818_s4 = inlined_call_operand.vmem [shape: f32[4,1], index: 4, kind: input, shape index: {}]   ;;  %s6819_s5 = inlined_call_operand.vmem [shape: f32[8,100], index: 5, kind: input, shape index: {}]   ;;  %s6820_s6 = inlined_call_operand.vmem [shape: f32[8,1], index: 6, kind: input, shape index: {}]   ;;  %s6821_s7 = inlined_call_operand.vmem [shape: f32[8,1], index: 7, kind: input, shape index: {}]   ;;  %s6822_s8 = inlined_call_operand.vmem [shape: f32[16,72], index: 8, kind: input, shape index: {}]   ;;  %s6823_s9 = inlined_call_operand.vmem [shape: f32[16,1], index: 9, kind: input, shape index: {}]   ;;  %s6824_s10 = inlined_call_operand.vmem [shape: f32[16,1], index: 10, kind: input, shape index: {}]   ;;  %s6825_s11 = inlined_call_operand.vmem [shape: f32[16,896], index: 11, kind: output, shape index: {}]  }
   0x1   :  { %v4685_v0 = vld [vmem:[%s6814_s0 + $0x50] sm:$0xff]  ;;  %v4690_v1 = vld [vmem:[%s6814_s0 + $0x8] sm:$0xff]  ;;  %v4695_v2 = vld [vmem:[%s6814_s0 + $0x58] sm:$0xff]  ;;  %s4596_s20 = smov 19   ;;  %s4597_s21 = smov 1   ;;  %vm6885_vm4 = vcmask 7168  }
   0x2   :  { %93 = vrot.lane.b32.xlu1 %v4685_v0, %s4594_s23  ;;  %77 = vrot.lane.b32.xlu0 %v4690_v1, %s4594_s23  ;;  %v4704_v3 = vld [vmem:[%s6814_s0 + $0x10] sm:$0xff]  ;;  %493 = vst [vmem:[#allocation4 + $0x200] sm:$0xff] %v4695_v2  ;;  %485 = vst [vmem:[#allocation4 + $0x1c0] sm:$0xff] %v4690_v1  ;;  %v4712_v4 = vld [vmem:[%s6814_s0 + $0x20] sm:$0xff]  ;;  %s4598_s22 = smov 127   ;;  %s4599_s28 = smov 109  }
   0x3   :  { %492 = vst [vmem:[#allocation4 + $0x1f8] sm:$0xff] %v4685_v0  ;;  %v4717_v5 = vld [vmem:[%s6814_s0 + $0x18] sm:$0xff]  ;;  %486 = vst [vmem:[#allocation4 + $0x1c8] sm:$0xff] %v4704_v3  ;;  %v4723_v6 = vld [vmem:[%s6814_s0 + $0x68] sm:$0xff]  ;;  %s4600_s29 = smov 108   ;;  %s4601_s30 = smov 107  }
   0x4   :  { %v4728_v7 = vld [vmem:[%s6814_s0 + $0x60] sm:$0xff]  ;;  %488 = vst [vmem:[#allocation4 + $0x1d8] sm:$0xff] %v4712_v4  ;;  %487 = vst [vmem:[#allocation4 + $0x1d0] sm:$0xff] %v4717_v5  ;;  %v51_v8 = vld [vmem:[%s6814_s0 + $0x48] sm:$0xff]  ;;  %vm6884_vm5 = vcmask 1039360   ;;  %vm670_vm6 = vcmask 891904  }
   0x5   :  { %495 = vst [vmem:[#allocation4 + $0x210] sm:$0xff] %v4723_v6  ;;  %494 = vst [vmem:[#allocation4 + $0x208] sm:$0xff] %v4728_v7  ;;  %v43_v9 = vld [vmem:[%s6814_s0] sm:$0xff]  ;;  %v4823_v10 = vld [vmem:[%s6814_s0 + $0x28] sm:$0xff]  ;;  %vm6883_vm7 = vcmask 883712   ;;  %vm6880_vm8 = vcmask 875520  }
   0x6   :  { %95 = vrot.lane.b32.xlu1 %v4695_v2, %s4594_s23  ;;  %79 = vrot.lane.b32.xlu0 %v4704_v3, %s4594_s23  ;;  %v4832_v11 = vld [vmem:[%s6814_s0 + $0x70] sm:$0xff]  ;;  %v4903_v45 = vld [vmem:[%s6815_s2] sm:$0xff]  ;;  %vm6878_vm9 = vcmask 1043456   ;;  %s4607_s26 = smov 90   ;;  %s4608_s27 = smov 88   ;;  %vm2224_vm10 = vcmask 900096  }
   0x7   :  { %v4911_v47 = vcombine.high %v4903_v45, %v4903_v45  ;;  %v4929_v52 = vld [vmem:[%s6814_s0 + $0x30] sm:$0xff]  ;;  %v4943_v59 = vld [vmem:[%s6814_s0 + $0x78] sm:$0xff]  ;;  %s4609_s12 = smov 42   ;;  %s4610_s13 = smov 41   ;;  %vm1509_vm11 = vcmask 343040   ;;  %vm1609_vm12 = vcmask 326656  }
   0x8   :  { %s4611_s14 = smov 106   ;;  %s4612_s15 = smov 40   ;;  %vm2421_vm13 = vcmask 867328   ;;  %vm1709_vm14 = vcmask 310272   ;;  %vm2174_vm15 = vcmask 1031168  }
   0x9   :  { %4150 = vmatprep.mubr.msk.f32.mxu0 %vm1056_vm2, %v4911_v47  ;;  %4151 = vmatprep.mubr.msk.f32.mxu1 %vm1056_vm2, %v4911_v47  ;;  %s4614_s16 = smov 38   ;;  %s4616_s17 = smov 2  }
   0xa   :  { %91 = vrot.lane.b32.xlu1 %v51_v8, %s4594_s23  ;;  %75 = vrot.lane.b32.xlu0 %v43_v9, %s4594_s23  ;;  %s4618_s18 = smov 89   ;;  %s4619_s24 = smov 87  }
   0xb   :  { %s4620_s25 = smov 86  }
   0xe   :  { %83 = vrot.lane.b32.xlu1 %v4712_v4, %s4594_s23  ;;  %81 = vrot.lane.b32.xlu0 %v4717_v5, %s4594_s23 }
  0x12   :  { %99 = vrot.lane.b32.xlu1 %v4723_v6, %s4594_s23  ;;  %97 = vrot.lane.b32.xlu0 %v4728_v7, %s4594_s23 }
  0x16   :  { %186 = vrot.lane.b32.xlu1 %v4704_v3, %s4595_s19  ;;  %184 = vrot.lane.b32.xlu0 %v4690_v1, %s4595_s19 }
  0x1a   :  { %202 = vrot.lane.b32.xlu1 %v4695_v2, %s4595_s19  ;;  %200 = vrot.lane.b32.xlu0 %v4685_v0, %s4595_s19 }
  0x1e   :  { %198 = vrot.lane.b32.xlu1 %v51_v8, %s4595_s19  ;;  %182 = vrot.lane.b32.xlu0 %v43_v9, %s4595_s19 }
  0x22   :  { %190 = vrot.lane.b32.xlu1 %v4712_v4, %s4595_s19  ;;  %188 = vrot.lane.b32.xlu0 %v4717_v5, %s4595_s19 }
  0x26   :  { %206 = vrot.lane.b32.xlu1 %v4723_v6, %s4595_s19  ;;  %204 = vrot.lane.b32.xlu0 %v4728_v7, %s4595_s19 }
  0x2a   :  { %293 = vrot.lane.b32.xlu1 %v4704_v3, %s4596_s20  ;;  %291 = vrot.lane.b32.xlu0 %v4690_v1, %s4596_s20 }
  0x2e   :  { %309 = vrot.lane.b32.xlu1 %v4695_v2, %s4596_s20  ;;  %307 = vrot.lane.b32.xlu0 %v4685_v0, %s4596_s20 }
  0x32   :  { %305 = vrot.lane.b32.xlu1 %v51_v8, %s4596_s20  ;;  %289 = vrot.lane.b32.xlu0 %v43_v9, %s4596_s20 }
  0x36   :  { %297 = vrot.lane.b32.xlu1 %v4712_v4, %s4596_s20  ;;  %295 = vrot.lane.b32.xlu0 %v4717_v5, %s4596_s20 }
  0x3a   :  { %313 = vrot.lane.b32.xlu1 %v4723_v6, %s4596_s20  ;;  %311 = vrot.lane.b32.xlu0 %v4728_v7, %s4596_s20 }
  0x3e   :  { %400 = vrot.lane.b32.xlu1 %v4704_v3, %s4597_s21  ;;  %398 = vrot.lane.b32.xlu0 %v4690_v1, %s4597_s21 }
  0x42   :  { %416 = vrot.lane.b32.xlu1 %v4695_v2, %s4597_s21  ;;  %414 = vrot.lane.b32.xlu0 %v4685_v0, %s4597_s21 }
  0x46   :  { %412 = vrot.lane.b32.xlu1 %v51_v8, %s4597_s21  ;;  %396 = vrot.lane.b32.xlu0 %v43_v9, %s4597_s21 }
  0x4a   :  { %404 = vrot.lane.b32.xlu1 %v4712_v4, %s4597_s21  ;;  %402 = vrot.lane.b32.xlu0 %v4717_v5, %s4597_s21 }
  0x4e   :  { %420 = vrot.lane.b32.xlu1 %v4723_v6, %s4597_s21  ;;  %418 = vrot.lane.b32.xlu0 %v4728_v7, %s4597_s21 }
  0x52   :  { %535 = vrot.lane.b32.xlu1 %v4717_v5, %s4598_s22  ;;  %533 = vrot.lane.b32.xlu0 %v4704_v3, %s4598_s22 }
  0x56   :  { %551 = vrot.lane.b32.xlu1 %v4728_v7, %s4598_s22  ;;  %549 = vrot.lane.b32.xlu0 %v4695_v2, %s4598_s22 }
  0x5a   :  { %547 = vrot.lane.b32.xlu1 %v4685_v0, %s4598_s22  ;;  %531 = vrot.lane.b32.xlu0 %v4690_v1, %s4598_s22 }
  0x5e   :  { %539 = vrot.lane.b32.xlu1 %v4823_v10, %s4598_s22  ;;  %537 = vrot.lane.b32.xlu0 %v4712_v4, %s4598_s22 }
  0x62   :  { %555 = vrot.lane.b32.xlu1 %v4832_v11, %s4598_s22  ;;  %553 = vrot.lane.b32.xlu0 %v4723_v6, %s4598_s22 }
  0x66   :  { %642 = vrot.lane.b32.xlu1 %v4717_v5, %s4599_s28  ;;  %640 = vrot.lane.b32.xlu0 %v4704_v3, %s4599_s28 }
  0x6a   :  { %658 = vrot.lane.b32.xlu1 %v4728_v7, %s4599_s28  ;;  %656 = vrot.lane.b32.xlu0 %v4695_v2, %s4599_s28 }
  0x6e   :  { %654 = vrot.lane.b32.xlu1 %v4685_v0, %s4599_s28  ;;  %638 = vrot.lane.b32.xlu0 %v4690_v1, %s4599_s28 }
  0x72   :  { %646 = vrot.lane.b32.xlu1 %v4823_v10, %s4599_s28  ;;  %644 = vrot.lane.b32.xlu0 %v4712_v4, %s4599_s28 }
  0x74   :  { %v94_v12 = vpop.permute.xlu1 %93  ;;  %v78_v13 = vpop.permute.xlu0 %77 }
  0x76   :  { %662 = vrot.lane.b32.xlu1 %v4832_v11, %s4599_s28  ;;  %660 = vrot.lane.b32.xlu0 %v4723_v6, %s4599_s28 }
  0x78   :  { %v96_v14 = vpop.permute.xlu1 %95  ;;  %v80_v15 = vpop.permute.xlu0 %79 }
  0x79   :  { %v116_v16 = vsel %vm6879_vm0, %v94_v12, %v96_v14  ;;  %v109_v17 = vsel %vm6879_vm0, %v78_v13, %v80_v15 }
  0x7a   :  { %144 = vst [vmem:[#allocation4 + $0x40] sm:$0xff] %v116_v16  ;;  %137 = vst [vmem:[#allocation4 + $0x8] sm:$0xff] %v109_v17  ;;  %749 = vrot.lane.b32.xlu1 %v4717_v5, %s4600_s29  ;;  %747 = vrot.lane.b32.xlu0 %v4704_v3, %s4600_s29  ;;  %v4248_v18 = vpack.c.bf16 %v116_v16, %v109_v17 }
  0x7c   :  { %v92_v19 = vpop.permute.xlu1 %91  ;;  %v76_v20 = vpop.permute.xlu0 %75  ;;  %4249 = vmatprep.subr.bf16.mxu0 %v4248_v18 }
  0x7d   :  { %v115_v21 = vsel %vm6879_vm0, %v92_v19, %v94_v12  ;;  %v108_v22 = vsel %vm6879_vm0, %v76_v20, %v78_v13 }
  0x7e   :  { %143 = vst [vmem:[#allocation4 + $0x38] sm:$0xff] %v115_v21  ;;  %136 = vst [vmem:[#allocation4] sm:$0xff] %v108_v22  ;;  %765 = vrot.lane.b32.xlu1 %v4728_v7, %s4600_s29  ;;  %763 = vrot.lane.b32.xlu0 %v4695_v2, %s4600_s29  ;;  %v4250_v23 = vpack.c.bf16 %v115_v21, %v108_v22 }
  0x80   :  { %v4870_v24 = vpop.permute.xlu1 %83  ;;  %v82_v25 = vpop.permute.xlu0 %81  ;;  %4251 = vmatpush1.bf16.msra.mxu0 %v4250_v23 }
  0x81   :  { %v110_v26 = vsel %vm6879_vm0, %v80_v15, %v82_v25  ;;  %v111_v27 = vsel %vm6879_vm0, %v82_v25, %v4870_v24 }
  0x82   :  { %138 = vst [vmem:[#allocation4 + $0x10] sm:$0xff] %v110_v26  ;;  %139 = vst [vmem:[#allocation4 + $0x18] sm:$0xff] %v111_v27  ;;  %761 = vrot.lane.b32.xlu1 %v4685_v0, %s4600_s29  ;;  %745 = vrot.lane.b32.xlu0 %v4690_v1, %s4600_s29 }
  0x84   :  { %v4879_v28 = vpop.permute.xlu1 %99  ;;  %v98_v29 = vpop.permute.xlu0 %97 }
  0x85   :  { %v117_v30 = vsel %vm6879_vm0, %v96_v14, %v98_v29  ;;  %v118_v31 = vsel %vm6879_vm0, %v98_v29, %v4879_v28 }
  0x86   :  { %145 = vst [vmem:[#allocation4 + $0x48] sm:$0xff] %v117_v30  ;;  %146 = vst [vmem:[#allocation4 + $0x50] sm:$0xff] %v118_v31  ;;  %753 = vrot.lane.b32.xlu1 %v4823_v10, %s4600_s29  ;;  %751 = vrot.lane.b32.xlu0 %v4712_v4, %s4600_s29  ;;  %v4284_v32 = vpack.c.bf16 %v118_v31, %v111_v27  ;;  %v4286_v33 = vpack.c.bf16 %v117_v30, %v110_v26  ;;  %v4982_v30 = vld [vmem:[%s6814_s0 + $0x80] sm:$0xff]  ;;  %v4987_v31 = vld [vmem:[%s6814_s0 + $0x38] sm:$0xff] }
  0x88   :  { %v187_v34 = vpop.permute.xlu1 %186  ;;  %v185_v35 = vpop.permute.xlu0 %184  ;;  %4285 = vmatprep.subr.bf16.mxu1 %v4284_v32 }
  0x89   :  { %v216_v36 = vsel %vm214_vm1, %v185_v35, %v187_v34  ;;  %4287 = vmatpush1.bf16.msra.mxu1 %v4286_v33 }
  0x8a   :  { %244 = vst [vmem:[#allocation4 + $0x78] sm:$0xff] %v216_v36  ;;  %769 = vrot.lane.b32.xlu1 %v4832_v11, %s4600_s29  ;;  %767 = vrot.lane.b32.xlu0 %v4723_v6, %s4600_s29 }
  0x8c   :  { %v203_v37 = vpop.permute.xlu1 %202  ;;  %v201_v38 = vpop.permute.xlu0 %200 }
  0x8d   :  { %v223_v39 = vsel %vm214_vm1, %v201_v38, %v203_v37 }
  0x8e   :  { %251 = vst [vmem:[#allocation4 + $0xb0] sm:$0xff] %v223_v39  ;;  %856 = vrot.lane.b32.xlu1 %v4717_v5, %s4601_s30  ;;  %854 = vrot.lane.b32.xlu0 %v4704_v3, %s4601_s30  ;;  %v4252_v40 = vpack.c.bf16 %v223_v39, %v216_v36 }
  0x90   :  { %v199_v41 = vpop.permute.xlu1 %198  ;;  %v183_v42 = vpop.permute.xlu0 %182  ;;  %4253 = vmatprep.subr.bf16.mxu0 %v4252_v40 }
  0x91   :  { %v222_v43 = vsel %vm214_vm1, %v199_v41, %v201_v38  ;;  %v215_v44 = vsel %vm214_vm1, %v183_v42, %v185_v35 }
  0x92   :  { %250 = vst [vmem:[#allocation4 + $0xa8] sm:$0xff] %v222_v43  ;;  %243 = vst [vmem:[#allocation4 + $0x70] sm:$0xff] %v215_v44  ;;  %872 = vrot.lane.b32.xlu1 %v4728_v7, %s4601_s30  ;;  %870 = vrot.lane.b32.xlu0 %v4695_v2, %s4601_s30  ;;  %v4254_v46 = vpack.c.bf16 %v222_v43, %v215_v44  ;;  %v4264_v43 = vpack.c.bf16 %v4695_v2, %v4704_v3 }
  0x94   :  { %v4913_v48 = vpop.permute.xlu1 %190  ;;  %v189_v49 = vpop.permute.xlu0 %188  ;;  %4255 = vmatpush1.bf16.msra.mxu0 %v4254_v46 }
  0x95   :  { %v217_v50 = vsel %vm214_vm1, %v187_v34, %v189_v49  ;;  %v218_v51 = vsel %vm214_vm1, %v189_v49, %v4913_v48 }
  0x96   :  { %245 = vst [vmem:[#allocation4 + $0x80] sm:$0xff] %v217_v50  ;;  %246 = vst [vmem:[#allocation4 + $0x88] sm:$0xff] %v218_v51  ;;  %868 = vrot.lane.b32.xlu1 %v4685_v0, %s4601_s30  ;;  %852 = vrot.lane.b32.xlu0 %v4690_v1, %s4601_s30 }
  0x98   :  { %v4931_v53 = vpop.permute.xlu1 %206  ;;  %v205_v54 = vpop.permute.xlu0 %204 }
  0x99   :  { %v224_v55 = vsel %vm214_vm1, %v203_v37, %v205_v54  ;;  %v225_v56 = vsel %vm214_vm1, %v205_v54, %v4931_v53 }
  0x9a   :  { %252 = vst [vmem:[#allocation4 + $0xb8] sm:$0xff] %v224_v55  ;;  %253 = vst [vmem:[#allocation4 + $0xc0] sm:$0xff] %v225_v56  ;;  %87 = vrot.lane.b32.xlu1 %v4929_v52, %s4594_s23  ;;  %85 = vrot.lane.b32.xlu0 %v4823_v10, %s4594_s23  ;;  %v4288_v57 = vpack.c.bf16 %v225_v56, %v218_v51  ;;  %v4290_v58 = vpack.c.bf16 %v224_v55, %v217_v50 }
  0x9b   :  { %v4266_v50 = vpack.c.bf16 %v4685_v0, %v4690_v1 }
  0x9c   :  { %v294_v60 = vpop.permute.xlu1 %293  ;;  %v292_v61 = vpop.permute.xlu0 %291  ;;  %4289 = vmatprep.subr.bf16.mxu1 %v4288_v57  ;;  %v4300_v57 = vpack.c.bf16 %v4723_v6, %v4712_v4 }
  0x9d   :  { %v323_v62 = vsel %vm6882_vm3, %v292_v61, %v294_v60  ;;  %4291 = vmatpush1.bf16.msra.mxu1 %v4290_v58 }
  0x9e   :  { %351 = vst [vmem:[#allocation4 + $0xe8] sm:$0xff] %v323_v62  ;;  %103 = vrot.lane.b32.xlu1 %v4943_v59, %s4594_s23  ;;  %101 = vrot.lane.b32.xlu0 %v4832_v11, %s4594_s23 }
  0xa0   :  { %v310_v63 = vpop.permute.xlu1 %309  ;;  %v308_v8 = vpop.permute.xlu0 %307 }
  0xa1   :  { %v330_v9 = vsel %vm6882_vm3, %v308_v8, %v310_v63 }
  0xa2   :  { %358 = vst [vmem:[#allocation4 + $0x120] sm:$0xff] %v330_v9  ;;  %860 = vrot.lane.b32.xlu1 %v4823_v10, %s4601_s30  ;;  %858 = vrot.lane.b32.xlu0 %v4712_v4, %s4601_s30  ;;  %v4256_v12 = vpack.c.bf16 %v330_v9, %v323_v62  ;;  %v4302_v62 = vpack.c.bf16 %v4728_v7, %v4717_v5  ;;  %v5053_v5 = vld [vmem:[%s6814_s0 + $0x28] sm:$0xff] }
  0xa3   :  { %489 = vst [vmem:[#allocation4 + $0x1e0] sm:$0xff] %v5053_v5 }
  0xa4   :  { %v306_v13 = vpop.permute.xlu1 %305  ;;  %v290_v14 = vpop.permute.xlu0 %289  ;;  %4257 = vmatprep.subr.bf16.mxu0 %v4256_v12 }
  0xa5   :  { %v329_v15 = vsel %vm6882_vm3, %v306_v13, %v308_v8  ;;  %v322_v16 = vsel %vm6882_vm3, %v290_v14, %v292_v61 }
  0xa6   :  { %357 = vst [vmem:[#allocation4 + $0x118] sm:$0xff] %v329_v15  ;;  %350 = vst [vmem:[#allocation4 + $0xe0] sm:$0xff] %v322_v16  ;;  %876 = vrot.lane.b32.xlu1 %v4832_v11, %s4601_s30  ;;  %874 = vrot.lane.b32.xlu0 %v4723_v6, %s4601_s30  ;;  %v4258_v17 = vpack.c.bf16 %v329_v15, %v322_v16  ;;  %v5058_v6 = vld [vmem:[%s6814_s0 + $0x70] sm:$0xff] }
  0xa7   :  { %496 = vst [vmem:[#allocation4 + $0x218] sm:$0xff] %v5058_v6  ;;  %v4338_v7 = vpack.c.bf16 %v5058_v6, %v5053_v5 }
  0xa8   :  { %v4961_v18 = vpop.permute.xlu1 %297  ;;  %v296_v19 = vpop.permute.xlu0 %295  ;;  %4259 = vmatpush1.bf16.msra.mxu0 %v4258_v17 }
  0xa9   :  { %v324_v20 = vsel %vm6882_vm3, %v294_v60, %v296_v19  ;;  %v325_v21 = vsel %vm6882_vm3, %v296_v19, %v4961_v18 }
  0xaa   :  { %352 = vst [vmem:[#allocation4 + $0xf0] sm:$0xff] %v324_v20  ;;  %353 = vst [vmem:[#allocation4 + $0xf8] sm:$0xff] %v325_v21  ;;  %194 = vrot.lane.b32.xlu1 %v4929_v52, %s4595_s19  ;;  %192 = vrot.lane.b32.xlu0 %v4823_v10, %s4595_s19 }
  0xac   :  { %v4970_v22 = vpop.permute.xlu1 %313  ;;  %v312_v23 = vpop.permute.xlu0 %311 }
  0xad   :  { %v331_v25 = vsel %vm6882_vm3, %v310_v63, %v312_v23  ;;  %v332_v26 = vsel %vm6882_vm3, %v312_v23, %v4970_v22  ;;  %v5035_v63 = vld [vmem:[%s6814_s0 + $0x30] sm:$0xff] }
  0xae   :  { %359 = vst [vmem:[#allocation4 + $0x128] sm:$0xff] %v331_v25  ;;  %360 = vst [vmem:[#allocation4 + $0x130] sm:$0xff] %v332_v26  ;;  %210 = vrot.lane.b32.xlu1 %v4943_v59, %s4595_s19  ;;  %208 = vrot.lane.b32.xlu0 %v4832_v11, %s4595_s19  ;;  %v4292_v27 = vpack.c.bf16 %v332_v26, %v325_v21  ;;  %v4294_v29 = vpack.c.bf16 %v331_v25, %v324_v20  ;;  %v5083_v25 = vld [vmem:[%s6814_s0 + $0x38] sm:$0xff]  ;;  %v5088_v26 = vld [vmem:[%s6814_s0 + $0x80] sm:$0xff] }
  0xaf   :  { %490 = vst [vmem:[#allocation4 + $0x1e8] sm:$0xff] %v5035_v63  ;;  %491 = vst [vmem:[#allocation4 + $0x1f0] sm:$0xff] %v5083_v25 }
  0xb0   :  { %v401_v32 = vpop.permute.xlu1 %400  ;;  %v399_v33 = vpop.permute.xlu0 %398  ;;  %4293 = vmatprep.subr.bf16.mxu1 %v4292_v27  ;;  %498 = vst [vmem:[#allocation4 + $0x228] sm:$0xff] %v5088_v26  ;;  %v4369_v27 = vpack.c.bf16 %v5088_v26, %v5083_v25 }
  0xb1   :  { %v430_v34 = vsel %vm6885_vm4, %v399_v33, %v401_v32  ;;  %4295 = vmatpush1.bf16.msra.mxu1 %v4294_v29 }
  0xb2   :  { %458 = vst [vmem:[#allocation4 + $0x158] sm:$0xff] %v430_v34  ;;  %105 = vrot.lane.b32.xlu1 %v4982_v30, %s4594_s23  ;;  %89 = vrot.lane.b32.xlu0 %v4987_v31, %s4594_s23 }
  0xb4   :  { %v417_v35 = vpop.permute.xlu1 %416  ;;  %v415_v36 = vpop.permute.xlu0 %414 }
  0xb5   :  { %v437_v37 = vsel %vm6885_vm4, %v415_v36, %v417_v35 }
  0xb6   :  { %465 = vst [vmem:[#allocation4 + $0x190] sm:$0xff] %v437_v37  ;;  %301 = vrot.lane.b32.xlu1 %v4929_v52, %s4596_s20  ;;  %299 = vrot.lane.b32.xlu0 %v4823_v10, %s4596_s20  ;;  %v4260_v38 = vpack.c.bf16 %v437_v37, %v430_v34 }
  0xb8   :  { %v413_v39 = vpop.permute.xlu1 %412  ;;  %v397_v40 = vpop.permute.xlu0 %396  ;;  %4261 = vmatprep.subr.bf16.mxu0 %v4260_v38 }
  0xb9   :  { %v436_v41 = vsel %vm6885_vm4, %v413_v39, %v415_v36  ;;  %v429_v42 = vsel %vm6885_vm4, %v397_v40, %v399_v33 }
  0xba   :  { %464 = vst [vmem:[#allocation4 + $0x188] sm:$0xff] %v436_v41  ;;  %457 = vst [vmem:[#allocation4 + $0x150] sm:$0xff] %v429_v42  ;;  %317 = vrot.lane.b32.xlu1 %v4943_v59, %s4596_s20  ;;  %315 = vrot.lane.b32.xlu0 %v4832_v11, %s4596_s20  ;;  %v4262_v44 = vpack.c.bf16 %v436_v41, %v429_v42 }
  0xbc   :  { %v5007_v46 = vpop.permute.xlu1 %404  ;;  %v403_v49 = vpop.permute.xlu0 %402  ;;  %4263 = vmatpush1.bf16.msra.mxu0 %v4262_v44  ;;  %v514_v44 = vld [vmem:[%s6814_s0 + $0x88] sm:$0xff] }
  0xbd   :  { %v431_v51 = vsel %vm6885_vm4, %v401_v32, %v403_v49  ;;  %v432_v2 = vsel %vm6885_vm4, %v403_v49, %v5007_v46  ;;  %4265 = vmatprep.subr.bf16.mxu0 %v4264_v43  ;;  %v506_v49 = vld [vmem:[%s6814_s0 + $0x40] sm:$0xff] }
  0xbe   :  { %459 = vst [vmem:[#allocation4 + $0x160] sm:$0xff] %v431_v51  ;;  %460 = vst [vmem:[#allocation4 + $0x168] sm:$0xff] %v432_v2  ;;  %212 = vrot.lane.b32.xlu1 %v4982_v30, %s4595_s19  ;;  %196 = vrot.lane.b32.xlu0 %v4987_v31, %s4595_s19 }
  0xc0   :  { %v5018_v3 = vpop.permute.xlu1 %420  ;;  %v419_v54 = vpop.permute.xlu0 %418  ;;  %4267 = vmatpush1.bf16.msra.mxu0 %v4266_v50 }
  0xc1   :  { %v438_v0 = vsel %vm6885_vm4, %v417_v35, %v419_v54  ;;  %v439_v1 = vsel %vm6885_vm4, %v419_v54, %v5018_v3 }
  0xc2   :  { %466 = vst [vmem:[#allocation4 + $0x198] sm:$0xff] %v438_v0  ;;  %467 = vst [vmem:[#allocation4 + $0x1a0] sm:$0xff] %v439_v1  ;;  %408 = vrot.lane.b32.xlu1 %v4929_v52, %s4597_s21  ;;  %406 = vrot.lane.b32.xlu0 %v4823_v10, %s4597_s21  ;;  %v4296_v55 = vpack.c.bf16 %v439_v1, %v432_v2  ;;  %v4298_v56 = vpack.c.bf16 %v438_v0, %v431_v51  ;;  %v5040_v10 = vld [vmem:[%s6814_s0 + $0x78] sm:$0xff]  ;;  %s4613_s0 = smov 39  }
  0xc3   :  { %497 = vst [vmem:[#allocation4 + $0x220] sm:$0xff] %v5040_v10  ;;  %v4336_v4 = vpack.c.bf16 %v5040_v10, %v5035_v63 }
  0xc4   :  { %v536_v58 = vpop.permute.xlu1 %535  ;;  %v534_v60 = vpop.permute.xlu0 %533  ;;  %4297 = vmatprep.subr.bf16.mxu1 %v4296_v55 }
  0xc5   :  { %v565_v61 = vsel %vm6884_vm5, %v534_v60, %v536_v58  ;;  %4299 = vmatpush1.bf16.msra.mxu1 %v4298_v56 }
  0xc6   :  { %593 = vst [vmem:[#allocation4 + $0x238] sm:$0xff] %v565_v61  ;;  %424 = vrot.lane.b32.xlu1 %v4943_v59, %s4597_s21  ;;  %422 = vrot.lane.b32.xlu0 %v4832_v11, %s4597_s21 }
  0xc7   :  { %4301 = vmatprep.subr.bf16.mxu1 %v4300_v57 }
  0xc8   :  { %v552_v11 = vpop.permute.xlu1 %551  ;;  %v550_v8 = vpop.permute.xlu0 %549 }
  0xc9   :  { %v572_v9 = vsel %vm6884_vm5, %v550_v8, %v552_v11  ;;  %4303 = vmatpush1.bf16.msra.mxu1 %v4302_v62 }
  0xca   :  { %600 = vst [vmem:[#allocation4 + $0x270] sm:$0xff] %v572_v9  ;;  %319 = vrot.lane.b32.xlu1 %v4982_v30, %s4596_s20  ;;  %303 = vrot.lane.b32.xlu0 %v4987_v31, %s4596_s20  ;;  %v4268_v12 = vpack.c.bf16 %v572_v9, %v565_v61 }
  0xcc   :  { %v548_v13 = vpop.permute.xlu1 %547  ;;  %v532_v14 = vpop.permute.xlu0 %531  ;;  %4269 = vmatprep.subr.bf16.mxu0 %v4268_v12 }
  0xcd   :  { %v571_v15 = vsel %vm6884_vm5, %v548_v13, %v550_v8  ;;  %v564_v16 = vsel %vm6884_vm5, %v532_v14, %v534_v60 }
  0xce   :  { %599 = vst [vmem:[#allocation4 + $0x268] sm:$0xff] %v571_v15  ;;  %592 = vst [vmem:[#allocation4 + $0x230] sm:$0xff] %v564_v16  ;;  %426 = vrot.lane.b32.xlu1 %v4982_v30, %s4597_s21  ;;  %410 = vrot.lane.b32.xlu0 %v4987_v31, %s4597_s21  ;;  %v4270_v17 = vpack.c.bf16 %v571_v15, %v564_v16 }
  0xd0   :  { %v5075_v19 = vpop.permute.xlu1 %539  ;;  %v538_v20 = vpop.permute.xlu0 %537  ;;  %4271 = vmatpush1.bf16.msra.mxu0 %v4270_v17 }
  0xd1   :  { %v566_v21 = vsel %vm6884_vm5, %v536_v58, %v538_v20  ;;  %v567_v23 = vsel %vm6884_vm5, %v538_v20, %v5075_v19 }
  0xd2   :  { %594 = vst [vmem:[#allocation4 + $0x240] sm:$0xff] %v566_v21  ;;  %595 = vst [vmem:[#allocation4 + $0x248] sm:$0xff] %v567_v23  ;;  %543 = vrot.lane.b32.xlu1 %v4987_v31, %s4598_s22  ;;  %541 = vrot.lane.b32.xlu0 %v4929_v52, %s4598_s22 }
  0xd4   :  { %v5098_v29 = vpop.permute.xlu1 %555  ;;  %v554_v32 = vpop.permute.xlu0 %553 }
  0xd5   :  { %v573_v33 = vsel %vm6884_vm5, %v552_v11, %v554_v32  ;;  %v574_v34 = vsel %vm6884_vm5, %v554_v32, %v5098_v29 }
  0xd6   :  { %601 = vst [vmem:[#allocation4 + $0x278] sm:$0xff] %v573_v33  ;;  %602 = vst [vmem:[#allocation4 + $0x280] sm:$0xff] %v574_v34  ;;  %559 = vrot.lane.b32.xlu1 %v4982_v30, %s4598_s22  ;;  %557 = vrot.lane.b32.xlu0 %v4943_v59, %s4598_s22  ;;  %v4304_v35 = vpack.c.bf16 %v574_v34, %v567_v23  ;;  %v4306_v36 = vpack.c.bf16 %v573_v33, %v566_v21 }
  0xd8   :  { %v643_v37 = vpop.permute.xlu1 %642  ;;  %v641_v38 = vpop.permute.xlu0 %640  ;;  %4305 = vmatprep.subr.bf16.mxu1 %v4304_v35 }
  0xd9   :  { %v672_v39 = vsel %vm670_vm6, %v641_v38, %v643_v37  ;;  %4307 = vmatpush1.bf16.msra.mxu1 %v4306_v36 }
  0xda   :  { %700 = vst [vmem:[#allocation4 + $0x2a8] sm:$0xff] %v672_v39  ;;  %650 = vrot.lane.b32.xlu1 %v4987_v31, %s4599_s28  ;;  %648 = vrot.lane.b32.xlu0 %v4929_v52, %s4599_s28 }
  0xdc   :  { %v659_v40 = vpop.permute.xlu1 %658  ;;  %v657_v41 = vpop.permute.xlu0 %656 }
  0xdd   :  { %v679_v42 = vsel %vm670_vm6, %v657_v41, %v659_v40 }
  0xde   :  { %666 = vrot.lane.b32.xlu1 %v4982_v30, %s4599_s28  ;;  %664 = vrot.lane.b32.xlu0 %v4943_v59, %s4599_s28  ;;  %v4272_v43 = vpack.c.bf16 %v679_v42, %v672_v39 }
  0xe0   :  { %v655_v50 = vpop.permute.xlu1 %654  ;;  %v639_v51 = vpop.permute.xlu0 %638  ;;  %4273 = vmatprep.subr.bf16.mxu0 %v4272_v43 }
  0xe1   :  { %v678_v2 = vsel %vm670_vm6, %v655_v50, %v657_v41  ;;  %v671_v54 = vsel %vm670_vm6, %v639_v51, %v641_v38 }
  0xe2   :  { %699 = vst [vmem:[#allocation4 + $0x2a0] sm:$0xff] %v671_v54  ;;  %561 = vrot.lane.b32.xlu1 %v514_v44, %s4598_s22  ;;  %545 = vrot.lane.b32.xlu0 %v506_v49, %s4598_s22  ;;  %v4274_v0 = vpack.c.bf16 %v678_v2, %v671_v54 }
  0xe4   :  { %v5127_v1 = vpop.permute.xlu1 %646  ;;  %v645_v55 = vpop.permute.xlu0 %644  ;;  %4275 = vmatpush1.bf16.msra.mxu0 %v4274_v0 }
  0xe5   :  { %v673_v56 = vsel %vm670_vm6, %v643_v37, %v645_v55  ;;  %v674_v57 = vsel %vm670_vm6, %v645_v55, %v5127_v1 }
  0xe6   :  { %701 = vst [vmem:[#allocation4 + $0x2b0] sm:$0xff] %v673_v56  ;;  %702 = vst [vmem:[#allocation4 + $0x2b8] sm:$0xff] %v674_v57  ;;  %757 = vrot.lane.b32.xlu1 %v4987_v31, %s4600_s29  ;;  %755 = vrot.lane.b32.xlu0 %v4929_v52, %s4600_s29 }
  0xe8   :  { %v5136_v58 = vpop.permute.xlu1 %662  ;;  %v661_v60 = vpop.permute.xlu0 %660 }
  0xe9   :  { %v680_v61 = vsel %vm670_vm6, %v659_v40, %v661_v60  ;;  %v681_v62 = vsel %vm670_vm6, %v661_v60, %v5136_v58 }
  0xea   :  { %773 = vrot.lane.b32.xlu1 %v4982_v30, %s4600_s29  ;;  %771 = vrot.lane.b32.xlu0 %v4943_v59, %s4600_s29  ;;  %v4308_v11 = vpack.c.bf16 %v681_v62, %v674_v57  ;;  %v4310_v8 = vpack.c.bf16 %v680_v61, %v673_v56 }
  0xec   :  { %v750_v9 = vpop.permute.xlu1 %749  ;;  %v748_v12 = vpop.permute.xlu0 %747  ;;  %4309 = vmatprep.subr.bf16.mxu1 %v4308_v11 }
  0xed   :  { %v779_v13 = vsel %vm6883_vm7, %v748_v12, %v750_v9  ;;  %4311 = vmatpush1.bf16.msra.mxu1 %v4310_v8 }
  0xee   :  { %668 = vrot.lane.b32.xlu1 %v514_v44, %s4599_s28  ;;  %652 = vrot.lane.b32.xlu0 %v506_v49, %s4599_s28 }
  0xf0   :  { %v766_v14 = vpop.permute.xlu1 %765  ;;  %v764_v15 = vpop.permute.xlu0 %763 }
  0xf1   :  { %v786_v16 = vsel %vm6883_vm7, %v764_v15, %v766_v14 }
  0xf2   :  { %864 = vrot.lane.b32.xlu1 %v4987_v31, %s4601_s30  ;;  %862 = vrot.lane.b32.xlu0 %v4929_v52, %s4601_s30  ;;  %v4276_v17 = vpack.c.bf16 %v786_v16, %v779_v13 }
  0xf4   :  { %v762_v20 = vpop.permute.xlu1 %761  ;;  %v746_v21 = vpop.permute.xlu0 %745  ;;  %4277 = vmatprep.subr.bf16.mxu0 %v4276_v17 }
  0xf5   :  { %v785_v23 = vsel %vm6883_vm7, %v762_v20, %v764_v15  ;;  %v778_v32 = vsel %vm6883_vm7, %v746_v21, %v748_v12 }
  0xf6   :  { %880 = vrot.lane.b32.xlu1 %v4982_v30, %s4601_s30  ;;  %878 = vrot.lane.b32.xlu0 %v4943_v59, %s4601_s30  ;;  %v4278_v33 = vpack.c.bf16 %v785_v23, %v778_v32 }
  0xf8   :  { %v5159_v34 = vpop.permute.xlu1 %753  ;;  %v752_v31 = vpop.permute.xlu0 %751  ;;  %4279 = vmatpush1.bf16.msra.mxu0 %v4278_v33 }
  0xf9   :  { %v780_v52 = vsel %vm6883_vm7, %v750_v9, %v752_v31  ;;  %v781_v35 = vsel %vm6883_vm7, %v752_v31, %v5159_v34 }
  0xfa   :  { %775 = vrot.lane.b32.xlu1 %v514_v44, %s4600_s29  ;;  %759 = vrot.lane.b32.xlu0 %v506_v49, %s4600_s29 }
  0xfc   :  { %v5166_v36 = vpop.permute.xlu1 %769  ;;  %v768_v30 = vpop.permute.xlu0 %767 }
  0xfd   :  { %v787_v37 = vsel %vm6883_vm7, %v766_v14, %v768_v30  ;;  %v788_v59 = vsel %vm6883_vm7, %v768_v30, %v5166_v36  ;;  %v6828_v30 = vmov 0.0|0.0  }
  0xfe   :  { %882 = vrot.lane.b32.xlu1 %v514_v44, %s4601_s30  ;;  %866 = vrot.lane.b32.xlu0 %v506_v49, %s4601_s30  ;;  %v4312_v38 = vpack.c.bf16 %v788_v59, %v781_v35  ;;  %v4314_v39 = vpack.c.bf16 %v787_v37, %v780_v52 }
 0x100   :  { %v857_v40 = vpop.permute.xlu1 %856  ;;  %v855_v41 = vpop.permute.xlu0 %854  ;;  %4313 = vmatprep.subr.bf16.mxu1 %v4312_v38 }
 0x101   :  { %v886_v42 = vsel %vm6880_vm8, %v855_v41, %v857_v40  ;;  %4315 = vmatpush1.bf16.msra.mxu1 %v4314_v39 }
 0x104   :  { %v873_v43 = vpop.permute.xlu1 %872  ;;  %v871_v50 = vpop.permute.xlu0 %870 }
 0x105   :  { %v893_v51 = vsel %vm6880_vm8, %v871_v50, %v873_v43 }
 0x106   :  { %v4280_v2 = vpack.c.bf16 %v893_v51, %v886_v42 }
 0x108   :  { %v869_v54 = vpop.permute.xlu1 %868  ;;  %v853_v0 = vpop.permute.xlu0 %852  ;;  %4281 = vmatprep.subr.bf16.mxu0 %v4280_v2 }
 0x109   :  { %v892_v44 = vsel %vm6880_vm8, %v869_v54, %v871_v50  ;;  %v885_v49 = vsel %vm6880_vm8, %v853_v0, %v855_v41 }
 0x10a   :  { %v4282_v55 = vpack.c.bf16 %v892_v44, %v885_v49 }
 0x10c   :  { %v88_v56 = vpop.permute.xlu1 %87  ;;  %v86_v57 = vpop.permute.xlu0 %85  ;;  %4283 = vmatpush1.bf16.msra.mxu0 %v4282_v55 }
 0x10d   :  { %v112_v60 = vsel %vm6879_vm0, %v4870_v24, %v86_v57  ;;  %v113_v61 = vsel %vm6879_vm0, %v86_v57, %v88_v56 }
 0x10e   :  { %140 = vst [vmem:[#allocation4 + $0x20] sm:$0xff] %v112_v60  ;;  %141 = vst [vmem:[#allocation4 + $0x28] sm:$0xff] %v113_v61 }
 0x10f   :  { %1124 = vmatmul.mubr.f32.vlgmr.msra.gmra.mrb[0].mxu0 %v4903_v45 }
 0x110   :  { %v104_v62 = vpop.permute.xlu1 %103  ;;  %v102_v11 = vpop.permute.xlu0 %101  ;;  %4152 = vmatprep.mubr.msk.f32.mxu0 %vm1056_vm2, %v4911_v47 }
 0x111   :  { %v119_v8 = vsel %vm6879_vm0, %v4879_v28, %v102_v11  ;;  %v120_v9 = vsel %vm6879_vm0, %v102_v11, %v104_v62 }
 0x112   :  { %147 = vst [vmem:[#allocation4 + $0x58] sm:$0xff] %v119_v8  ;;  %148 = vst [vmem:[#allocation4 + $0x60] sm:$0xff] %v120_v9  ;;  %v4320_v12 = vpack.c.bf16 %v120_v9, %v113_v61  ;;  %v4322_v24 = vpack.c.bf16 %v119_v8, %v112_v60 }
 0x114   :  { %v5186_v13 = vpop.permute.xlu1 %860  ;;  %v859_v14 = vpop.permute.xlu0 %858  ;;  %4321 = vmatprep.subr.bf16.mxu0 %v4320_v12 }
 0x115   :  { %v887_v15 = vsel %vm6880_vm8, %v857_v40, %v859_v14  ;;  %v888_v16 = vsel %vm6880_vm8, %v859_v14, %v5186_v13  ;;  %4323 = vmatpush1.bf16.msra.mxu0 %v4322_v24 }
 0x118   :  { %v5191_v17 = vpop.permute.xlu1 %876  ;;  %v875_v20 = vpop.permute.xlu0 %874 }
 0x119   :  { %v894_v28 = vsel %vm6880_vm8, %v873_v43, %v875_v20  ;;  %v895_v21 = vsel %vm6880_vm8, %v875_v20, %v5191_v17 }
 0x11a   :  { %v4316_v23 = vpack.c.bf16 %v895_v21, %v888_v16  ;;  %v4318_v32 = vpack.c.bf16 %v894_v28, %v887_v15 }
 0x11c   :  { %v195_v33 = vpop.permute.xlu1 %194  ;;  %v193_v31 = vpop.permute.xlu0 %192  ;;  %4317 = vmatprep.subr.bf16.mxu1 %v4316_v23 }
 0x11d   :  { %v219_v52 = vsel %vm214_vm1, %v4913_v48, %v193_v31  ;;  %v220_v35 = vsel %vm214_vm1, %v193_v31, %v195_v33  ;;  %4319 = vmatpush1.bf16.msra.mxu1 %v4318_v32 }
 0x11e   :  { %247 = vst [vmem:[#allocation4 + $0x90] sm:$0xff] %v219_v52  ;;  %248 = vst [vmem:[#allocation4 + $0x98] sm:$0xff] %v220_v35  ;;  %4356 = vmatprep.subr.bf16.mxu1 %v6828_v30 }
 0x120   :  { %v211_v37 = vpop.permute.xlu1 %210  ;;  %v209_v59 = vpop.permute.xlu0 %208  ;;  %1195 = vmatmul.mubr.f32.vlgmr.msra.gmra.mrb[0].mxu1 %v4903_v45 }
 0x121   :  { %v226_v38 = vsel %vm214_vm1, %v4931_v53, %v209_v59  ;;  %v227_v39 = vsel %vm214_vm1, %v209_v59, %v211_v37  ;;  %4153 = vmatprep.mubr.msk.f32.mxu1 %vm1056_vm2, %v4911_v47  ;;  %vm2521_vm2 = vcmask 728064  }
 0x122   :  { %254 = vst [vmem:[#allocation4 + $0xc8] sm:$0xff] %v226_v38  ;;  %255 = vst [vmem:[#allocation4 + $0xd0] sm:$0xff] %v227_v39  ;;  %v4324_v48 = vpack.c.bf16 %v227_v39, %v220_v35  ;;  %v4326_v40 = vpack.c.bf16 %v226_v38, %v219_v52 }
 0x124   :  { %v106_v41 = vpop.permute.xlu1 %105  ;;  %v90_v42 = vpop.permute.xlu0 %89  ;;  %4325 = vmatprep.subr.bf16.mxu0 %v4324_v48 }
 0x125   :  { %v121_v43 = vsel %vm6879_vm0, %v104_v62, %v106_v41  ;;  %v114_v50 = vsel %vm6879_vm0, %v88_v56, %v90_v42  ;;  %4327 = vmatpush1.bf16.msra.mxu0 %v4326_v40 }
 0x126   :  { %149 = vst [vmem:[#allocation4 + $0x68] sm:$0xff] %v121_v43  ;;  %142 = vst [vmem:[#allocation4 + $0x30] sm:$0xff] %v114_v50  ;;  %v4357_v45 = vpack.c.bf16 %v121_v43, %v114_v50 }
 0x128   :  { %v302_v53 = vpop.permute.xlu1 %301  ;;  %v300_v51 = vpop.permute.xlu0 %299  ;;  %4358 = vmatpush1.bf16.msra.mxu1 %v4357_v45 }
 0x129   :  { %v326_v47 = vsel %vm6882_vm3, %v4961_v18, %v300_v51  ;;  %v327_v2 = vsel %vm6882_vm3, %v300_v51, %v302_v53  ;;  %4359 = vmatprep.subr.bf16.mxu1 %v6828_v30 }
 0x12a   :  { %354 = vst [vmem:[#allocation4 + $0x100] sm:$0xff] %v326_v47  ;;  %355 = vst [vmem:[#allocation4 + $0x108] sm:$0xff] %v327_v2 }
 0x12c   :  { %v318_v54 = vpop.permute.xlu1 %317  ;;  %v316_v0 = vpop.permute.xlu0 %315 }
 0x12d   :  { %v333_v44 = vsel %vm6882_vm3, %v4970_v22, %v316_v0  ;;  %v334_v49 = vsel %vm6882_vm3, %v316_v0, %v318_v54 }
 0x12e   :  { %361 = vst [vmem:[#allocation4 + $0x138] sm:$0xff] %v333_v44  ;;  %362 = vst [vmem:[#allocation4 + $0x140] sm:$0xff] %v334_v49  ;;  %v4328_v55 = vpack.c.bf16 %v334_v49, %v327_v2  ;;  %v4330_v56 = vpack.c.bf16 %v333_v44, %v326_v47 }
 0x130   :  { %v213_v57 = vpop.permute.xlu1 %212  ;;  %v197_v60 = vpop.permute.xlu0 %196  ;;  %4329 = vmatprep.subr.bf16.mxu0 %v4328_v55 }
 0x131   :  { %v228_v18 = vsel %vm214_vm1, %v211_v37, %v213_v57  ;;  %v221_v61 = vsel %vm214_vm1, %v195_v33, %v197_v60  ;;  %4331 = vmatpush1.bf16.msra.mxu0 %v4330_v56 }
 0x132   :  { %256 = vst [vmem:[#allocation4 + $0xd8] sm:$0xff] %v228_v18  ;;  %249 = vst [vmem:[#allocation4 + $0xa0] sm:$0xff] %v221_v61  ;;  %v4360_v62 = vpack.c.bf16 %v228_v18, %v221_v61 }
 0x134   :  { %v409_v11 = vpop.permute.xlu1 %408  ;;  %v407_v8 = vpop.permute.xlu0 %406  ;;  %4361 = vmatpush1.bf16.msra.mxu1 %v4360_v62 }
 0x135   :  { %v433_v22 = vsel %vm6885_vm4, %v5007_v46, %v407_v8  ;;  %v434_v9 = vsel %vm6885_vm4, %v407_v8, %v409_v11  ;;  %4362 = vmatprep.subr.bf16.mxu1 %v6828_v30 }
 0x136   :  { %461 = vst [vmem:[#allocation4 + $0x170] sm:$0xff] %v433_v22  ;;  %462 = vst [vmem:[#allocation4 + $0x178] sm:$0xff] %v434_v9 }
 0x138   :  { %v425_v12 = vpop.permute.xlu1 %424  ;;  %v423_v24 = vpop.permute.xlu0 %422 }
 0x139   :  { %v440_v14 = vsel %vm6885_vm4, %v5018_v3, %v423_v24  ;;  %v441_v15 = vsel %vm6885_vm4, %v423_v24, %v425_v12 }
 0x13a   :  { %468 = vst [vmem:[#allocation4 + $0x1a8] sm:$0xff] %v440_v14  ;;  %469 = vst [vmem:[#allocation4 + $0x1b0] sm:$0xff] %v441_v15  ;;  %v4332_v16 = vpack.c.bf16 %v441_v15, %v434_v9  ;;  %v4334_v20 = vpack.c.bf16 %v440_v14, %v433_v22 }
 0x13c   :  { %v320_v28 = vpop.permute.xlu1 %319  ;;  %v304_v21 = vpop.permute.xlu0 %303  ;;  %4333 = vmatprep.subr.bf16.mxu0 %v4332_v16 }
 0x13d   :  { %v335_v46 = vsel %vm6882_vm3, %v318_v54, %v320_v28  ;;  %v328_v23 = vsel %vm6882_vm3, %v302_v53, %v304_v21  ;;  %4335 = vmatpush1.bf16.msra.mxu0 %v4334_v20 }
 0x13e   :  { %363 = vst [vmem:[#allocation4 + $0x148] sm:$0xff] %v335_v46  ;;  %356 = vst [vmem:[#allocation4 + $0x110] sm:$0xff] %v328_v23  ;;  %v4363_v32 = vpack.c.bf16 %v335_v46, %v328_v23  ;;  %4337 = vmatprep.subr.bf16.mxu0 %v4336_v4 }
 0x140   :  { %v427_v3 = vpop.permute.xlu1 %426  ;;  %v411_v33 = vpop.permute.xlu0 %410  ;;  %4364 = vmatpush1.bf16.msra.mxu1 %v4363_v32 }
 0x141   :  { %v442_v31 = vsel %vm6885_vm4, %v425_v12, %v427_v3  ;;  %v435_v52 = vsel %vm6885_vm4, %v409_v11, %v411_v33  ;;  %4365 = vmatprep.subr.bf16.mxu1 %v6828_v30  ;;  %4339 = vmatpush1.bf16.msra.mxu0 %v4338_v7  ;;  %v4587_v3 = vld [vmem:[%s6815_s2] sm:$0xff]  ;;  %s4615_s2 = smov 22  }
 0x142   :  { %470 = vst [vmem:[#allocation4 + $0x1b8] sm:$0xff] %v442_v31  ;;  %463 = vst [vmem:[#allocation4 + $0x180] sm:$0xff] %v435_v52  ;;  %v4366_v35 = vpack.c.bf16 %v442_v31, %v435_v52 }
 0x144   :  { %v544_v37 = vpop.permute.xlu1 %543  ;;  %v542_v59 = vpop.permute.xlu0 %541  ;;  %4367 = vmatpush1.bf16.msra.mxu1 %v4366_v35 }
 0x145   :  { %v568_v63 = vsel %vm6884_vm5, %v5075_v19, %v542_v59  ;;  %v569_v10 = vsel %vm6884_vm5, %v542_v59, %v544_v37  ;;  %4368 = vmatprep.subr.bf16.mxu1 %v6828_v30 }
 0x146   :  { %596 = vst [vmem:[#allocation4 + $0x250] sm:$0xff] %v568_v63  ;;  %597 = vst [vmem:[#allocation4 + $0x258] sm:$0xff] %v569_v10 }
 0x148   :  { %v560_v4 = vpop.permute.xlu1 %559  ;;  %v558_v38 = vpop.permute.xlu0 %557  ;;  %4370 = vmatpush1.bf16.msra.mxu1 %v4369_v27 }
 0x149   :  { %v575_v5 = vsel %vm6884_vm5, %v5098_v29, %v558_v38  ;;  %v576_v6 = vsel %vm6884_vm5, %v558_v38, %v560_v4  ;;  %4371 = vmatprep.subr.bf16.mxu1 %v6828_v30 }
 0x14a   :  { %603 = vst [vmem:[#allocation4 + $0x288] sm:$0xff] %v575_v5  ;;  %604 = vst [vmem:[#allocation4 + $0x290] sm:$0xff] %v576_v6  ;;  %v4340_v7 = vpack.c.bf16 %v576_v6, %v569_v10  ;;  %v4342_v19 = vpack.c.bf16 %v575_v5, %v568_v63  ;;  %v1343_v63 = vlaneseq  ;;  %v38_v5 = vld [vmem:[%s6816_s1] sm:$0xff]  ;;  %s4617_s1 = smov 18  }
 0x14c   :  { %v651_v39 = vpop.permute.xlu1 %650  ;;  %v649_v48 = vpop.permute.xlu0 %648  ;;  %4341 = vmatprep.subr.bf16.mxu0 %v4340_v7  ;;  %v1344_v10 = vshrl.u32 %v1343_v63, 7 }
 0x14d   :  { %v675_v40 = vsel %vm670_vm6, %v5127_v1, %v649_v48  ;;  %v676_v25 = vsel %vm670_vm6, %v649_v48, %v651_v39  ;;  %4343 = vmatpush1.bf16.msra.mxu0 %v4342_v19 }
 0x14e   :  { %703 = vst [vmem:[#allocation4 + $0x2c0] sm:$0xff] %v675_v40  ;;  %704 = vst [vmem:[#allocation4 + $0x2c8] sm:$0xff] %v676_v25  ;;  %v1349_v38 = vsub.s32 1, %v1344_v10  ;;  %v1353_v19 = vsub.s32 2, %v1344_v10 }
 0x150   :  { %v667_v26 = vpop.permute.xlu1 %666  ;;  %v665_v27 = vpop.permute.xlu0 %664  ;;  %v5283_v7 = vrot.slane %v38_v5, %v1349_v38 }
 0x151   :  { %v682_v29 = vsel %vm670_vm6, %v5136_v58, %v665_v27  ;;  %v683_v41 = vsel %vm670_vm6, %v665_v27, %v667_v26 }
 0x152   :  { %v4344_v42 = vpack.c.bf16 %v683_v41, %v676_v25  ;;  %v4346_v43 = vpack.c.bf16 %v682_v29, %v675_v40  ;;  %6887 = vst [vmem:[#allocation6_spill] sm:$0xff] %v5283_v7  ;;  %v5291_v40 = vrot.slane %v38_v5, %v1353_v19  ;;  %v1357_v25 = vsub.s32 3, %v1344_v10 }
 0x154   :  { %v562_v50 = vpop.permute.xlu1 %561  ;;  %v546_v45 = vpop.permute.xlu0 %545  ;;  %4345 = vmatprep.subr.bf16.mxu0 %v4344_v42  ;;  %6888 = vst [vmem:[#allocation7_spill] sm:$0xff] %v5291_v40  ;;  %v5300_v41 = vrot.slane %v38_v5, %v1357_v25  ;;  %v1429_v25 = vld [vmem:[%s6817_s3] sm:$0xf]  ;;  %s4605_s3 = smov 126  }
 0x155   :  { %v577_v53 = vsel %vm6884_vm5, %v560_v4, %v562_v50  ;;  %v570_v1 = vsel %vm6884_vm5, %v544_v37, %v546_v45  ;;  %4347 = vmatpush1.bf16.msra.mxu0 %v4346_v43  ;;  %v1345_v4 = vsub.s32 0, %v1344_v10  ;;  %v1361_v50 = vsub.s32 4, %v1344_v10 }
 0x156   :  { %605 = vst [vmem:[#allocation4 + $0x298] sm:$0xff] %v577_v53  ;;  %598 = vst [vmem:[#allocation4 + $0x260] sm:$0xff] %v570_v1  ;;  %v4372_v51 = vpack.c.bf16 %v577_v53, %v570_v1  ;;  %v1365_v45 = vsub.s32 5, %v1344_v10 }
 0x157   :  { %v5281_v6 = vrot.slane %v38_v5, %v1345_v4  ;;  %6889 = vst [vmem:[#allocation8_spill] sm:$0xff] %v5300_v41 }
 0x158   :  { %v758_v47 = vpop.permute.xlu1 %757  ;;  %v756_v2 = vpop.permute.xlu0 %755  ;;  %4373 = vmatpush1.bf16.msra.mxu1 %v4372_v51 }
 0x159   :  { %v782_v58 = vsel %vm6883_vm7, %v5159_v34, %v756_v2  ;;  %v783_v54 = vsel %vm6883_vm7, %v756_v2, %v758_v47  ;;  %4374 = vmatprep.subr.bf16.mxu1 %v6828_v30  ;;  %6886 = vst [vmem:[#allocation5_spill] sm:$0xff] %v5281_v6 }
 0x15c   :  { %v774_v0 = vpop.permute.xlu1 %773  ;;  %v772_v44 = vpop.permute.xlu0 %771 }
 0x15d   :  { %v789_v49 = vsel %vm6883_vm7, %v5166_v36, %v772_v44  ;;  %v790_v55 = vsel %vm6883_vm7, %v772_v44, %v774_v0 }
 0x15e   :  { %v4348_v56 = vpack.c.bf16 %v790_v55, %v783_v54  ;;  %v4350_v57 = vpack.c.bf16 %v789_v49, %v782_v58  ;;  %v5320_v55 = vrot.slane %v38_v5, %v1365_v45  ;;  %v6826_v45 = vmov 0.0  }
 0x15f   :  { %40 = vst [vmem:[#allocation2 + $0x20] sm:$0xf] %v6826_v45  ;;  %39 = vst [vmem:[#allocation2] sm:$0xf] %v6826_v45 }
 0x160   :  { %v669_v60 = vpop.permute.xlu1 %668  ;;  %v653_v18 = vpop.permute.xlu0 %652  ;;  %4349 = vmatprep.subr.bf16.mxu0 %v4348_v56  ;;  %6891 = vst [vmem:[#allocation10_spill] sm:$0xff] %v5320_v55 }
 0x161   :  { %v684_v61 = vsel %vm670_vm6, %v667_v26, %v669_v60  ;;  %v677_v34 = vsel %vm670_vm6, %v651_v39, %v653_v18  ;;  %4351 = vmatpush1.bf16.msra.mxu0 %v4350_v57  ;;  %v1369_v18 = vsub.s32 6, %v1344_v10 }
 0x162   :  { %705 = vst [vmem:[#allocation4 + $0x2d0] sm:$0xff] %v677_v34  ;;  %v4375_v62 = vpack.c.bf16 %v684_v61, %v677_v34 }
 0x164   :  { %v865_v11 = vpop.permute.xlu1 %864  ;;  %v863_v8 = vpop.permute.xlu0 %862  ;;  %4376 = vmatpush1.bf16.msra.mxu1 %v4375_v62 }
 0x165   :  { %v889_v36 = vsel %vm6880_vm8, %v5186_v13, %v863_v8  ;;  %v890_v22 = vsel %vm6880_vm8, %v863_v8, %v865_v11  ;;  %4377 = vmatprep.subr.bf16.mxu1 %v6828_v30 }
 0x168   :  { %v881_v9 = vpop.permute.xlu1 %880  ;;  %v879_v12 = vpop.permute.xlu0 %878 }
 0x169   :  { %v896_v24 = vsel %vm6880_vm8, %v5191_v17, %v879_v12  ;;  %v897_v14 = vsel %vm6880_vm8, %v879_v12, %v881_v9 }
 0x16a   :  { %v4352_v15 = vpack.c.bf16 %v897_v14, %v890_v22  ;;  %v4354_v16 = vpack.c.bf16 %v896_v24, %v889_v36  ;;  %v5328_v24 = vrot.slane %v38_v5, %v1369_v18 }
 0x16c   :  { %v776_v20 = vpop.permute.xlu1 %775  ;;  %v760_v28 = vpop.permute.xlu0 %759  ;;  %4353 = vmatprep.subr.bf16.mxu0 %v4352_v15  ;;  %6892 = vst [vmem:[#allocation11_spill] sm:$0xff] %v5328_v24 }
 0x16d   :  { %v791_v21 = vsel %vm6883_vm7, %v774_v0, %v776_v20  ;;  %v784_v13 = vsel %vm6883_vm7, %v758_v47, %v760_v28  ;;  %4355 = vmatpush1.bf16.msra.mxu0 %v4354_v16  ;;  %v5315_v0 = vrot.slane %v38_v5, %v1361_v50 }
 0x16e   :  { %v4378_v46 = vpack.c.bf16 %v791_v21, %v784_v13 }
 0x16f   :  { %6890 = vst [vmem:[#allocation9_spill] sm:$0xff] %v5315_v0 }
 0x170   :  { %v883_v23 = vpop.permute.xlu1 %882  ;;  %v867_v32 = vpop.permute.xlu0 %866  ;;  %1266 = vmatmul.mubr.f32.vlgmr.msra.gmra.mrb[2].mxu0 %v4587_v3  ;;  %4379 = vmatpush1.bf16.msra.mxu1 %v4378_v46 }
 0x171   :  { %v898_v17 = vsel %vm6880_vm8, %v881_v9, %v883_v23  ;;  %v891_v33 = vsel %vm6880_vm8, %v865_v11, %v867_v32  ;;  %4380 = vmatprep.subr.bf16.mxu1 %v6828_v30  ;;  %2874 = vmatprep.mubr.f32.mxu0 %v6826_v45 }
 0x172   :  { %v4381_v31 = vpack.c.bf16 %v898_v17, %v891_v33 }
 0x174   :  { %4382 = vmatpush1.bf16.msra.mxu1 %v4381_v31 }
 0x177   :  { %1337 = vmatmul.mubr.f32.vlgmr.msra.gmra.mrb[2].mxu1 %v4587_v3 }
 0x178   :  { %2945 = vmatprep.mubr.f32.mxu1 %v6826_v45 }
 0x1e2   :  { %v1125_v52 = vpop.f32.mrb[0].mxu0 }
 0x1e3   :  { %v1127_v35 = vpop.f32.mrb[1].mxu0  ;;  %v5286_v39 = vmul.f32 %v5281_v6, %v1125_v52 }
 0x1e4   :  { %v5289_v48 = vmul.f32 %v5283_v7, %v1127_v35 }
 0x1e5   :  { %v1402_v26 = vmul.f32 %v5286_v39, %v5286_v39  ;;  %v1386_v42 = vsel %vm6878_vm9, %v5286_v39, 0.0 }
 0x1e6   :  { %v1403_v27 = vmul.f32 %v5289_v48, %v5289_v48  ;;  %v1387_v43 = vsel %vm6878_vm9, %v5289_v48, 0.0 }
 0x1e7   :  { %v1409_v53 = vsel %vm6878_vm9, %v1402_v26, 0.0  ;;  %v1388_v2 = vadd.f32 %v1387_v43, %v1386_v42  ;;  %v1431_v42 = vld [vmem:[%s6818_s4] sm:$0xf]  ;;  %s4606_s4 = smov 110  }
 0x1e8   :  { %v1410_v1 = vsel %vm6878_vm9, %v1403_v27, 0.0 }
 0x1e9   :  { %v1411_v54 = vadd.f32 %v1410_v1, %v1409_v53 }
 0x1f3   :  { %v1196_v37 = vpop.f32.mrb[0].mxu1 }
 0x1f4   :  { %v1198_v59 = vpop.f32.mrb[1].mxu1  ;;  %v5298_v29 = vmul.f32 %v5291_v40, %v1196_v37  ;;  %v4603_v37 = vmov 0  }
 0x1f5   :  { %v5311_v47 = vmul.f32 %v5300_v41, %v1198_v59  ;;  %4565 = vset.pattern.permute.xlu0 %v4603_v37  ;;  %4566 = vset.pattern.permute.xlu1 %v4603_v37 }
 0x1f6   :  { %v1404_v51 = vmul.f32 %v5298_v29, %v5298_v29  ;;  %v1389_v58 = vsel %vm6878_vm9, %v5298_v29, 0.0 }
 0x1f7   :  { %v1405_v49 = vmul.f32 %v5311_v47, %v5311_v47  ;;  %v1390_v56 = vadd.f32 %v1389_v58, %v1388_v2  ;;  %v1391_v57 = vsel %vm6878_vm9, %v5311_v47, 0.0 }
 0x1f8   :  { %v1412_v44 = vsel %vm6878_vm9, %v1404_v51, 0.0 }
 0x1f9   :  { %v1413_v61 = vadd.f32 %v1412_v44, %v1411_v54  ;;  %v1414_v11 = vsel %vm6878_vm9, %v1405_v49, 0.0  ;;  %v1392_v36 = vadd.f32 %v1391_v57, %v1390_v56 }
 0x1fb   :  { %v1415_v14 = vadd.f32 %v1414_v11, %v1413_v61 }
 0x243   :  { %v1267_v60 = vpop.f32.mrb[2].mxu0 }
 0x244   :  { %v1382_v34 = vmul.f32 %v5315_v0, %v1267_v60  ;;  %v1269_v62 = vpop.f32.mrb[3].mxu0 }
 0x245   :  { %v1383_v8 = vmul.f32 %v5320_v55, %v1269_v62 }
 0x246   :  { %v1393_v22 = vsel %vm6878_vm9, %v1382_v34, 0.0  ;;  %v1406_v9 = vmul.f32 %v1382_v34, %v1382_v34 }
 0x247   :  { %v1407_v12 = vmul.f32 %v1383_v8, %v1383_v8  ;;  %v1394_v15 = vadd.f32 %v1393_v22, %v1392_v36  ;;  %v1395_v20 = vsel %vm6878_vm9, %v1383_v8, 0.0 }
 0x248   :  { %v1416_v16 = vsel %vm6878_vm9, %v1406_v9, 0.0 }
 0x249   :  { %v1417_v21 = vadd.f32 %v1416_v16, %v1415_v14  ;;  %v1418_v23 = vsel %vm6878_vm9, %v1407_v12, 0.0  ;;  %v1396_v32 = vadd.f32 %v1395_v20, %v1394_v15 }
 0x24a   :  { %v1338_v28 = vpop.f32.mrb[2].mxu1 }
 0x24b   :  { %v1384_v13 = vmul.f32 %v5328_v24, %v1338_v28  ;;  %v1340_v46 = vpop.f32.mrb[3].mxu1  ;;  %v1419_v31 = vadd.f32 %v1418_v23, %v1417_v21 }
 0x24d   :  { %v1408_v3 = vmul.f32 %v1384_v13, %v1384_v13  ;;  %v1397_v17 = vsel %vm6878_vm9, %v1384_v13, 0.0 }
 0x24e   :  { %v1398_v33 = vadd.f32 %v1397_v17, %v1396_v32 }
 0x24f   :  { %v1420_v52 = vsel %vm6878_vm9, %v1408_v3, 0.0  ;;  %vm2621_vm9 = vcmask 711680  }
 0x250   :  { %1399 = vadd.xlane.f32.xlu0 %v1398_v33  ;;  %v1421_v35 = vadd.f32 %v1420_v52, %v1419_v31 }
 0x252   :  { %1422 = vadd.xlane.f32.xlu1 %v1421_v35 }
 0x2dd   :  { %v1400_v59 = vpop.xlane.xlu0 %1399 }
 0x2de   :  { %v1401_v63 = vmul.f32 0.001953125, %v1400_v59 }
 0x2df   :  { %v1423_v10 = vpop.xlane.xlu1 %1422 }
 0x2e0   :  { %v1425_v4 = vmul.f32 %v1401_v63, %v1401_v63  ;;  %v1424_v38 = vmul.f32 0.001953125, %v1423_v10 }
 0x2e2   :  { %v1426_v5 = vsub.f32 %v1424_v38, %v1425_v4 }
 0x2e4   :  { %v1427_v19 = vadd.f32 1e-05, %v1426_v5 }
 0x2e6   :  { %4579 = vrsqrt.f32 %v1427_v19 }
 0x2f0   :  { %v4580_v26 = vpop.eup %4579 }
 0x2f1   :  { %v1430_v27 = vmul.f32 %v4580_v26, %v1429_v25 }
 0x2f3   :  { %1436 = vperm.xlu0 %4565, %v1430_v27   ;;  %v1432_v43 = vmul.f32 %v1430_v27, %v1401_v63 }
 0x2f5   :  { %v1433_v50 = vsub.f32 %v1431_v42, %v1432_v43 }
 0x2f7   :  { %1448 = vperm.xlu1 %4566, %v1433_v50  }
 0x372   :  { %v1437_v53 = vpop.permute.xlu0 %1436 }
 0x373   :  { %v1439_v1 = vmul.f32 %v1437_v53, %v5286_v39  ;;  %v1440_v51 = vmul.f32 %v1437_v53, %v5289_v48  ;;  %v1441_v2 = vmul.f32 %v1437_v53, %v5298_v29  ;;  %v1442_v58 = vmul.f32 %v1437_v53, %v5311_v47 }
 0x374   :  { %v1443_v54 = vmul.f32 %v1437_v53, %v1382_v34  ;;  %v1444_v44 = vmul.f32 %v1437_v53, %v1383_v8  ;;  %v1445_v61 = vmul.f32 %v1437_v53, %v1384_v13 }
 0x376   :  { %v1449_v49 = vpop.permute.xlu1 %1448 }
 0x377   :  { %v1451_v56 = vmul.f32 %v1449_v49, %v5281_v6  ;;  %v1452_v57 = vmul.f32 %v1449_v49, %v5283_v7  ;;  %v1453_v60 = vmul.f32 %v1449_v49, %v5291_v40  ;;  %v1454_v18 = vmul.f32 %v1449_v49, %v5300_v41 }
 0x378   :  { %v1455_v39 = vmul.f32 %v1449_v49, %v5315_v0  ;;  %v1456_v48 = vmul.f32 %v1449_v49, %v5320_v55  ;;  %v1457_v29 = vmul.f32 %v1449_v49, %v5328_v24 }
 0x379   :  { %v5357_v62 = vadd.f32 %v1451_v56, %v1439_v1  ;;  %v1459_v47 = vadd.f32 %v1452_v57, %v1440_v51  ;;  %v5359_v34 = vadd.f32 %v1453_v60, %v1441_v2  ;;  %v1461_v11 = vadd.f32 %v1454_v18, %v1442_v58 }
 0x37a   :  { %v5361_v8 = vadd.f32 %v1455_v39, %v1443_v54  ;;  %v1463_v36 = vadd.f32 %v1456_v48, %v1444_v44  ;;  %v1464_v22 = vadd.f32 %v1457_v29, %v1445_v61 }
 0x37b   :  { %v5364_v9 = vcombine.low %v5357_v62, %v1459_v47  ;;  %v5367_v12 = vcombine.low %v5359_v34, %v1461_v11  ;;  %v5374_v15 = vcombine.low %v1459_v47, %v1459_v47  ;;  %v5376_v16 = vcombine.low %v1461_v11, %v1461_v11 }
 0x37c   :  { %v5370_v14 = vcombine.low %v5361_v8, %v1463_v36  ;;  %1480 = vst [vmem:[#allocation2 + $0x1c] sm:$0xf] %v1464_v22  ;;  %v5381_v20 = vcombine.low %v1463_v36, %v1463_v36 }
 0x37d   :  { %1477 = vst [vmem:[#allocation2 + $0x4] sm:$0xff] %v5364_v9  ;;  %1478 = vst [vmem:[#allocation2 + $0xc] sm:$0xff] %v5367_v12 }
 0x37e   :  { %2090 = vst [vmem:[#allocation4 + $0x150] sm:$0xf] %v5364_v9  ;;  %2092 = vst [vmem:[#allocation4 + $0x160] sm:$0xf] %v5367_v12 }
 0x37f   :  { %1479 = vst [vmem:[#allocation2 + $0x14] sm:$0xff] %v5370_v14  ;;  %2094 = vst [vmem:[#allocation4 + $0x170] sm:$0xf] %v5370_v14 }
 0x380   :  { %2091 = vst [vmem:[#allocation4 + $0x158] sm:$0xf] %v5374_v15  ;;  %2093 = vst [vmem:[#allocation4 + $0x168] sm:$0xf] %v5376_v16 }
 0x381   :  { %2095 = vst [vmem:[#allocation4 + $0x178] sm:$0xf] %v5381_v20 }
 0x383   :  { %v5387_v28 = vld [vmem:[#allocation2 + $0x1c] sm:$0xff] }
 0x384   :  { %v2080_v21 = vld [vmem:[#allocation2 + $0x1c] sm:$0xf]  ;;  %2170 = vrot.lane.b32.xlu1 %v5387_v28, %s4605_s3  ;;  %2123 = vrot.lane.b32.xlu0 %v5387_v28, %s4598_s22  ;;  %v5401_v13 = vld [vmem:[#allocation2 + $0x8] sm:$0xff]  ;;  %v5407_v46 = vld [vmem:[#allocation2] sm:$0xff]  ;;  %v2108_v60 = vcombine.low %v5387_v28, %v5387_v28  ;;  %v5680_v24 = vcombine.high %v5387_v28, %v5387_v28 }
 0x385   :  { %2096 = vst [vmem:[#allocation4 + $0x180] sm:$0xf] %v2080_v21  ;;  %v1490_v11 = vcombine.high %v5401_v13, %v5401_v13  ;;  %v1489_v21 = vcombine.high %v5407_v46, %v5407_v46 }
 0x386   :  { %v5417_v23 = vld [vmem:[#allocation2 + $0x10] sm:$0xff]  ;;  %v5555_v38 = vld [vmem:[#allocation2 + $0x18] sm:$0xff]  ;;  %6898 = vst [vmem:[#allocation17_spill] sm:$0xff] %v5680_v24 }
 0x388   :  { %2270 = vrot.lane.b32.xlu1 %v5387_v28, %s4599_s28  ;;  %2222 = vrot.lane.b32.xlu0 %v5387_v28, %s4606_s4 }
 0x38c   :  { %2368 = vrot.lane.b32.xlu1 %v5387_v28, %s4601_s30  ;;  %2467 = vrot.lane.b32.xlu0 %v5387_v28, %s4607_s26 }
 0x390   :  { %2567 = vrot.lane.b32.xlu0 %v5387_v28, %s4608_s27  ;;  %1497 = vrot.lane.b32.xlu1 %v5401_v13, %s4609_s12 }
 0x394   :  { %2321 = vrot.lane.b32.xlu0 %v5387_v28, %s4600_s29  ;;  %1545 = vrot.lane.b32.xlu1 %v5407_v46, %s4610_s13 }
 0x398   :  { %2419 = vrot.lane.b32.xlu0 %v5387_v28, %s4611_s14  ;;  %1597 = vrot.lane.b32.xlu1 %v5401_v13, %s4612_s15 }
 0x39c   :  { %1645 = vrot.lane.b32.xlu0 %v5407_v46, %s4613_s0  ;;  %1501 = vrot.lane.b32.xlu1 %v5417_v23, %s4609_s12 }
 0x3a0   :  { %1601 = vrot.lane.b32.xlu1 %v5417_v23, %s4612_s15  ;;  %1493 = vrot.lane.b32.xlu0 %v5407_v46, %s4609_s12 }
 0x3a4   :  { %1697 = vrot.lane.b32.xlu1 %v5401_v13, %s4614_s16  ;;  %1593 = vrot.lane.b32.xlu0 %v5407_v46, %s4612_s15 }
 0x3a8   :  { %1797 = vrot.lane.b32.xlu1 %v5401_v13, %s4594_s23  ;;  %1549 = vrot.lane.b32.xlu0 %v5401_v13, %s4610_s13 }
 0x3ac   :  { %1701 = vrot.lane.b32.xlu1 %v5417_v23, %s4614_s16  ;;  %1649 = vrot.lane.b32.xlu0 %v5401_v13, %s4613_s0 }
 0x3b0   :  { %1801 = vrot.lane.b32.xlu1 %v5417_v23, %s4594_s23  ;;  %1745 = vrot.lane.b32.xlu0 %v5407_v46, %s4615_s2 }
 0x3b4   :  { %1895 = vrot.lane.b32.xlu1 %v5401_v13, %s4596_s20  ;;  %1844 = vrot.lane.b32.xlu0 %v5407_v46, %s4595_s19 }
 0x3b8   :  { %1994 = vrot.lane.b32.xlu1 %v5401_v13, %s4616_s17  ;;  %1693 = vrot.lane.b32.xlu0 %v5407_v46, %s4614_s16 }
 0x3bc   :  { %1899 = vrot.lane.b32.xlu1 %v5417_v23, %s4596_s20  ;;  %1793 = vrot.lane.b32.xlu0 %v5407_v46, %s4594_s23 }
 0x3c0   :  { %1998 = vrot.lane.b32.xlu1 %v5417_v23, %s4616_s17  ;;  %1749 = vrot.lane.b32.xlu0 %v5401_v13, %s4615_s2 }
 0x3c4   :  { %2162 = vrot.lane.b32.xlu1 %v5367_v12, %s4605_s3  ;;  %1848 = vrot.lane.b32.xlu0 %v5401_v13, %s4595_s19 }
 0x3c8   :  { %2158 = vrot.lane.b32.xlu1 %v5364_v9, %s4605_s3  ;;  %1942 = vrot.lane.b32.xlu0 %v5407_v46, %s4617_s1 }
 0x3cc   :  { %2115 = vrot.lane.b32.xlu1 %v5367_v12, %s4598_s22  ;;  %2042 = vrot.lane.b32.xlu0 %v5407_v46, %s4597_s21 }
 0x3d0   :  { %2214 = vrot.lane.b32.xlu1 %v5367_v12, %s4606_s4  ;;  %1891 = vrot.lane.b32.xlu0 %v5407_v46, %s4596_s20 }
 0x3d4   :  { %2309 = vrot.lane.b32.xlu1 %v5364_v9, %s4600_s29  ;;  %1990 = vrot.lane.b32.xlu0 %v5407_v46, %s4616_s17 }
 0x3d8   :  { %2407 = vrot.lane.b32.xlu1 %v5364_v9, %s4611_s14  ;;  %1946 = vrot.lane.b32.xlu0 %v5401_v13, %s4617_s1 }
 0x3dc   :  { %2258 = vrot.lane.b32.xlu1 %v5364_v9, %s4599_s28  ;;  %2046 = vrot.lane.b32.xlu0 %v5401_v13, %s4597_s21 }
 0x3e0   :  { %2356 = vrot.lane.b32.xlu1 %v5364_v9, %s4601_s30  ;;  %2111 = vrot.lane.b32.xlu0 %v5364_v9, %s4598_s22 }
 0x3e4   :  { %2313 = vrot.lane.b32.xlu1 %v5367_v12, %s4600_s29  ;;  %2210 = vrot.lane.b32.xlu0 %v5364_v9, %s4606_s4 }
 0x3e8   :  { %2411 = vrot.lane.b32.xlu1 %v5367_v12, %s4611_s14  ;;  %2166 = vrot.lane.b32.xlu0 %v5370_v14, %s4605_s3 }
 0x3ec   :  { %2507 = vrot.lane.b32.xlu1 %v5364_v9, %s4618_s18  ;;  %2262 = vrot.lane.b32.xlu0 %v5367_v12, %s4599_s28 }
 0x3f0   :  { %2607 = vrot.lane.b32.xlu1 %v5364_v9, %s4619_s24  ;;  %2360 = vrot.lane.b32.xlu0 %v5367_v12, %s4601_s30 }
 0x3f4   :  { %2455 = vrot.lane.b32.xlu1 %v5364_v9, %s4607_s26  ;;  %2266 = vrot.lane.b32.xlu0 %v5370_v14, %s4599_s28 }
 0x3f6   :  { %v5511_v32 = vpop.permute.xlu1 %2170  ;;  %v5513_v3 = vpop.permute.xlu0 %2123 }
 0x3f8   :  { %2555 = vrot.lane.b32.xlu1 %v5364_v9, %s4608_s27  ;;  %2364 = vrot.lane.b32.xlu0 %v5370_v14, %s4601_s30 }
 0x3fa   :  { %v5519_v17 = vpop.permute.xlu1 %2270  ;;  %v5521_v33 = vpop.permute.xlu0 %2222 }
 0x3fc   :  { %2511 = vrot.lane.b32.xlu1 %v5367_v12, %s4618_s18  ;;  %2459 = vrot.lane.b32.xlu0 %v5367_v12, %s4607_s26 }
 0x3fe   :  { %v5527_v31 = vpop.permute.xlu1 %2368  ;;  %v5529_v52 = vpop.permute.xlu0 %2467 }
 0x3ff   :  { %6893 = vst [vmem:[#allocation12_spill] sm:$0xff] %v5529_v52 }
 0x400   :  { %2611 = vrot.lane.b32.xlu1 %v5367_v12, %s4619_s24  ;;  %2559 = vrot.lane.b32.xlu0 %v5367_v12, %s4608_s27 }
 0x402   :  { %v5535_v35 = vpop.permute.xlu0 %2567  ;;  %v5537_v37 = vpop.permute.xlu1 %1497 }
 0x403   :  { %6894 = vst [vmem:[#allocation13_spill] sm:$0xff] %v5535_v35 }
 0x404   :  { %1553 = vrot.lane.b32.xlu1 %v5417_v23, %s4610_s13  ;;  %2463 = vrot.lane.b32.xlu0 %v5370_v14, %s4607_s26 }
 0x406   :  { %v5543_v59 = vpop.permute.xlu0 %2321  ;;  %v5545_v63 = vpop.permute.xlu1 %1545 }
 0x408   :  { %1653 = vrot.lane.b32.xlu1 %v5417_v23, %s4613_s0  ;;  %2563 = vrot.lane.b32.xlu0 %v5370_v14, %s4608_s27 }
 0x40a   :  { %v5551_v10 = vpop.permute.xlu0 %2419  ;;  %v5553_v4 = vpop.permute.xlu1 %1597 }
 0x40c   :  { %2655 = vrot.lane.b32.xlu1 %v5364_v9, %s4620_s25  ;;  %1505 = vrot.lane.b32.xlu0 %v5555_v38, %s4609_s12 }
 0x40e   :  { %v5561_v5 = vpop.permute.xlu0 %1645  ;;  %v5563_v19 = vpop.permute.xlu1 %1501 }
 0x410   :  { %1705 = vrot.lane.b32.xlu1 %v5555_v38, %s4614_s16  ;;  %1605 = vrot.lane.b32.xlu0 %v5555_v38, %s4612_s15 }
 0x412   :  { %v5569_v25 = vpop.permute.xlu1 %1601  ;;  %v5571_v26 = vpop.permute.xlu0 %1493 }
 0x414   :  { %1805 = vrot.lane.b32.xlu1 %v5555_v38, %s4594_s23  ;;  %2659 = vrot.lane.b32.xlu0 %v5367_v12, %s4620_s25 }
 0x416   :  { %v5577_v27 = vpop.permute.xlu1 %1697  ;;  %v5579_v42 = vpop.permute.xlu0 %1593 }
 0x418   :  { %2663 = vrot.lane.b32.xlu1 %v5370_v14, %s4620_s25  ;;  %1753 = vrot.lane.b32.xlu0 %v5417_v23, %s4615_s2 }
 0x41a   :  { %v5585_v43 = vpop.permute.xlu1 %1797  ;;  %v5587_v50 = vpop.permute.xlu0 %1549 }
 0x41c   :  { %1557 = vrot.lane.b32.xlu1 %v5555_v38, %s4610_s13  ;;  %1852 = vrot.lane.b32.xlu0 %v5417_v23, %s4595_s19 }
 0x41e   :  { %v5593_v53 = vpop.permute.xlu1 %1701  ;;  %v5595_v1 = vpop.permute.xlu0 %1649 }
 0x420   :  { %1657 = vrot.lane.b32.xlu1 %v5555_v38, %s4613_s0  ;;  %1950 = vrot.lane.b32.xlu0 %v5417_v23, %s4617_s1 }
 0x422   :  { %v5601_v51 = vpop.permute.xlu1 %1801  ;;  %v5603_v2 = vpop.permute.xlu0 %1745 }
 0x424   :  { %1903 = vrot.lane.b32.xlu1 %v5555_v38, %s4596_s20  ;;  %2050 = vrot.lane.b32.xlu0 %v5417_v23, %s4597_s21 }
 0x426   :  { %v5609_v58 = vpop.permute.xlu1 %1895  ;;  %v5611_v54 = vpop.permute.xlu0 %1844 }
 0x428   :  { %2002 = vrot.lane.b32.xlu1 %v5555_v38, %s4616_s17  ;;  %2119 = vrot.lane.b32.xlu0 %v5370_v14, %s4598_s22 }
 0x42a   :  { %v5617_v44 = vpop.permute.xlu1 %1994  ;;  %v5619_v49 = vpop.permute.xlu0 %1693 }
 0x42c   :  { %1757 = vrot.lane.b32.xlu1 %v5555_v38, %s4615_s2  ;;  %2218 = vrot.lane.b32.xlu0 %v5370_v14, %s4606_s4 }
 0x42e   :  { %v5625_v56 = vpop.permute.xlu1 %1899  ;;  %v5627_v57 = vpop.permute.xlu0 %1793 }
 0x430   :  { %1856 = vrot.lane.b32.xlu1 %v5555_v38, %s4595_s19  ;;  %2317 = vrot.lane.b32.xlu0 %v5370_v14, %s4600_s29 }
 0x432   :  { %v5635_v18 = vpop.permute.xlu1 %1998  ;;  %v5637_v61 = vpop.permute.xlu0 %1749 }
 0x434   :  { %2121 = vrot.lane.b32.xlu1 %v2108_v60, %s4598_s22  ;;  %2415 = vrot.lane.b32.xlu0 %v5370_v14, %s4611_s14 }
 0x436   :  { %v5642_v39 = vpop.permute.xlu1 %2162  ;;  %v5644_v48 = vpop.permute.xlu0 %1848 }
 0x437   :  { %6895 = vst [vmem:[#allocation14_spill] sm:$0xff] %v5644_v48 }
 0x438   :  { %2220 = vrot.lane.b32.xlu1 %v2108_v60, %s4606_s4  ;;  %2517 = vrot.lane.b32.xlu0 %v2108_v60, %s4618_s18 }
 0x43a   :  { %v5648_v29 = vpop.permute.xlu1 %2158  ;;  %v5650_v47 = vpop.permute.xlu0 %1942 }
 0x43b   :  { %6896 = vst [vmem:[#allocation15_spill] sm:$0xff] %v5650_v47 }
 0x43c   :  { %1954 = vrot.lane.b32.xlu1 %v5555_v38, %s4617_s1  ;;  %2617 = vrot.lane.b32.xlu0 %v2108_v60, %s4619_s24 }
 0x43e   :  { %v5657_v36 = vpop.permute.xlu1 %2115  ;;  %v5659_v22 = vpop.permute.xlu0 %2042 }
 0x43f   :  { %6897 = vst [vmem:[#allocation16_spill] sm:$0xff] %v5659_v22 }
 0x440   :  { %2054 = vrot.lane.b32.xlu1 %v5555_v38, %s4597_s21  ;;  %1499 = vrot.lane.b32.xlu0 %v1490_v11, %s4609_s12 }
 0x442   :  { %v5664_v9 = vpop.permute.xlu1 %2214  ;;  %v5666_v12 = vpop.permute.xlu0 %1891 }
 0x444   :  { %2319 = vrot.lane.b32.xlu1 %v2108_v60, %s4600_s29  ;;  %1599 = vrot.lane.b32.xlu0 %v1490_v11, %s4612_s15 }
 0x446   :  { %v5672_v45 = vpop.permute.xlu1 %2309  ;;  %v5674_v30 = vpop.permute.xlu0 %1990 }
 0x448   :  { %2417 = vrot.lane.b32.xlu1 %v2108_v60, %s4611_s14  ;;  %1695 = vrot.lane.b32.xlu0 %v1489_v21, %s4614_s16 }
 0x44a   :  { %v5682_v55 = vpop.permute.xlu1 %2407  ;;  %v5684_v0 = vpop.permute.xlu0 %1946 }
 0x44b   :  { %6899 = vst [vmem:[#allocation18_spill] sm:$0xff] %v5684_v0 }
 0x44c   :  { %2172 = vrot.lane.b32.xlu1 %v5680_v24, %s4605_s3  ;;  %1795 = vrot.lane.b32.xlu0 %v1489_v21, %s4594_s23 }
 0x44e   :  { %v5689_v41 = vpop.permute.xlu1 %2258  ;;  %v5691_v40 = vpop.permute.xlu0 %2046 }
 0x44f   :  { %6900 = vst [vmem:[#allocation19_spill] sm:$0xff] %v5689_v41  ;;  %6901 = vst [vmem:[#allocation20_spill] sm:$0xff] %v5691_v40  ;;  %v5725_v40 = vcombine.low %v5401_v13, %v5401_v13  ;;  %v4591_v13 = vcombine.low %v5357_v62, %v5357_v62  ;;  %v4592_v62 = vcombine.low %v5361_v8, %v5361_v8 }
 0x450   :  { %2515 = vrot.lane.b32.xlu1 %v5370_v14, %s4618_s18  ;;  %1699 = vrot.lane.b32.xlu0 %v1490_v11, %s4614_s16  ;;  %v5779_v8 = vcombine.low %v5359_v34, %v5359_v34 }
 0x452   :  { %v5696_v60 = vpop.permute.xlu1 %2356  ;;  %v5698_v7 = vpop.permute.xlu0 %2111 }
 0x453   :  { %6902 = vst [vmem:[#allocation21_spill] sm:$0xff] %v5696_v60 }
 0x454   :  { %2615 = vrot.lane.b32.xlu1 %v5370_v14, %s4619_s24  ;;  %1799 = vrot.lane.b32.xlu0 %v1490_v11, %s4594_s23 }
 0x456   :  { %v5703_v6 = vpop.permute.xlu1 %2313  ;;  %v5705_v35 = vpop.permute.xlu0 %2210 }
 0x458   :  { %2272 = vrot.lane.b32.xlu1 %v5680_v24, %s4599_s28  ;;  %1893 = vrot.lane.b32.xlu0 %v1489_v21, %s4596_s20 }
 0x45a   :  { %v5710_v52 = vpop.permute.xlu1 %2411  ;;  %v5712_v41 = vpop.permute.xlu0 %2166 }
 0x45b   :  { %6903 = vst [vmem:[#allocation22_spill] sm:$0xff] %v5712_v41 }
 0x45c   :  { %2370 = vrot.lane.b32.xlu1 %v5680_v24, %s4601_s30  ;;  %1992 = vrot.lane.b32.xlu0 %v1489_v21, %s4616_s17 }
 0x45e   :  { %v5717_v14 = vpop.permute.xlu1 %2507  ;;  %v5719_v60 = vpop.permute.xlu0 %2262 }
 0x45f   :  { %6904 = vst [vmem:[#allocation23_spill] sm:$0xff] %v5717_v14  ;;  %6905 = vst [vmem:[#allocation24_spill] sm:$0xff] %v5719_v60 }
 0x460   :  { %1897 = vrot.lane.b32.xlu0 %v1490_v11, %s4596_s20  ;;  %1495 = vrot.lane.b32.xlu1 %v1489_v21, %s4609_s12 }
 0x462   :  { %v5727_v22 = vpop.permute.xlu1 %2607  ;;  %v5729_v41 = vpop.permute.xlu0 %2360 }
 0x463   :  { %6906 = vst [vmem:[#allocation25_spill] sm:$0xff] %v5727_v22  ;;  %6907 = vst [vmem:[#allocation26_spill] sm:$0xff] %v5729_v41 }
 0x464   :  { %1996 = vrot.lane.b32.xlu0 %v1490_v11, %s4616_s17  ;;  %1547 = vrot.lane.b32.xlu1 %v5725_v40, %s4610_s13  ;;  %v1539_v11 = vcombine.low %v5407_v46, %v5407_v46  ;;  %v5768_v46 = vcombine.low %v5417_v23, %v5417_v23 }
 0x466   :  { %v5734_v0 = vpop.permute.xlu1 %2455  ;;  %v5736_v60 = vpop.permute.xlu0 %2266 }
 0x467   :  { %6908 = vst [vmem:[#allocation27_spill] sm:$0xff] %v5734_v0  ;;  %6909 = vst [vmem:[#allocation28_spill] sm:$0xff] %v5736_v60 }
 0x468   :  { %2160 = vrot.lane.b32.xlu0 %v5374_v15, %s4605_s3  ;;  %1595 = vrot.lane.b32.xlu1 %v1489_v21, %s4612_s15 }
 0x46a   :  { %v5743_v47 = vpop.permute.xlu1 %2555  ;;  %v5745_v41 = vpop.permute.xlu0 %2364 }
 0x46b   :  { %6910 = vst [vmem:[#allocation29_spill] sm:$0xff] %v5743_v47  ;;  %6911 = vst [vmem:[#allocation30_spill] sm:$0xff] %v5745_v41 }
 0x46c   :  { %2109 = vrot.lane.b32.xlu0 %v4591_v13, %s4598_s22  ;;  %1647 = vrot.lane.b32.xlu1 %v5725_v40, %s4613_s0 }
 0x46e   :  { %v5752_v0 = vpop.permute.xlu1 %2511  ;;  %v5754_v60 = vpop.permute.xlu0 %2459 }
 0x46f   :  { %6912 = vst [vmem:[#allocation31_spill] sm:$0xff] %v5752_v0  ;;  %6913 = vst [vmem:[#allocation32_spill] sm:$0xff] %v5754_v60 }
 0x470   :  { %2208 = vrot.lane.b32.xlu0 %v4591_v13, %s4606_s4  ;;  %1543 = vrot.lane.b32.xlu1 %v1539_v11, %s4610_s13 }
 0x472   :  { %v5760_v21 = vpop.permute.xlu1 %2611  ;;  %v5762_v47 = vpop.permute.xlu0 %2559 }
 0x473   :  { %6914 = vst [vmem:[#allocation33_spill] sm:$0xff] %v5760_v21  ;;  %6915 = vst [vmem:[#allocation34_spill] sm:$0xff] %v5762_v47 }
 0x474   :  { %2117 = vrot.lane.b32.xlu0 %v4592_v62, %s4598_s22  ;;  %1643 = vrot.lane.b32.xlu1 %v1539_v11, %s4613_s0 }
 0x476   :  { %v5770_v60 = vpop.permute.xlu1 %1553  ;;  %v5772_v41 = vpop.permute.xlu0 %2463 }
 0x477   :  { %6916 = vst [vmem:[#allocation35_spill] sm:$0xff] %v5772_v41 }
 0x478   :  { %2216 = vrot.lane.b32.xlu0 %v4592_v62, %s4606_s4  ;;  %1551 = vrot.lane.b32.xlu1 %v5768_v46, %s4610_s13 }
 0x47a   :  { %v5781_v47 = vpop.permute.xlu1 %1653  ;;  %v5783_v21 = vpop.permute.xlu0 %2563 }
 0x47b   :  { %6917 = vst [vmem:[#allocation36_spill] sm:$0xff] %v5783_v21 }
 0x47c   :  { %2311 = vrot.lane.b32.xlu0 %v5779_v8, %s4600_s29  ;;  %1651 = vrot.lane.b32.xlu1 %v5768_v46, %s4613_s0 }
 0x47e   :  { %v5789_v41 = vpop.permute.xlu1 %2655  ;;  %v5791_v22 = vpop.permute.xlu0 %1505 }
 0x47f   :  { %6918 = vst [vmem:[#allocation37_spill] sm:$0xff] %v5789_v41  ;;  %6919 = vst [vmem:[#allocation38_spill] sm:$0xff] %v5791_v22 }
 0x480   :  { %2409 = vrot.lane.b32.xlu0 %v5779_v8, %s4611_s14  ;;  %1747 = vrot.lane.b32.xlu1 %v5725_v40, %s4615_s2 }
 0x482   :  { %v5797_v34 = vpop.permute.xlu1 %1705  ;;  %v5799_v0 = vpop.permute.xlu0 %1605 }
 0x483   :  { %6920 = vst [vmem:[#allocation39_spill] sm:$0xff] %v5797_v34  ;;  %6921 = vst [vmem:[#allocation40_spill] sm:$0xff] %v5799_v0 }
 0x484   :  { %2307 = vrot.lane.b32.xlu0 %v4591_v13, %s4600_s29  ;;  %1846 = vrot.lane.b32.xlu1 %v5725_v40, %s4595_s19 }
 0x486   :  { %v5804_v21 = vpop.permute.xlu1 %1805  ;;  %v5806_v41 = vpop.permute.xlu0 %2659 }
 0x487   :  { %6922 = vst [vmem:[#allocation41_spill] sm:$0xff] %v5804_v21  ;;  %6923 = vst [vmem:[#allocation42_spill] sm:$0xff] %v5806_v41 }
 0x488   :  { %2405 = vrot.lane.b32.xlu0 %v4591_v13, %s4611_s14  ;;  %1743 = vrot.lane.b32.xlu1 %v1539_v11, %s4615_s2 }
 0x48a   :  { %v5810_v22 = vpop.permute.xlu1 %2663  ;;  %v5812_v14 = vpop.permute.xlu0 %1753 }
 0x48b   :  { %6924 = vst [vmem:[#allocation43_spill] sm:$0xff] %v5810_v22  ;;  %6925 = vst [vmem:[#allocation44_spill] sm:$0xff] %v5812_v14 }
 0x48c   :  { %2315 = vrot.lane.b32.xlu0 %v4592_v62, %s4600_s29  ;;  %1842 = vrot.lane.b32.xlu1 %v1539_v11, %s4595_s19 }
 0x48e   :  { %v5816_v0 = vpop.permute.xlu1 %1557  ;;  %v5818_v34 = vpop.permute.xlu0 %1852 }
 0x48f   :  { %6926 = vst [vmem:[#allocation45_spill] sm:$0xff] %v5816_v0  ;;  %6927 = vst [vmem:[#allocation46_spill] sm:$0xff] %v5818_v34 }
 0x490   :  { %2413 = vrot.lane.b32.xlu0 %v4592_v62, %s4611_s14  ;;  %1751 = vrot.lane.b32.xlu1 %v5768_v46, %s4615_s2 }
 0x492   :  { %v5823_v41 = vpop.permute.xlu1 %1657  ;;  %v5825_v21 = vpop.permute.xlu0 %1950 }
 0x493   :  { %6928 = vst [vmem:[#allocation47_spill] sm:$0xff] %v5823_v41  ;;  %6929 = vst [vmem:[#allocation48_spill] sm:$0xff] %v5825_v21 }
 0x494   :  { %2509 = vrot.lane.b32.xlu0 %v5779_v8, %s4618_s18  ;;  %1850 = vrot.lane.b32.xlu1 %v5768_v46, %s4595_s19 }
 0x496   :  { %v5831_v22 = vpop.permute.xlu1 %1903  ;;  %v5833_v0 = vpop.permute.xlu0 %2050 }
 0x497   :  { %6930 = vst [vmem:[#allocation49_spill] sm:$0xff] %v5831_v22  ;;  %6931 = vst [vmem:[#allocation50_spill] sm:$0xff] %v5833_v0 }
 0x498   :  { %2609 = vrot.lane.b32.xlu0 %v5779_v8, %s4619_s24  ;;  %1944 = vrot.lane.b32.xlu1 %v5725_v40, %s4617_s1 }
 0x49a   :  { %v5839_v34 = vpop.permute.xlu1 %2002  ;;  %v5841_v41 = vpop.permute.xlu0 %2119 }
 0x49b   :  { %6932 = vst [vmem:[#allocation51_spill] sm:$0xff] %v5839_v34 }
 0x49c   :  { %2505 = vrot.lane.b32.xlu0 %v4591_v13, %s4618_s18  ;;  %2044 = vrot.lane.b32.xlu1 %v5725_v40, %s4597_s21 }
 0x49e   :  { %v5846_v21 = vpop.permute.xlu1 %1757  ;;  %v5848_v22 = vpop.permute.xlu0 %2218 }
 0x49f   :  { %6933 = vst [vmem:[#allocation52_spill] sm:$0xff] %v5846_v21 }
 0x4a0   :  { %2605 = vrot.lane.b32.xlu0 %v4591_v13, %s4619_s24  ;;  %1940 = vrot.lane.b32.xlu1 %v1539_v11, %s4617_s1  ;;  %v5869_v13 = vcombine.low %v5555_v38, %v5555_v38 }
 0x4a2   :  { %v5852_v0 = vpop.permute.xlu1 %1856  ;;  %v5854_v14 = vpop.permute.xlu0 %2317 }
 0x4a3   :  { %6934 = vst [vmem:[#allocation53_spill] sm:$0xff] %v5852_v0 }
 0x4a4   :  { %2513 = vrot.lane.b32.xlu0 %v4592_v62, %s4618_s18  ;;  %2040 = vrot.lane.b32.xlu1 %v1539_v11, %s4597_s21 }
 0x4a6   :  { %v2122_v34 = vpop.permute.xlu1 %2121  ;;  %v5858_v24 = vpop.permute.xlu0 %2415 }
 0x4a7   :  { %v2130_v40 = vsel %vm6884_vm5, %v5841_v41, %v2122_v34  ;;  %v2131_v21 = vsel %vm6884_vm5, %v2122_v34, %v5513_v3 }
 0x4a8   :  { %2144 = vst [vmem:[#allocation4 + $0x178] sm:$0xf0] %v2130_v40  ;;  %2145 = vst [vmem:[#allocation4 + $0x180] sm:$0xf0] %v2131_v21  ;;  %2613 = vrot.lane.b32.xlu0 %v4592_v62, %s4619_s24  ;;  %1948 = vrot.lane.b32.xlu1 %v5768_v46, %s4617_s1 }
 0x4aa   :  { %v2221_v11 = vpop.permute.xlu1 %2220  ;;  %v5871_v0 = vpop.permute.xlu0 %2517 }
 0x4ab   :  { %v2230_v48 = vsel %vm2224_vm10, %v5848_v22, %v2221_v11  ;;  %v2231_v3 = vsel %vm2224_vm10, %v2221_v11, %v5521_v33  ;;  %v5891_v33 = vcombine.high %v5417_v23, %v5417_v23 }
 0x4ac   :  { %2244 = vst [vmem:[#allocation4 + $0x1b0] sm:$0xf0] %v2230_v48  ;;  %2245 = vst [vmem:[#allocation4 + $0x1b8] sm:$0xf0] %v2231_v3  ;;  %1555 = vrot.lane.b32.xlu0 %v5869_v13, %s4610_s13  ;;  %2048 = vrot.lane.b32.xlu1 %v5768_v46, %s4597_s21 }
 0x4ae   :  { %v5881_v62 = vpop.permute.xlu1 %1954  ;;  %v5883_v21 = vpop.permute.xlu0 %2617 }
 0x4b0   :  { %1655 = vrot.lane.b32.xlu0 %v5869_v13, %s4613_s0  ;;  %2113 = vrot.lane.b32.xlu1 %v5779_v8, %s4598_s22 }
 0x4b2   :  { %v5893_v48 = vpop.permute.xlu1 %2054  ;;  %v1500_v34 = vpop.permute.xlu0 %1499 }
 0x4b3   :  { %6935 = vst [vmem:[#allocation54_spill] sm:$0xff] %v5893_v48  ;;  %v1512_v46 = vsel %vm1509_vm11, %v5537_v37, %v1500_v34  ;;  %v1513_v40 = vsel %vm1509_vm11, %v1500_v34, %v5563_v19 }
 0x4b4   :  { %1526 = vst [vmem:[#allocation4 + $0x10] sm:$0xf] %v1512_v46  ;;  %1527 = vst [vmem:[#allocation4 + $0x18] sm:$0xf] %v1513_v40  ;;  %1703 = vrot.lane.b32.xlu0 %v5891_v33, %s4614_s16  ;;  %2212 = vrot.lane.b32.xlu1 %v5779_v8, %s4606_s4 }
 0x4b6   :  { %v2320_v23 = vpop.permute.xlu1 %2319  ;;  %v1600_v11 = vpop.permute.xlu0 %1599 }
 0x4b7   :  { %v2328_v3 = vsel %vm6883_vm7, %v5854_v14, %v2320_v23  ;;  %v2329_v48 = vsel %vm6883_vm7, %v2320_v23, %v5543_v59  ;;  %v1612_v34 = vsel %vm1609_vm12, %v5553_v4, %v1600_v11  ;;  %v1613_v46 = vsel %vm1609_vm12, %v1600_v11, %v5569_v25 }
 0x4b8   :  { %2342 = vst [vmem:[#allocation4 + $0x1e8] sm:$0xf0] %v2328_v3  ;;  %2343 = vst [vmem:[#allocation4 + $0x1f0] sm:$0xf0] %v2329_v48  ;;  %1803 = vrot.lane.b32.xlu0 %v5891_v33, %s4594_s23  ;;  %2164 = vrot.lane.b32.xlu1 %v5376_v16, %s4605_s3 }
 0x4b9   :  { %1626 = vst [vmem:[#allocation4 + $0x48] sm:$0xf] %v1612_v34  ;;  %1627 = vst [vmem:[#allocation4 + $0x50] sm:$0xf] %v1613_v46 }
 0x4ba   :  { %v2418_v8 = vpop.permute.xlu1 %2417  ;;  %v1696_v59 = vpop.permute.xlu0 %1695 }
 0x4bb   :  { %v2427_v40 = vsel %vm2421_vm13, %v5858_v24, %v2418_v8  ;;  %v2428_v23 = vsel %vm2421_vm13, %v2418_v8, %v5551_v10  ;;  %v1710_v48 = vsel %vm1709_vm14, %v5619_v49, %v1696_v59  ;;  %v1711_v11 = vsel %vm1709_vm14, %v1696_v59, %v5577_v27 }
 0x4bc   :  { %2441 = vst [vmem:[#allocation4 + $0x220] sm:$0xf0] %v2427_v40  ;;  %2442 = vst [vmem:[#allocation4 + $0x228] sm:$0xf0] %v2428_v23  ;;  %2661 = vrot.lane.b32.xlu0 %v5376_v16, %s4620_s25  ;;  %2260 = vrot.lane.b32.xlu1 %v5374_v15, %s4599_s28  ;;  %v5929_v10 = vcombine.high %v5555_v38, %v5555_v38 }
 0x4bd   :  { %1724 = vst [vmem:[#allocation4 + $0x70] sm:$0xf] %v1710_v48  ;;  %1725 = vst [vmem:[#allocation4 + $0x78] sm:$0xf] %v1711_v11 }
 0x4be   :  { %v2173_v3 = vpop.permute.xlu1 %2172  ;;  %v1796_v49 = vpop.permute.xlu0 %1795 }
 0x4bf   :  { %v2181_v34 = vsel %vm2174_vm15, %v5511_v32, %v2173_v3  ;;  %v1809_v46 = vsel %vm6879_vm0, %v5627_v57, %v1796_v49  ;;  %v1810_v8 = vsel %vm6879_vm0, %v1796_v49, %v5585_v43 }
 0x4c0   :  { %2195 = vst [vmem:[#allocation4 + $0x1b8] sm:$0xf] %v2181_v34  ;;  %1823 = vst [vmem:[#allocation4 + $0xa8] sm:$0xf] %v1809_v46  ;;  %1507 = vrot.lane.b32.xlu0 %v5929_v10, %s4609_s12  ;;  %2358 = vrot.lane.b32.xlu1 %v5374_v15, %s4601_s30 }
 0x4c1   :  { %1824 = vst [vmem:[#allocation4 + $0xb0] sm:$0xf] %v1810_v8 }
 0x4c2   :  { %v5941_v38 = vpop.permute.xlu1 %2515  ;;  %v1700_v59 = vpop.permute.xlu0 %1699 }
 0x4c3   :  { %v2527_v57 = vsel %vm2521_vm2, %v5941_v38, %v5871_v0  ;;  %v1712_v40 = vsel %vm1709_vm14, %v5577_v27, %v1700_v59  ;;  %v1713_v23 = vsel %vm1709_vm14, %v1700_v59, %v5593_v53 }
 0x4c4   :  { %2541 = vst [vmem:[#allocation4 + $0x258] sm:$0xf0] %v2527_v57  ;;  %1726 = vst [vmem:[#allocation4 + $0x80] sm:$0xf] %v1712_v40  ;;  %1607 = vrot.lane.b32.xlu0 %v5929_v10, %s4612_s15  ;;  %2264 = vrot.lane.b32.xlu1 %v5376_v16, %s4599_s28 }
 0x4c5   :  { %1727 = vst [vmem:[#allocation4 + $0x88] sm:$0xf] %v1713_v23 }
 0x4c6   :  { %v5954_v48 = vpop.permute.xlu1 %2615  ;;  %v1800_v11 = vpop.permute.xlu0 %1799 }
 0x4c7   :  { %v2627_v27 = vsel %vm2621_vm9, %v5954_v48, %v5883_v21  ;;  %v1811_v3 = vsel %vm6879_vm0, %v5585_v43, %v1800_v11  ;;  %v1812_v49 = vsel %vm6879_vm0, %v1800_v11, %v5601_v51  ;;  %vm6881_vm0 = vcmask 15360  }
 0x4c8   :  { %2641 = vst [vmem:[#allocation4 + $0x290] sm:$0xf0] %v2627_v27  ;;  %1825 = vst [vmem:[#allocation4 + $0xb8] sm:$0xf] %v1811_v3  ;;  %1901 = vrot.lane.b32.xlu0 %v5891_v33, %s4596_s20  ;;  %2362 = vrot.lane.b32.xlu1 %v5376_v16, %s4601_s30 }
 0x4c9   :  { %1826 = vst [vmem:[#allocation4 + $0xc0] sm:$0xf] %v1812_v49 }
 0x4ca   :  { %v2273_v34 = vpop.permute.xlu1 %2272  ;;  %v1894_v46 = vpop.permute.xlu0 %1893 }
 0x4cb   :  { %v2280_v8 = vsel %vm670_vm6, %v5519_v17, %v2273_v34  ;;  %v1907_v43 = vsel %vm6882_vm3, %v5666_v12, %v1894_v46  ;;  %v1908_v59 = vsel %vm6882_vm3, %v1894_v46, %v5609_v58 }
 0x4cc   :  { %2294 = vst [vmem:[#allocation4 + $0x1f0] sm:$0xf] %v2280_v8  ;;  %1921 = vst [vmem:[#allocation4 + $0xe0] sm:$0xf] %v1907_v43  ;;  %2000 = vrot.lane.b32.xlu0 %v5891_v33, %s4616_s17  ;;  %2457 = vrot.lane.b32.xlu1 %v5374_v15, %s4607_s26 }
 0x4cd   :  { %1922 = vst [vmem:[#allocation4 + $0xe8] sm:$0xf] %v1908_v59 }
 0x4ce   :  { %v2371_v57 = vpop.permute.xlu1 %2370  ;;  %v1993_v40 = vpop.permute.xlu0 %1992 }
 0x4cf   :  { %v2378_v23 = vsel %vm6880_vm8, %v5527_v31, %v2371_v57  ;;  %v2007_v12 = vsel %vm6881_vm0, %v5674_v30, %v1993_v40  ;;  %v2008_v11 = vsel %vm6881_vm0, %v1993_v40, %v5617_v44  ;;  %vm1559_vm8 = vcmask 334848  }
 0x4d0   :  { %2392 = vst [vmem:[#allocation4 + $0x228] sm:$0xf] %v2378_v23  ;;  %2021 = vst [vmem:[#allocation4 + $0x118] sm:$0xf] %v2007_v12  ;;  %1707 = vrot.lane.b32.xlu0 %v5929_v10, %s4614_s16  ;;  %2557 = vrot.lane.b32.xlu1 %v5374_v15, %s4608_s27 }
 0x4d1   :  { %2022 = vst [vmem:[#allocation4 + $0x120] sm:$0xf] %v2008_v11 }
 0x4d2   :  { %v1898_v27 = vpop.permute.xlu0 %1897  ;;  %v1496_v3 = vpop.permute.xlu1 %1495 }
 0x4d3   :  { %v1909_v49 = vsel %vm6882_vm3, %v5609_v58, %v1898_v27  ;;  %v1910_v30 = vsel %vm6882_vm3, %v1898_v27, %v5625_v56  ;;  %v1510_v34 = vsel %vm1509_vm11, %v5571_v26, %v1496_v3  ;;  %v1511_v46 = vsel %vm1509_vm11, %v1496_v3, %v5537_v37 }
 0x4d4   :  { %1923 = vst [vmem:[#allocation4 + $0xf0] sm:$0xf] %v1909_v49  ;;  %1924 = vst [vmem:[#allocation4 + $0xf8] sm:$0xf] %v1910_v30  ;;  %1807 = vrot.lane.b32.xlu0 %v5929_v10, %s4594_s23  ;;  %2461 = vrot.lane.b32.xlu1 %v5376_v16, %s4607_s26  ;;  %vm1759_vm3 = vcmask 179200  }
 0x4d5   :  { %1524 = vst [vmem:[#allocation4] sm:$0xf] %v1510_v34  ;;  %1525 = vst [vmem:[#allocation4 + $0x8] sm:$0xf] %v1511_v46 }
 0x4d6   :  { %v1997_v58 = vpop.permute.xlu0 %1996  ;;  %v1548_v8 = vpop.permute.xlu1 %1547 }
 0x4d7   :  { %v2009_v43 = vsel %vm6881_vm0, %v5617_v44, %v1997_v58  ;;  %v2010_v26 = vsel %vm6881_vm0, %v1997_v58, %v5635_v18  ;;  %v1561_v37 = vsel %vm1559_vm8, %v5545_v63, %v1548_v8  ;;  %v1562_v59 = vsel %vm1559_vm8, %v1548_v8, %v5587_v50 }
 0x4d8   :  { %2023 = vst [vmem:[#allocation4 + $0x128] sm:$0xf] %v2009_v43  ;;  %2024 = vst [vmem:[#allocation4 + $0x130] sm:$0xf] %v2010_v26  ;;  %2168 = vrot.lane.b32.xlu0 %v5381_v20, %s4605_s3  ;;  %2561 = vrot.lane.b32.xlu1 %v5376_v16, %s4608_s27  ;;  %vm1659_vm0 = vcmask 318464  }
 0x4d9   :  { %1575 = vst [vmem:[#allocation4 + $0x8] sm:$0xf0] %v1561_v37  ;;  %1576 = vst [vmem:[#allocation4 + $0x10] sm:$0xf0] %v1562_v59 }
 0x4da   :  { %v2161_v44 = vpop.permute.xlu0 %2160  ;;  %v1596_v57 = vpop.permute.xlu1 %1595 }
 0x4db   :  { %v2175_v40 = vsel %vm2174_vm15, %v5648_v29, %v2161_v44  ;;  %v2176_v23 = vsel %vm2174_vm15, %v2161_v44, %v5642_v39  ;;  %v1610_v12 = vsel %vm1609_vm12, %v5579_v42, %v1596_v57  ;;  %v1611_v11 = vsel %vm1609_vm12, %v1596_v57, %v5553_v4 }
 0x4dc   :  { %2189 = vst [vmem:[#allocation4 + $0x188] sm:$0xf] %v2175_v40  ;;  %2190 = vst [vmem:[#allocation4 + $0x190] sm:$0xf] %v2176_v23  ;;  %1905 = vrot.lane.b32.xlu0 %v5929_v10, %s4596_s20  ;;  %1503 = vrot.lane.b32.xlu1 %v5891_v33, %s4609_s12 }
 0x4dd   :  { %1624 = vst [vmem:[#allocation4 + $0x38] sm:$0xf] %v1610_v12  ;;  %1625 = vst [vmem:[#allocation4 + $0x40] sm:$0xf] %v1611_v11 }
 0x4de   :  { %v2110_v16 = vpop.permute.xlu0 %2109  ;;  %v1648_v29 = vpop.permute.xlu1 %1647 }
 0x4df   :  { %v2125_v27 = vsel %vm6884_vm5, %v2110_v16, %v5698_v7  ;;  %v1661_v42 = vsel %vm1659_vm0, %v5561_v5, %v1648_v29  ;;  %v1662_v4 = vsel %vm1659_vm0, %v1648_v29, %v5595_v1 }
 0x4e0   :  { %2139 = vst [vmem:[#allocation4 + $0x150] sm:$0xf0] %v2125_v27  ;;  %1675 = vst [vmem:[#allocation4 + $0x40] sm:$0xf0] %v1661_v42  ;;  %2004 = vrot.lane.b32.xlu0 %v5929_v10, %s4616_s17  ;;  %1603 = vrot.lane.b32.xlu1 %v5891_v33, %s4612_s15 }
 0x4e1   :  { %1676 = vst [vmem:[#allocation4 + $0x48] sm:$0xf0] %v1662_v4 }
 0x4e2   :  { %v2209_v3 = vpop.permute.xlu0 %2208  ;;  %v1544_v49 = vpop.permute.xlu1 %1543 }
 0x4e3   :  { %v2225_v30 = vsel %vm2224_vm10, %v2209_v3, %v5705_v35  ;;  %v1560_v34 = vsel %vm1559_vm8, %v1544_v49, %v5545_v63  ;;  %v2695_v63 = vld [vmem:[#allocation4 + $0x8] sm:$0xff]  ;;  %v6083_v49 = vld [vmem:[#allocation2 + $0x1c] sm:$0xff] }
 0x4e4   :  { %2239 = vst [vmem:[#allocation4 + $0x188] sm:$0xf0] %v2225_v30  ;;  %1574 = vst [vmem:[#allocation4] sm:$0xf0] %v1560_v34  ;;  %2268 = vrot.lane.b32.xlu0 %v5381_v20, %s4599_s28  ;;  %2657 = vrot.lane.b32.xlu1 %v5374_v15, %s4620_s25 }
 0x4e6   :  { %v2118_v10 = vpop.permute.xlu0 %2117  ;;  %v1644_v46 = vpop.permute.xlu1 %1643 }
 0x4e7   :  { %v2128_v33 = vsel %vm6884_vm5, %v5657_v36, %v2118_v10  ;;  %v2129_v58 = vsel %vm6884_vm5, %v2118_v10, %v5841_v41  ;;  %v1660_v8 = vsel %vm1659_vm0, %v1644_v46, %v5561_v5  ;;  %v2702_v43 = vld [vmem:[#allocation4 + $0x40] sm:$0xff] }
 0x4e8   :  { %2142 = vst [vmem:[#allocation4 + $0x168] sm:$0xf0] %v2128_v33  ;;  %2143 = vst [vmem:[#allocation4 + $0x170] sm:$0xf0] %v2129_v58  ;;  %2366 = vrot.lane.b32.xlu0 %v5381_v20, %s4601_s30  ;;  %1755 = vrot.lane.b32.xlu1 %v5869_v13, %s4615_s2  ;;  %v4383_v15 = vpack.c.bf16 %v2702_v43, %v2695_v63  ;;  %v2703_v10 = vld [vmem:[#allocation4 + $0x48] sm:$0xff]  ;;  %v6936_v58 = vld [vmem:[#allocation14_spill] sm:$0xff] }
 0x4e9   :  { %1674 = vst [vmem:[#allocation4 + $0x38] sm:$0xf0] %v1660_v8 }
 0x4ea   :  { %v2217_v26 = vpop.permute.xlu0 %2216  ;;  %4384 = vmatprep.subr.bf16.mxu0 %v4383_v15  ;;  %v1552_v37 = vpop.permute.xlu1 %1551  ;;  %v6937_v15 = vld [vmem:[#allocation17_spill] sm:$0xff] }
 0x4eb   :  { %v2228_v41 = vsel %vm2224_vm10, %v5664_v9, %v2217_v26  ;;  %v2229_v5 = vsel %vm2224_vm10, %v2217_v26, %v5848_v22  ;;  %v1563_v59 = vsel %vm1559_vm8, %v5587_v50, %v1552_v37  ;;  %v1564_v44 = vsel %vm1559_vm8, %v1552_v37, %v5770_v60  ;;  %v2694_v11 = vld [vmem:[#allocation4] sm:$0xff]  ;;  %v2696_v26 = vld [vmem:[#allocation4 + $0x10] sm:$0xff] }
 0x4ec   :  { %2242 = vst [vmem:[#allocation4 + $0x1a0] sm:$0xf0] %v2228_v41  ;;  %2243 = vst [vmem:[#allocation4 + $0x1a8] sm:$0xf0] %v2229_v5  ;;  %2519 = vrot.lane.b32.xlu0 %v5387_v28, %s4618_s18  ;;  %1854 = vrot.lane.b32.xlu1 %v5869_v13, %s4595_s19  ;;  %v4409_v37 = vpack.c.bf16 %v2703_v10, %v2696_v26 }
 0x4ed   :  { %1577 = vst [vmem:[#allocation4 + $0x18] sm:$0xf0] %v1563_v59  ;;  %1578 = vst [vmem:[#allocation4 + $0x20] sm:$0xf0] %v1564_v44 }
 0x4ee   :  { %v2312_v57 = vpop.permute.xlu0 %2311  ;;  %v1652_v40 = vpop.permute.xlu1 %1651 }
 0x4ef   :  { %v2324_v22 = vsel %vm6883_vm7, %v5672_v45, %v2312_v57  ;;  %v2325_v50 = vsel %vm6883_vm7, %v2312_v57, %v5703_v6  ;;  %v1663_v23 = vsel %vm1659_vm0, %v5595_v1, %v1652_v40  ;;  %v1664_v12 = vsel %vm1659_vm0, %v1652_v40, %v5781_v47 }
 0x4f0   :  { %v2701_v16 = vld [vmem:[#allocation4 + $0x38] sm:$0xff]  ;;  %2338 = vst [vmem:[#allocation4 + $0x1c8] sm:$0xf0] %v2324_v22  ;;  %2339 = vst [vmem:[#allocation4 + $0x1d0] sm:$0xf0] %v2325_v50  ;;  %2619 = vrot.lane.b32.xlu0 %v5387_v28, %s4619_s24  ;;  %1952 = vrot.lane.b32.xlu1 %v5869_v13, %s4617_s1 }
 0x4f1   :  { %1677 = vst [vmem:[#allocation4 + $0x50] sm:$0xf0] %v1663_v23  ;;  %1678 = vst [vmem:[#allocation4 + $0x58] sm:$0xf0] %v1664_v12  ;;  %v4385_v29 = vpack.c.bf16 %v2701_v16, %v2694_v11  ;;  %v6938_v16 = vld [vmem:[#allocation44_spill] sm:$0xff] }
 0x4f2   :  { %v2410_v27 = vpop.permute.xlu0 %2409  ;;  %v1748_v1 = vpop.permute.xlu1 %1747 }
 0x4f3   :  { %4386 = vmatpush1.bf16.msra.mxu0 %v4385_v29  ;;  %v2423_v42 = vsel %vm2421_vm13, %v5682_v55, %v2410_v27  ;;  %v2424_v4 = vsel %vm2421_vm13, %v2410_v27, %v5710_v52  ;;  %v1761_v3 = vsel %vm1759_vm3, %v5603_v2, %v1748_v1  ;;  %v1762_v28 = vsel %vm1759_vm3, %v1748_v1, %v5637_v61 }
 0x4f4   :  { %2437 = vst [vmem:[#allocation4 + $0x200] sm:$0xf0] %v2423_v42  ;;  %2438 = vst [vmem:[#allocation4 + $0x208] sm:$0xf0] %v2424_v4  ;;  %2667 = vrot.lane.b32.xlu0 %v6083_v49, %s4620_s25  ;;  %2052 = vrot.lane.b32.xlu1 %v5869_v13, %s4597_s21  ;;  %v2697_v63 = vld [vmem:[#allocation4 + $0x18] sm:$0xff]  ;;  %v6939_v42 = vld [vmem:[#allocation23_spill] sm:$0xff] }
 0x4f5   :  { %1775 = vst [vmem:[#allocation4 + $0x78] sm:$0xf0] %v1761_v3  ;;  %1776 = vst [vmem:[#allocation4 + $0x80] sm:$0xf0] %v1762_v28  ;;  %v6940_v4 = vld [vmem:[#allocation31_spill] sm:$0xff]  ;;  %v6941_v3 = vld [vmem:[#allocation46_spill] sm:$0xff] }
 0x4f6   :  { %v2308_v30 = vpop.permute.xlu0 %2307  ;;  %v1847_v34 = vpop.permute.xlu1 %1846 }
 0x4f7   :  { %v2323_v46 = vsel %vm6883_vm7, %v2308_v30, %v5672_v45  ;;  %v1859_v33 = vsel %vm214_vm1, %v5611_v54, %v1847_v34  ;;  %v1860_v8 = vsel %vm214_vm1, %v1847_v34, %v6936_v58 }
 0x4f8   :  { %v2704_v43 = vld [vmem:[#allocation4 + $0x50] sm:$0xff]  ;;  %2337 = vst [vmem:[#allocation4 + $0x1c0] sm:$0xf0] %v2323_v46  ;;  %1873 = vst [vmem:[#allocation4 + $0xb0] sm:$0xf0] %v1859_v33  ;;  %2469 = vrot.lane.b32.xlu1 %v6937_v15, %s4607_s26  ;;  %v2654_v46 = vcombine.high %v6083_v49, %v6083_v49 }
 0x4f9   :  { %1874 = vst [vmem:[#allocation4 + $0xb8] sm:$0xf0] %v1860_v8  ;;  %v4407_v13 = vpack.c.bf16 %v2704_v43, %v2697_v63  ;;  %v6942_v8 = vld [vmem:[#allocation25_spill] sm:$0xff] }
 0x4fa   :  { %v2406_v41 = vpop.permute.xlu0 %2405  ;;  %v1744_v45 = vpop.permute.xlu1 %1743  ;;  %v6943_v43 = vld [vmem:[#allocation33_spill] sm:$0xff] }
 0x4fb   :  { %4408 = vmatprep.subr.bf16.mxu1 %v4407_v13  ;;  %v2422_v5 = vsel %vm2421_vm13, %v2406_v41, %v5682_v55  ;;  %v1760_v59 = vsel %vm1759_vm3, %v1744_v45, %v5603_v2  ;;  %v6944_v13 = vld [vmem:[#allocation15_spill] sm:$0xff] }
 0x4fc   :  { %4410 = vmatpush1.bf16.msra.mxu1 %v4409_v37  ;;  %2436 = vst [vmem:[#allocation4 + $0x1f8] sm:$0xf0] %v2422_v5  ;;  %1774 = vst [vmem:[#allocation4 + $0x70] sm:$0xf0] %v1760_v59  ;;  %2465 = vrot.lane.b32.xlu1 %v5381_v20, %s4607_s26  ;;  %v2709_v50 = vld [vmem:[#allocation4 + $0x78] sm:$0xff]  ;;  %v6946_v59 = vld [vmem:[#allocation16_spill] sm:$0xff] }
 0x4fd   :  { %v6945_v37 = vld [vmem:[#allocation18_spill] sm:$0xff] }
 0x4fe   :  { %v2316_v44 = vpop.permute.xlu0 %2315  ;;  %v1843_v57 = vpop.permute.xlu1 %1842 }
 0x4ff   :  { %v2326_v40 = vsel %vm6883_vm7, %v5703_v6, %v2316_v44  ;;  %v2327_v22 = vsel %vm6883_vm7, %v2316_v44, %v5854_v14  ;;  %v1858_v55 = vsel %vm214_vm1, %v1843_v57, %v5611_v54  ;;  %v2716_v23 = vld [vmem:[#allocation4 + $0xb0] sm:$0xff]  ;;  %v6947_v57 = vld [vmem:[#allocation20_spill] sm:$0xff]  ;;  %vm6971_vm7 = vcmask 875520  }
 0x500   :  { %2340 = vst [vmem:[#allocation4 + $0x1d8] sm:$0xf0] %v2326_v40  ;;  %2341 = vst [vmem:[#allocation4 + $0x1e0] sm:$0xf0] %v2327_v22  ;;  %2565 = vrot.lane.b32.xlu1 %v5381_v20, %s4608_s27  ;;  %v4387_v2 = vpack.c.bf16 %v2716_v23, %v2709_v50  ;;  %v2717_v45 = vld [vmem:[#allocation4 + $0xb8] sm:$0xff]  ;;  %v2710_v23 = vld [vmem:[#allocation4 + $0x80] sm:$0xff] }
 0x501   :  { %1872 = vst [vmem:[#allocation4 + $0xa8] sm:$0xf0] %v1858_v55 }
 0x502   :  { %v2414_v12 = vpop.permute.xlu0 %2413  ;;  %4388 = vmatprep.subr.bf16.mxu0 %v4387_v2  ;;  %v1752_v11 = vpop.permute.xlu1 %1751  ;;  %v4413_v2 = vpack.c.bf16 %v2717_v45, %v2710_v23  ;;  %v6951_v45 = vld [vmem:[#allocation47_spill] sm:$0xff] }
 0x503   :  { %v2425_v6 = vsel %vm2421_vm13, %v5710_v52, %v2414_v12  ;;  %v2426_v14 = vsel %vm2421_vm13, %v2414_v12, %v5858_v24  ;;  %v1763_v54 = vsel %vm1759_vm3, %v5637_v61, %v1752_v11  ;;  %v1764_v29 = vsel %vm1759_vm3, %v1752_v11, %v6938_v16  ;;  %v2708_v30 = vld [vmem:[#allocation4 + $0x70] sm:$0xff] }
 0x504   :  { %2439 = vst [vmem:[#allocation4 + $0x210] sm:$0xf0] %v2425_v6  ;;  %2440 = vst [vmem:[#allocation4 + $0x218] sm:$0xf0] %v2426_v14  ;;  %2569 = vrot.lane.b32.xlu1 %v6937_v15, %s4608_s27  ;;  %vm1956_vm13 = vcmask 146432  }
 0x505   :  { %1777 = vst [vmem:[#allocation4 + $0x88] sm:$0xf0] %v1763_v54  ;;  %1778 = vst [vmem:[#allocation4 + $0x90] sm:$0xf0] %v1764_v29 }
 0x506   :  { %v2510_v27 = vpop.permute.xlu0 %2509  ;;  %v1851_v1 = vpop.permute.xlu1 %1850 }
 0x507   :  { %v2523_v52 = vsel %vm2521_vm2, %v6939_v42, %v2510_v27  ;;  %v2524_v24 = vsel %vm2521_vm2, %v2510_v27, %v6940_v4  ;;  %v1861_v61 = vsel %vm214_vm1, %v6936_v58, %v1851_v1  ;;  %v1862_v28 = vsel %vm214_vm1, %v1851_v1, %v6941_v3 }
 0x508   :  { %v2715_v34 = vld [vmem:[#allocation4 + $0xa8] sm:$0xff]  ;;  %2537 = vst [vmem:[#allocation4 + $0x238] sm:$0xf0] %v2523_v52  ;;  %2538 = vst [vmem:[#allocation4 + $0x240] sm:$0xf0] %v2524_v24  ;;  %2665 = vrot.lane.b32.xlu1 %v5381_v20, %s4620_s25 }
 0x509   :  { %1875 = vst [vmem:[#allocation4 + $0xc0] sm:$0xf0] %v1861_v61  ;;  %1876 = vst [vmem:[#allocation4 + $0xc8] sm:$0xf0] %v1862_v28  ;;  %v4389_v10 = vpack.c.bf16 %v2715_v34, %v2708_v30 }
 0x50a   :  { %v2610_v33 = vpop.permute.xlu0 %2609  ;;  %v1945_v58 = vpop.permute.xlu1 %1944 }
 0x50b   :  { %4390 = vmatpush1.bf16.msra.mxu0 %v4389_v10  ;;  %v2623_v63 = vsel %vm2621_vm9, %v6942_v8, %v2610_v33  ;;  %v2624_v15 = vsel %vm2621_vm9, %v2610_v33, %v6943_v43  ;;  %v1958_v26 = vsel %vm1956_vm13, %v6944_v13, %v1945_v58  ;;  %v1959_v20 = vsel %vm1956_vm13, %v1945_v58, %v6945_v37  ;;  %v6948_v10 = vld [vmem:[#allocation48_spill] sm:$0xff] }
 0x50c   :  { %2637 = vst [vmem:[#allocation4 + $0x270] sm:$0xf0] %v2623_v63  ;;  %2638 = vst [vmem:[#allocation4 + $0x278] sm:$0xf0] %v2624_v15  ;;  %2669 = vrot.lane.b32.xlu1 %v2654_v46, %s4620_s25  ;;  %v2711_v22 = vld [vmem:[#allocation4 + $0x88] sm:$0xff]  ;;  %v6949_v63 = vld [vmem:[#allocation45_spill] sm:$0xff] }
 0x50d   :  { %1972 = vst [vmem:[#allocation4 + $0xe8] sm:$0xf0] %v1958_v26  ;;  %1973 = vst [vmem:[#allocation4 + $0xf0] sm:$0xf0] %v1959_v20  ;;  %v6950_v15 = vld [vmem:[#allocation50_spill] sm:$0xff] }
 0x50e   :  { %v2506_v49 = vpop.permute.xlu0 %2505  ;;  %v2045_v41 = vpop.permute.xlu1 %2044 }
 0x50f   :  { %v2522_v5 = vsel %vm2521_vm2, %v2506_v49, %v6939_v42  ;;  %v2057_v44 = vsel %vm6885_vm4, %v6946_v59, %v2045_v41  ;;  %v2058_v40 = vsel %vm6885_vm4, %v2045_v41, %v6947_v57 }
 0x510   :  { %v2718_v55 = vld [vmem:[#allocation4 + $0xc0] sm:$0xff]  ;;  %2536 = vst [vmem:[#allocation4 + $0x230] sm:$0xf0] %v2522_v5  ;;  %2071 = vst [vmem:[#allocation4 + $0x120] sm:$0xf0] %v2057_v44 }
 0x511   :  { %2072 = vst [vmem:[#allocation4 + $0x128] sm:$0xf0] %v2058_v40  ;;  %v4411_v50 = vpack.c.bf16 %v2718_v55, %v2711_v22 }
 0x512   :  { %v2606_v12 = vpop.permute.xlu0 %2605  ;;  %v1941_v11 = vpop.permute.xlu1 %1940 }
 0x513   :  { %4412 = vmatprep.subr.bf16.mxu1 %v4411_v50  ;;  %v2622_v6 = vsel %vm2621_vm9, %v2606_v12, %v6942_v8  ;;  %v1957_v14 = vsel %vm1956_vm13, %v1941_v11, %v6944_v13 }
 0x514   :  { %4414 = vmatpush1.bf16.msra.mxu1 %v4413_v2  ;;  %2636 = vst [vmem:[#allocation4 + $0x268] sm:$0xf0] %v2622_v6  ;;  %1971 = vst [vmem:[#allocation4 + $0xe0] sm:$0xf0] %v1957_v14  ;;  %v2723_v52 = vld [vmem:[#allocation4 + $0xe8] sm:$0xff]  ;;  %v2724_v11 = vld [vmem:[#allocation4 + $0xf0] sm:$0xff] }
 0x516   :  { %v2514_v54 = vpop.permute.xlu0 %2513  ;;  %v2041_v29 = vpop.permute.xlu1 %2040 }
 0x517   :  { %v2525_v27 = vsel %vm2521_vm2, %v6940_v4, %v2514_v54  ;;  %v2526_v1 = vsel %vm2521_vm2, %v2514_v54, %v5941_v38  ;;  %v2056_v42 = vsel %vm6885_vm4, %v2041_v29, %v6946_v59  ;;  %v2730_v24 = vld [vmem:[#allocation4 + $0x120] sm:$0xff]  ;;  %v6954_v29 = vld [vmem:[#allocation41_spill] sm:$0xff] }
 0x518   :  { %2539 = vst [vmem:[#allocation4 + $0x248] sm:$0xf0] %v2525_v27  ;;  %2540 = vst [vmem:[#allocation4 + $0x250] sm:$0xf0] %v2526_v1  ;;  %v4391_v61 = vpack.c.bf16 %v2730_v24, %v2723_v52  ;;  %v2731_v22 = vld [vmem:[#allocation4 + $0x128] sm:$0xff]  ;;  %v6956_v27 = vld [vmem:[#allocation22_spill] sm:$0xff] }
 0x519   :  { %2070 = vst [vmem:[#allocation4 + $0x118] sm:$0xf0] %v2056_v42  ;;  %v4417_v6 = vpack.c.bf16 %v2731_v22, %v2724_v11  ;;  %v2743_v24 = vld [vmem:[#allocation4 + $0x188] sm:$0xff] }
 0x51a   :  { %v2614_v28 = vpop.permute.xlu0 %2613  ;;  %4392 = vmatprep.subr.bf16.mxu0 %v4391_v61  ;;  %v1949_v30 = vpop.permute.xlu1 %1948  ;;  %v6957_v61 = vld [vmem:[#allocation42_spill] sm:$0xff] }
 0x51b   :  { %v2625_v34 = vsel %vm2621_vm9, %v6943_v43, %v2614_v28  ;;  %v2626_v4 = vsel %vm2621_vm9, %v2614_v28, %v5954_v48  ;;  %v1960_v38 = vsel %vm1956_vm13, %v6945_v37, %v1949_v30  ;;  %v1961_v46 = vsel %vm1956_vm13, %v1949_v30, %v6948_v10  ;;  %v2722_v26 = vld [vmem:[#allocation4 + $0xe0] sm:$0xff] }
 0x51c   :  { %2639 = vst [vmem:[#allocation4 + $0x280] sm:$0xf0] %v2625_v34  ;;  %2640 = vst [vmem:[#allocation4 + $0x288] sm:$0xf0] %v2626_v4  ;;  %v6958_v28 = vld [vmem:[#allocation43_spill] sm:$0xff]  ;;  %v6960_v4 = vld [vmem:[#allocation24_spill] sm:$0xff] }
 0x51d   :  { %1974 = vst [vmem:[#allocation4 + $0xf8] sm:$0xf0] %v1960_v38  ;;  %1975 = vst [vmem:[#allocation4 + $0x100] sm:$0xf0] %v1961_v46  ;;  %v6959_v34 = vld [vmem:[#allocation19_spill] sm:$0xff] }
 0x51e   :  { %v1556_v33 = vpop.permute.xlu0 %1555  ;;  %v2049_v58 = vpop.permute.xlu1 %2048 }
 0x51f   :  { %v1565_v8 = vsel %vm1559_vm8, %v5770_v60, %v1556_v33  ;;  %v1566_v43 = vsel %vm1559_vm8, %v1556_v33, %v6949_v63  ;;  %v2059_v48 = vsel %vm6885_vm4, %v6947_v57, %v2049_v58  ;;  %v2060_v13 = vsel %vm6885_vm4, %v2049_v58, %v6950_v15 }
 0x520   :  { %v2729_v37 = vld [vmem:[#allocation4 + $0x118] sm:$0xff]  ;;  %1579 = vst [vmem:[#allocation4 + $0x28] sm:$0xf0] %v1565_v8  ;;  %1580 = vst [vmem:[#allocation4 + $0x30] sm:$0xf0] %v1566_v43  ;;  %v2736_v8 = vld [vmem:[#allocation4 + $0x150] sm:$0xff] }
 0x521   :  { %2073 = vst [vmem:[#allocation4 + $0x130] sm:$0xf0] %v2059_v48  ;;  %2074 = vst [vmem:[#allocation4 + $0x138] sm:$0xf0] %v2060_v13  ;;  %v4393_v20 = vpack.c.bf16 %v2729_v37, %v2722_v26  ;;  %v4397_v63 = vpack.c.bf16 %v2743_v24, %v2736_v8  ;;  %v2739_v13 = vld [vmem:[#allocation4 + $0x168] sm:$0xff]  ;;  %v6961_v26 = vld [vmem:[#allocation38_spill] sm:$0xff] }
 0x522   :  { %v1656_v49 = vpop.permute.xlu0 %1655  ;;  %v2114_v41 = vpop.permute.xlu1 %2113  ;;  %vm2471_vm4 = vcmask 736256  }
 0x523   :  { %4394 = vmatpush1.bf16.msra.mxu0 %v4393_v20  ;;  %v1665_v60 = vsel %vm1659_vm0, %v5781_v47, %v1656_v49  ;;  %v1666_v5 = vsel %vm1659_vm0, %v1656_v49, %v6951_v45  ;;  %v2126_v59 = vsel %vm6884_vm5, %v5698_v7, %v2114_v41  ;;  %v2127_v44 = vsel %vm6884_vm5, %v2114_v41, %v5657_v36  ;;  %v6952_v47 = vld [vmem:[#allocation39_spill] sm:$0xff]  ;;  %v6962_v20 = vld [vmem:[#allocation21_spill] sm:$0xff]  ;;  %v6964_v41 = vld [vmem:[#allocation26_spill] sm:$0xff] }
 0x524   :  { %1679 = vst [vmem:[#allocation4 + $0x60] sm:$0xf0] %v1665_v60  ;;  %1680 = vst [vmem:[#allocation4 + $0x68] sm:$0xf0] %v1666_v5  ;;  %v2725_v36 = vld [vmem:[#allocation4 + $0xf8] sm:$0xff]  ;;  %vm6953_vm0 = vcmask 171008  }
 0x525   :  { %2140 = vst [vmem:[#allocation4 + $0x158] sm:$0xf0] %v2126_v59  ;;  %2141 = vst [vmem:[#allocation4 + $0x160] sm:$0xf0] %v2127_v44 }
 0x526   :  { %v1704_v57 = vpop.permute.xlu0 %1703  ;;  %v2213_v40 = vpop.permute.xlu1 %2212  ;;  %vm6955_vm8 = vmmov %vm6953_vm0 }
 0x527   :  { %v1714_v55 = vsel %vm1709_vm14, %v5593_v53, %v1704_v57  ;;  %v1715_v50 = vsel %vm1709_vm14, %v1704_v57, %v6952_v47  ;;  %v2226_v23 = vsel %vm2224_vm10, %v5705_v35, %v2213_v40  ;;  %v2227_v7 = vsel %vm2224_vm10, %v2213_v40, %v5664_v9  ;;  %vm6973_vm5 = vmmov %vm6971_vm7 }
 0x528   :  { %v2732_v2 = vld [vmem:[#allocation4 + $0x130] sm:$0xff]  ;;  %1728 = vst [vmem:[#allocation4 + $0x90] sm:$0xf] %v1714_v55  ;;  %1729 = vst [vmem:[#allocation4 + $0x98] sm:$0xf] %v1715_v50  ;;  %vm2671_vm10 = vcmask 703488  }
 0x529   :  { %2240 = vst [vmem:[#allocation4 + $0x190] sm:$0xf0] %v2226_v23  ;;  %2241 = vst [vmem:[#allocation4 + $0x198] sm:$0xf0] %v2227_v7  ;;  %v4415_v12 = vpack.c.bf16 %v2732_v2, %v2725_v36  ;;  %v6966_v55 = vld [vmem:[#allocation40_spill] sm:$0xff] }
 0x52a   :  { %v1804_v14 = vpop.permute.xlu0 %1803  ;;  %v2165_v53 = vpop.permute.xlu1 %2164  ;;  %v6967_v7 = vld [vmem:[#allocation28_spill] sm:$0xff] }
 0x52b   :  { %4416 = vmatprep.subr.bf16.mxu1 %v4415_v12  ;;  %v1813_v54 = vsel %vm6953_vm0, %v5601_v51, %v1804_v14  ;;  %v1814_v35 = vsel %vm6955_vm8, %v1804_v14, %v6954_v29  ;;  %v2177_v9 = vsel %vm2174_vm15, %v5642_v39, %v2165_v53  ;;  %v2178_v1 = vsel %vm2174_vm15, %v2165_v53, %v6956_v27  ;;  %v6969_v14 = vld [vmem:[#allocation49_spill] sm:$0xff] }
 0x52c   :  { %4418 = vmatpush1.bf16.msra.mxu1 %v4417_v6  ;;  %1827 = vst [vmem:[#allocation4 + $0xc8] sm:$0xf] %v1813_v54  ;;  %1828 = vst [vmem:[#allocation4 + $0xd0] sm:$0xf] %v1814_v35  ;;  %v2737_v46 = vld [vmem:[#allocation4 + $0x158] sm:$0xff]  ;;  %vm6963_vm0 = vcmask 875520  }
 0x52d   :  { %2191 = vst [vmem:[#allocation4 + $0x198] sm:$0xf] %v2177_v9  ;;  %2192 = vst [vmem:[#allocation4 + $0x1a0] sm:$0xf] %v2178_v1  ;;  %v2738_v5 = vld [vmem:[#allocation4 + $0x160] sm:$0xff]  ;;  %v6972_v35 = vld [vmem:[#allocation30_spill] sm:$0xff] }
 0x52e   :  { %v2662_v42 = vpop.permute.xlu0 %2661  ;;  %v2261_v52 = vpop.permute.xlu1 %2260  ;;  %vm6965_vm8 = vmmov %vm6963_vm0 }
 0x52f   :  { %v2674_v51 = vsel %vm2671_vm10, %v6957_v61, %v2662_v42  ;;  %v2675_v30 = vsel %vm2671_vm10, %v2662_v42, %v6958_v28  ;;  %v2274_v39 = vsel %vm670_vm6, %v6959_v34, %v2261_v52  ;;  %v2275_v38 = vsel %vm670_vm6, %v2261_v52, %v6960_v4 }
 0x530   :  { %v2744_v33 = vld [vmem:[#allocation4 + $0x190] sm:$0xff]  ;;  %2688 = vst [vmem:[#allocation4 + $0x2b0] sm:$0xf] %v2674_v51  ;;  %2689 = vst [vmem:[#allocation4 + $0x2b8] sm:$0xf] %v2675_v30 }
 0x531   :  { %2288 = vst [vmem:[#allocation4 + $0x1c0] sm:$0xf] %v2274_v39  ;;  %2289 = vst [vmem:[#allocation4 + $0x1c8] sm:$0xf] %v2275_v38  ;;  %v4395_v58 = vpack.c.bf16 %v2744_v33, %v2737_v46  ;;  %v6975_v39 = vld [vmem:[#allocation51_spill] sm:$0xff]  ;;  %v6978_v33 = vld [vmem:[#allocation32_spill] sm:$0xff] }
 0x532   :  { %v1508_v43 = vpop.permute.xlu0 %1507  ;;  %v2359_v48 = vpop.permute.xlu1 %2358  ;;  %v6977_v38 = vld [vmem:[#allocation27_spill] sm:$0xff] }
 0x533   :  { %4396 = vmatprep.subr.bf16.mxu0 %v4395_v58  ;;  %v1516_v37 = vsel %vm1509_vm11, %v6961_v26, %v1508_v43  ;;  %v2372_v49 = vsel %vm6963_vm0, %v6962_v20, %v2359_v48  ;;  %v2373_v60 = vsel %vm6965_vm8, %v2359_v48, %v6964_v41  ;;  %vm6968_vm0 = vcmask 154624   ;;  %v6979_v48 = vld [vmem:[#allocation29_spill] sm:$0xff] }
 0x534   :  { %4398 = vmatpush1.bf16.msra.mxu0 %v4397_v63  ;;  %v2746_v45 = vld [vmem:[#allocation4 + $0x1a0] sm:$0xff]  ;;  %v2745_v59 = vld [vmem:[#allocation4 + $0x198] sm:$0xff]  ;;  %1530 = vst [vmem:[#allocation4 + $0x30] sm:$0xf] %v1516_v37  ;;  %2386 = vst [vmem:[#allocation4 + $0x1f8] sm:$0xf] %v2372_v49 }
 0x535   :  { %2387 = vst [vmem:[#allocation4 + $0x200] sm:$0xf] %v2373_v60  ;;  %v4419_v44 = vpack.c.bf16 %v2746_v45, %v2739_v13  ;;  %v4421_v57 = vpack.c.bf16 %v2745_v59, %v2738_v5  ;;  %vm6970_vm8 = vmmov %vm6968_vm0  ;;  %v6980_v37 = vld [vmem:[#allocation34_spill] sm:$0xff] }
 0x536   :  { %v1608_v40 = vpop.permute.xlu0 %1607  ;;  %v2265_v22 = vpop.permute.xlu1 %2264 }
 0x537   :  { %4420 = vmatprep.subr.bf16.mxu1 %v4419_v44  ;;  %v1616_v50 = vsel %vm1609_vm12, %v6966_v55, %v1608_v40  ;;  %v2276_v23 = vsel %vm670_vm6, %v6960_v4, %v2265_v22  ;;  %v2277_v36 = vsel %vm670_vm6, %v2265_v22, %v6967_v7  ;;  %v6982_v40 = vld [vmem:[#allocation35_spill] sm:$0xff] }
 0x538   :  { %4422 = vmatpush1.bf16.msra.mxu1 %v4421_v57  ;;  %1630 = vst [vmem:[#allocation4 + $0x68] sm:$0xf] %v1616_v50  ;;  %2290 = vst [vmem:[#allocation4 + $0x1d0] sm:$0xf] %v2276_v23  ;;  %v2751_v11 = vld [vmem:[#allocation4 + $0x1c8] sm:$0xff]  ;;  %v2750_v42 = vld [vmem:[#allocation4 + $0x1c0] sm:$0xff] }
 0x539   :  { %2291 = vst [vmem:[#allocation4 + $0x1d8] sm:$0xf] %v2277_v36 }
 0x53a   :  { %v1902_v2 = vpop.permute.xlu0 %1901  ;;  %v2363_v12 = vpop.permute.xlu1 %2362 }
 0x53b   :  { %v1911_v6 = vsel %vm6968_vm0, %v5625_v56, %v1902_v2  ;;  %v1912_v53 = vsel %vm6970_vm8, %v1902_v2, %v6969_v14  ;;  %v2374_v54 = vsel %vm6971_vm7, %v6964_v41, %v2363_v12  ;;  %v2375_v9 = vsel %vm6973_vm5, %v2363_v12, %v6972_v35  ;;  %v2757_v52 = vld [vmem:[#allocation4 + $0x1f8] sm:$0xff] }
 0x53c   :  { %v2758_v1 = vld [vmem:[#allocation4 + $0x200] sm:$0xff]  ;;  %1925 = vst [vmem:[#allocation4 + $0x100] sm:$0xf] %v1911_v6  ;;  %1926 = vst [vmem:[#allocation4 + $0x108] sm:$0xf] %v1912_v53  ;;  %v4401_v51 = vpack.c.bf16 %v2757_v52, %v2750_v42  ;;  %vm6974_vm0 = vcmask 15360  }
 0x53d   :  { %2388 = vst [vmem:[#allocation4 + $0x208] sm:$0xf] %v2374_v54  ;;  %2389 = vst [vmem:[#allocation4 + $0x210] sm:$0xf] %v2375_v9  ;;  %v4399_v24 = vpack.c.bf16 %v2758_v1, %v2751_v11  ;;  %vm2571_vm5 = vcmask 719872   ;;  %vm6981_vm8 = vcmask 171008  }
 0x53e   :  { %v2001_v56 = vpop.permute.xlu0 %2000  ;;  %v2458_v30 = vpop.permute.xlu1 %2457  ;;  %vm6976_vm7 = vmmov %vm6974_vm0  ;;  %v6983_v11 = vld [vmem:[#allocation36_spill] sm:$0xff] }
 0x53f   :  { %4400 = vmatprep.subr.bf16.mxu0 %v4399_v24  ;;  %v2011_v34 = vsel %vm6974_vm0, %v5635_v18, %v2001_v56  ;;  %v2012_v4 = vsel %vm6976_vm7, %v2001_v56, %v6975_v39  ;;  %v2472_v46 = vsel %vm2471_vm4, %v6977_v38, %v2458_v30  ;;  %v2473_v58 = vsel %vm2471_vm4, %v2458_v30, %v6978_v33  ;;  %v2752_v41 = vld [vmem:[#allocation4 + $0x1d0] sm:$0xff] }
 0x540   :  { %4402 = vmatpush1.bf16.msra.mxu0 %v4401_v51  ;;  %2025 = vst [vmem:[#allocation4 + $0x138] sm:$0xf] %v2011_v34  ;;  %2026 = vst [vmem:[#allocation4 + $0x140] sm:$0xf] %v2012_v4  ;;  %v2753_v43 = vld [vmem:[#allocation4 + $0x1d8] sm:$0xff] }
 0x541   :  { %2486 = vst [vmem:[#allocation4 + $0x230] sm:$0xf] %v2472_v46  ;;  %2487 = vst [vmem:[#allocation4 + $0x238] sm:$0xf] %v2473_v58 }
 0x542   :  { %v1708_v8 = vpop.permute.xlu0 %1707  ;;  %v2558_v63 = vpop.permute.xlu1 %2557 }
 0x543   :  { %v1716_v18 = vsel %vm1709_vm14, %v6952_v47, %v1708_v8  ;;  %v2572_v13 = vsel %vm2571_vm5, %v6979_v48, %v2558_v63  ;;  %v2573_v20 = vsel %vm2571_vm5, %v2558_v63, %v6980_v37  ;;  %vm6984_vm14 = vcmask 154624   ;;  %v2781_v48 = vld [vmem:[#allocation4 + $0x2b8] sm:$0xf] }
 0x544   :  { %v2760_v49 = vld [vmem:[#allocation4 + $0x210] sm:$0xff]  ;;  %v2759_v60 = vld [vmem:[#allocation4 + $0x208] sm:$0xff]  ;;  %1730 = vst [vmem:[#allocation4 + $0xa0] sm:$0xf] %v1716_v18  ;;  %2586 = vst [vmem:[#allocation4 + $0x268] sm:$0xf] %v2572_v13 }
 0x545   :  { %2587 = vst [vmem:[#allocation4 + $0x270] sm:$0xf] %v2573_v20  ;;  %v4423_v45 = vpack.c.bf16 %v2760_v49, %v2753_v43  ;;  %v4425_v5 = vpack.c.bf16 %v2759_v60, %v2752_v41  ;;  %v6986_v43 = vld [vmem:[#allocation37_spill] sm:$0xff]  ;;  %v2707_v13 = vld [vmem:[#allocation4 + $0x68] sm:$0xff] }
 0x546   :  { %v1808_v59 = vpop.permute.xlu0 %1807  ;;  %v2462_v44 = vpop.permute.xlu1 %2461  ;;  %v2780_v49 = vld [vmem:[#allocation4 + $0x2b0] sm:$0xf] }
 0x547   :  { %4424 = vmatprep.subr.bf16.mxu1 %v4423_v45  ;;  %v1815_v47 = vsel %vm6981_vm8, %v6954_v29, %v1808_v59  ;;  %v2474_v57 = vsel %vm2471_vm4, %v6978_v33, %v2462_v44  ;;  %v2475_v22 = vsel %vm2471_vm4, %v2462_v44, %v6982_v40  ;;  %v6992_v44 = vmov 0.0|0.0  }
 0x548   :  { %4426 = vmatpush1.bf16.msra.mxu1 %v4425_v5  ;;  %1829 = vst [vmem:[#allocation4 + $0xd8] sm:$0xf] %v1815_v47  ;;  %2488 = vst [vmem:[#allocation4 + $0x240] sm:$0xf] %v2474_v57  ;;  %v2765_v36 = vld [vmem:[#allocation4 + $0x238] sm:$0xff]  ;;  %v2764_v54 = vld [vmem:[#allocation4 + $0x230] sm:$0xff] }
 0x549   :  { %2489 = vst [vmem:[#allocation4 + $0x248] sm:$0xf] %v2475_v22  ;;  %v6990_v5 = vld [vmem:[#allocation52_spill] sm:$0xff] }
 0x54a   :  { %v2169_v50 = vpop.permute.xlu0 %2168  ;;  %v2562_v23 = vpop.permute.xlu1 %2561 }
 0x54b   :  { %v2179_v2 = vsel %vm2174_vm15, %v6956_v27, %v2169_v50  ;;  %v2180_v12 = vsel %vm2174_vm15, %v2169_v50, %v5511_v32  ;;  %v2574_v29 = vsel %vm2571_vm5, %v6980_v37, %v2562_v23  ;;  %v2575_v6 = vsel %vm2571_vm5, %v2562_v23, %v6983_v11  ;;  %v2771_v9 = vld [vmem:[#allocation4 + $0x268] sm:$0xff]  ;;  %vm6985_vm15 = vmmov %vm6974_vm0  ;;  %v6994_v23 = vld [vmem:[#allocation53_spill] sm:$0xff] }
 0x54c   :  { %v2772_v53 = vld [vmem:[#allocation4 + $0x270] sm:$0xff]  ;;  %2193 = vst [vmem:[#allocation4 + $0x1a8] sm:$0xf] %v2179_v2  ;;  %2194 = vst [vmem:[#allocation4 + $0x1b0] sm:$0xf] %v2180_v12  ;;  %v4405_v42 = vpack.c.bf16 %v2771_v9, %v2764_v54  ;;  %vm6988_vm0 = vcmask 875520  }
 0x54d   :  { %2588 = vst [vmem:[#allocation4 + $0x278] sm:$0xf] %v2574_v29  ;;  %2589 = vst [vmem:[#allocation4 + $0x280] sm:$0xf] %v2575_v6  ;;  %v4403_v1 = vpack.c.bf16 %v2772_v53, %v2765_v36 }
 0x54e   :  { %v1906_v52 = vpop.permute.xlu0 %1905  ;;  %v1504_v27 = vpop.permute.xlu1 %1503  ;;  %vm6989_vm7 = vmmov %vm6988_vm0 }
 0x54f   :  { %4404 = vmatprep.subr.bf16.mxu0 %v4403_v1  ;;  %v1913_v32 = vsel %vm6984_vm14, %v6969_v14, %v1906_v52  ;;  %v1514_v24 = vsel %vm1509_vm11, %v5563_v19, %v1504_v27  ;;  %v1515_v51 = vsel %vm1509_vm11, %v1504_v27, %v6961_v26  ;;  %v2766_v46 = vld [vmem:[#allocation4 + $0x240] sm:$0xff]  ;;  %vm6987_vm11 = vcmask 1043456  }
 0x550   :  { %4406 = vmatpush1.bf16.msra.mxu0 %v4405_v42  ;;  %1927 = vst [vmem:[#allocation4 + $0x110] sm:$0xf] %v1913_v32  ;;  %1528 = vst [vmem:[#allocation4 + $0x20] sm:$0xf] %v1514_v24  ;;  %v2767_v34 = vld [vmem:[#allocation4 + $0x248] sm:$0xff]  ;;  %vm4621_vm14 = vmmov 0  }
 0x551   :  { %1529 = vst [vmem:[#allocation4 + $0x28] sm:$0xf] %v1515_v51  ;;  %vm6991_vm8 = vmmov %vm6987_vm11  ;;  %v2719_v32 = vld [vmem:[#allocation4 + $0xc8] sm:$0xff]  ;;  %v6998_v51 = vld [vmem:[#allocation54_spill] sm:$0xff] }
 0x552   :  { %v2005_v56 = vpop.permute.xlu0 %2004  ;;  %v1604_v30 = vpop.permute.xlu1 %1603 }
 0x553   :  { %v2013_v4 = vsel %vm6985_vm15, %v6975_v39, %v2005_v56  ;;  %v1614_v38 = vsel %vm1609_vm12, %v5569_v25, %v1604_v30  ;;  %v1615_v14 = vsel %vm1609_vm12, %v1604_v30, %v6966_v55  ;;  %vm2785_vm12 = vcmask 818176  }
 0x554   :  { %v2774_v19 = vld [vmem:[#allocation4 + $0x280] sm:$0xff]  ;;  %v2773_v33 = vld [vmem:[#allocation4 + $0x278] sm:$0xff]  ;;  %2027 = vst [vmem:[#allocation4 + $0x148] sm:$0xf] %v2013_v4  ;;  %1628 = vst [vmem:[#allocation4 + $0x58] sm:$0xf] %v1614_v38 }
 0x555   :  { %1629 = vst [vmem:[#allocation4 + $0x60] sm:$0xf] %v1615_v14  ;;  %v4427_v26 = vpack.c.bf16 %v2774_v19, %v2767_v34  ;;  %v4429_v58 = vpack.c.bf16 %v2773_v33, %v2766_v46  ;;  %v2712_v4 = vld [vmem:[#allocation4 + $0x90] sm:$0xff]  ;;  %v7000_v19 = vld [vmem:[#allocation12_spill] sm:$0xff] }
 0x556   :  { %v2269_v8 = vpop.permute.xlu0 %2268  ;;  %v2658_v63 = vpop.permute.xlu1 %2657  ;;  %v4437_v38 = vpack.c.bf16 %v2719_v32, %v2712_v4 }
 0x557   :  { %4428 = vmatprep.subr.bf16.mxu1 %v4427_v26  ;;  %v2278_v39 = vsel %vm670_vm6, %v6967_v7, %v2269_v8  ;;  %v2279_v25 = vsel %vm670_vm6, %v2269_v8, %v5519_v17  ;;  %v2672_v55 = vsel %vm2671_vm10, %v6986_v43, %v2658_v63  ;;  %v2673_v18 = vsel %vm2671_vm10, %v2658_v63, %v6957_v61  ;;  %v6278_v7 = vld [vmem:[%s6819_s5] sm:$0xff]  ;;  %v2700_v17 = vld [vmem:[#allocation4 + $0x30] sm:$0xff] }
 0x558   :  { %4430 = vmatpush1.bf16.msra.mxu1 %v4429_v58  ;;  %2292 = vst [vmem:[#allocation4 + $0x1e0] sm:$0xf] %v2278_v39  ;;  %2293 = vst [vmem:[#allocation4 + $0x1e8] sm:$0xf] %v2279_v25  ;;  %v4456_v61 = vpack.c.bf16 %v2707_v13, %v2700_v17  ;;  %v2699_v29 = vld [vmem:[#allocation4 + $0x28] sm:$0xff]  ;;  %v2698_v53 = vld [vmem:[#allocation4 + $0x20] sm:$0xff] }
 0x559   :  { %2686 = vst [vmem:[#allocation4 + $0x2a0] sm:$0xf] %v2672_v55  ;;  %2687 = vst [vmem:[#allocation4 + $0x2a8] sm:$0xf] %v2673_v18  ;;  %4157 = vmatprep.subr.msk.mxu1 %vm6987_vm11, %v2781_v48  ;;  %v2733_v26 = vld [vmem:[#allocation4 + $0x138] sm:$0xff]  ;;  %v2748_v58 = vld [vmem:[#allocation4 + $0x1b0] sm:$0xff] }
 0x55a   :  { %v2367_v37 = vpop.permute.xlu0 %2366  ;;  %v1756_v20 = vpop.permute.xlu1 %1755  ;;  %v2726_v48 = vld [vmem:[#allocation4 + $0x100] sm:$0xff]  ;;  %v2741_v17 = vld [vmem:[#allocation4 + $0x178] sm:$0xff] }
 0x55b   :  { %v2376_v41 = vsel %vm6988_vm0, %v6972_v35, %v2367_v37  ;;  %v2377_v60 = vsel %vm6989_vm7, %v2367_v37, %v5527_v31  ;;  %v1765_v45 = vsel %vm1759_vm3, %v6938_v16, %v1756_v20  ;;  %v1766_v59 = vsel %vm1759_vm3, %v1756_v20, %v6990_v5  ;;  %v2705_v57 = vld [vmem:[#allocation4 + $0x58] sm:$0xff]  ;;  %vm6995_vm3 = vmmov %vm6991_vm8 }
 0x55c   :  { %4158 = vmatpush1.msk.msra.mxu1 %vm6991_vm8, %v2780_v49  ;;  %2390 = vst [vmem:[#allocation4 + $0x218] sm:$0xf] %v2376_v41  ;;  %2391 = vst [vmem:[#allocation4 + $0x220] sm:$0xf] %v2377_v60  ;;  %v2706_v35 = vld [vmem:[#allocation4 + $0x60] sm:$0xff]  ;;  %v6993_v31 = vmov 0.0   ;;  %v4433_v54 = vpack.c.bf16 %v2705_v57, %v2698_v53  ;;  %v4441_v13 = vpack.c.bf16 %v2733_v26, %v2726_v48  ;;  %v4443_v49 = vpack.c.bf16 %v2748_v58, %v2741_v17 }
 0x55d   :  { %1779 = vst [vmem:[#allocation4 + $0x98] sm:$0xf0] %v1765_v45  ;;  %1780 = vst [vmem:[#allocation4 + $0xa0] sm:$0xf0] %v1766_v59  ;;  %4455 = vmatprep.subr.bf16.mxu1 %v6992_v44  ;;  %4159 = vmatmul.mubr.msk.f32.vlgmr.msra.gmra.mrb[4].mxu1 %vm2785_vm12, %v6278_v7  ;;  %v4431_v6 = vpack.c.bf16 %v2706_v35, %v2699_v29  ;;  %v2749_v37 = vld [vmem:[#allocation4 + $0x1b8] sm:$0xff]  ;;  %v7001_v41 = vld [vmem:[#allocation13_spill] sm:$0xff] }
 0x55e   :  { %4457 = vmatpush3.bf16.msra.mxu1 %v4456_v61  ;;  %4224 = vmatprep.mubr.msk.f32.mxu1 %vm4621_vm14, %v6993_v31  ;;  %v2520_v16 = vpop.permute.xlu0 %2519  ;;  %v1855_v47 = vpop.permute.xlu1 %1854  ;;  %vm6996_vm15 = vmmov %vm6995_vm3  ;;  %v2747_v61 = vld [vmem:[#allocation4 + $0x1a8] sm:$0xff]  ;;  %v2742_v45 = vld [vmem:[#allocation4 + $0x180] sm:$0xff] }
 0x55f   :  { %4458 = vmatprep.subr.bf16.mxu1 %v6992_v44  ;;  %v2528_v22 = vsel %vm2521_vm2, %v5871_v0, %v2520_v16  ;;  %v1863_v50 = vsel %vm214_vm1, %v6941_v3, %v1855_v47  ;;  %v1864_v36 = vsel %vm214_vm1, %v1855_v47, %v6994_v23  ;;  %vm6997_vm2 = vcmask 7168   ;;  %v2740_v35 = vld [vmem:[#allocation4 + $0x170] sm:$0xff]  ;;  %v2755_v47 = vld [vmem:[#allocation4 + $0x1e8] sm:$0xff]  ;;  %v7007_v26 = vld [vmem:[#allocation7_spill] sm:$0xff] }
 0x560   :  { %v2779_v2 = vld [vmem:[#allocation4 + $0x2a8] sm:$0xf]  ;;  %v2778_v12 = vld [vmem:[#allocation4 + $0x2a0] sm:$0xf]  ;;  %2542 = vst [vmem:[#allocation4 + $0x260] sm:$0xf0] %v2528_v22  ;;  %v4465_v59 = vpack.c.bf16 %v2749_v37, %v2742_v45  ;;  %v4445_v16 = vpack.c.bf16 %v2747_v61, %v2740_v35  ;;  %vm7016_vm7 = vmmov %vm6997_vm2 }
 0x561   :  { %1877 = vst [vmem:[#allocation4 + $0xd0] sm:$0xf0] %v1863_v50  ;;  %1878 = vst [vmem:[#allocation4 + $0xd8] sm:$0xf0] %v1864_v36  ;;  %4154 = vmatprep.subr.msk.mxu0 %vm6995_vm3, %v2779_v2  ;;  %v2763_v57 = vld [vmem:[#allocation4 + $0x228] sm:$0xff]  ;;  %v2756_v36 = vld [vmem:[#allocation4 + $0x1f0] sm:$0xff] }
 0x562   :  { %4155 = vmatpush1.msk.msra.mxu0 %vm6996_vm15, %v2778_v12  ;;  %v2620_v0 = vpop.permute.xlu0 %2619  ;;  %v1953_v9 = vpop.permute.xlu1 %1952  ;;  %v4468_v2 = vpack.c.bf16 %v2763_v57, %v2756_v36  ;;  %v2754_v12 = vld [vmem:[#allocation4 + $0x1e0] sm:$0xff]  ;;  %v7009_v17 = vld [vmem:[#allocation9_spill] sm:$0xff]  ;;  %vm7017_vm8 = vmmov %vm6997_vm2  ;;  %vm7020_vm15 = vcmask 1039360  }
 0x563   :  { %4432 = vmatprep.subr.bf16.mxu0 %v4431_v6  ;;  %4156 = vmatmul.mubr.msk.f32.vlgmr.msra.gmra.mrb[4].mxu0 %vm2785_vm12, %v6278_v7  ;;  %v2628_v3 = vsel %vm2621_vm9, %v5883_v21, %v2620_v0  ;;  %v1962_v1 = vsel %vm1956_vm13, %v6948_v10, %v1953_v9  ;;  %v1963_v42 = vsel %vm1956_vm13, %v1953_v9, %v5881_v62  ;;  %vm6999_vm9 = vmmov %vm6997_vm2  ;;  %v2762_v5 = vld [vmem:[#allocation4 + $0x220] sm:$0xff] }
 0x564   :  { %4434 = vmatpush1.bf16.msra.mxu0 %v4433_v54  ;;  %3016 = vmatprep.mubr.f32.mxu0 %v6993_v31  ;;  %2642 = vst [vmem:[#allocation4 + $0x298] sm:$0xf0] %v2628_v3  ;;  %1976 = vst [vmem:[#allocation4 + $0x108] sm:$0xf0] %v1962_v1  ;;  %v2713_v27 = vld [vmem:[#allocation4 + $0x98] sm:$0xff]  ;;  %v2714_v10 = vld [vmem:[#allocation4 + $0xa0] sm:$0xff]  ;;  %v4447_v50 = vpack.c.bf16 %v2762_v5, %v2755_v47 }
 0x565   :  { %1977 = vst [vmem:[#allocation4 + $0x110] sm:$0xf0] %v1963_v42  ;;  %vm7003_vm13 = vmmov %vm6995_vm3 }
 0x566   :  { %v2053_v52 = vpop.permute.xlu1 %2052  ;;  %v2668_v6 = vpop.permute.xlu0 %2667 }
 0x567   :  { %v2061_v24 = vsel %vm6997_vm2, %v6950_v15, %v2053_v52  ;;  %v2062_v21 = vsel %vm6999_vm9, %v2053_v52, %v6998_v51  ;;  %vm7022_vm9 = vmmov %vm7020_vm15 }
 0x568   :  { %v2720_v56 = vld [vmem:[#allocation4 + $0xd0] sm:$0xff]  ;;  %v2721_v30 = vld [vmem:[#allocation4 + $0xd8] sm:$0xff]  ;;  %2075 = vst [vmem:[#allocation4 + $0x140] sm:$0xf0] %v2061_v24  ;;  %2076 = vst [vmem:[#allocation4 + $0x148] sm:$0xf0] %v2062_v21 }
 0x569   :  { %v4435_v62 = vpack.c.bf16 %v2720_v56, %v2713_v27  ;;  %v4459_v34 = vpack.c.bf16 %v2721_v30, %v2714_v10 }
 0x56a   :  { %v2470_v14 = vpop.permute.xlu1 %2469 }
 0x56b   :  { %4436 = vmatprep.subr.bf16.mxu0 %v4435_v62  ;;  %4460 = vmatpush3.bf16.msra.mxu1 %v4459_v34  ;;  %v2478_v46 = vsel %vm2471_vm4, %v7000_v19, %v2470_v14  ;;  %v2727_v33 = vld [vmem:[#allocation4 + $0x108] sm:$0xff] }
 0x56c   :  { %4438 = vmatpush1.bf16.msra.mxu0 %v4437_v38  ;;  %4461 = vmatprep.subr.bf16.mxu1 %v6992_v44  ;;  %2492 = vst [vmem:[#allocation4 + $0x260] sm:$0xf] %v2478_v46  ;;  %v2728_v25 = vld [vmem:[#allocation4 + $0x110] sm:$0xff] }
 0x56d   :  { %v7005_v38 = vld [vmem:[#allocation5_spill] sm:$0xff] }
 0x56e   :  { %v2466_v15 = vpop.permute.xlu1 %2465 }
 0x56f   :  { %v2476_v8 = vsel %vm2471_vm4, %v6982_v40, %v2466_v15  ;;  %v2477_v63 = vsel %vm2471_vm4, %v2466_v15, %v7000_v19  ;;  %v2734_v39 = vld [vmem:[#allocation4 + $0x140] sm:$0xff]  ;;  %v2735_v43 = vld [vmem:[#allocation4 + $0x148] sm:$0xff]  ;;  %vm7002_vm4 = vmmov %vm6995_vm3 }
 0x570   :  { %2490 = vst [vmem:[#allocation4 + $0x250] sm:$0xf] %v2476_v8  ;;  %2491 = vst [vmem:[#allocation4 + $0x258] sm:$0xf] %v2477_v63  ;;  %v4439_v55 = vpack.c.bf16 %v2734_v39, %v2727_v33  ;;  %v4462_v18 = vpack.c.bf16 %v2735_v43, %v2728_v25  ;;  %v7006_v19 = vld [vmem:[#allocation6_spill] sm:$0xff]  ;;  %v7008_v25 = vld [vmem:[#allocation8_spill] sm:$0xff] }
 0x572   :  { %4440 = vmatprep.subr.bf16.mxu0 %v4439_v55  ;;  %4463 = vmatpush3.bf16.msra.mxu1 %v4462_v18  ;;  %v2566_v20 = vpop.permute.xlu1 %2565 }
 0x573   :  { %v2576_v40 = vsel %vm2571_vm5, %v6983_v11, %v2566_v20  ;;  %v2577_v60 = vsel %vm2571_vm5, %v2566_v20, %v7001_v41  ;;  %4442 = vmatpush1.bf16.msra.mxu0 %v4441_v13  ;;  %4464 = vmatprep.subr.bf16.mxu1 %v6992_v44  ;;  %v2761_v11 = vld [vmem:[#allocation4 + $0x218] sm:$0xff]  ;;  %v2770_v51 = vld [vmem:[#allocation4 + $0x260] sm:$0xff] }
 0x574   :  { %2590 = vst [vmem:[#allocation4 + $0x288] sm:$0xf] %v2576_v40  ;;  %2591 = vst [vmem:[#allocation4 + $0x290] sm:$0xf] %v2577_v60  ;;  %4444 = vmatprep.subr.bf16.mxu0 %v4443_v49  ;;  %v4449_v29 = vpack.c.bf16 %v2761_v11, %v2754_v12  ;;  %v7010_v49 = vld [vmem:[#allocation10_spill] sm:$0xff] }
 0x576   :  { %4466 = vmatpush3.bf16.msra.mxu1 %v4465_v59  ;;  %v2570_v22 = vpop.permute.xlu1 %2569  ;;  %v7011_v59 = vld [vmem:[#allocation11_spill] sm:$0xff] }
 0x577   :  { %v2578_v23 = vsel %vm2571_vm5, %v7001_v41, %v2570_v22  ;;  %4446 = vmatpush1.bf16.msra.mxu0 %v4445_v16  ;;  %4467 = vmatprep.subr.bf16.mxu1 %v6992_v44  ;;  %v2769_v54 = vld [vmem:[#allocation4 + $0x258] sm:$0xff]  ;;  %v2768_v1 = vld [vmem:[#allocation4 + $0x250] sm:$0xff]  ;;  %vm7012_vm5 = vcmask 171008  }
 0x578   :  { %2592 = vst [vmem:[#allocation4 + $0x298] sm:$0xf] %v2578_v23  ;;  %4448 = vmatprep.subr.bf16.mxu0 %v4447_v50  ;;  %vm7013_vm11 = vmmov %vm7012_vm5 }
 0x579   :  { %vm7018_vm14 = vmmov %vm7012_vm5 }
 0x57a   :  { %4469 = vmatpush3.bf16.msra.mxu1 %v4468_v2  ;;  %v2666_v53 = vpop.permute.xlu1 %2665 }
 0x57b   :  { %v2676_v0 = vsel %vm2671_vm10, %v6958_v28, %v2666_v53  ;;  %v2677_v9 = vsel %vm2671_vm10, %v2666_v53, %v2668_v6  ;;  %4450 = vmatpush1.bf16.msra.mxu0 %v4449_v29  ;;  %v2776_v3 = vld [vmem:[#allocation4 + $0x290] sm:$0xff]  ;;  %v2775_v42 = vld [vmem:[#allocation4 + $0x288] sm:$0xff]  ;;  %4470 = vmatprep.subr.bf16.mxu1 %v6992_v44 }
 0x57c   :  { %2690 = vst [vmem:[#allocation4 + $0x2c0] sm:$0xf] %v2676_v0  ;;  %2691 = vst [vmem:[#allocation4 + $0x2c8] sm:$0xf] %v2677_v9  ;;  %v4451_v52 = vpack.c.bf16 %v2776_v3, %v2769_v54  ;;  %v4453_v27 = vpack.c.bf16 %v2775_v42, %v2768_v1  ;;  %v3129_v0 = vld [vmem:[%s6820_s6] sm:$0xff] }
 0x57d   :  { %v3131_v1 = vld [vmem:[%s6821_s7] sm:$0xff] }
 0x57e   :  { %4452 = vmatprep.subr.bf16.mxu0 %v4451_v52  ;;  %v2670_v32 = vpop.permute.xlu1 %2669 }
 0x57f   :  { %v2678_v24 = vsel %vm2671_vm10, %v2668_v6, %v2670_v32  ;;  %4454 = vmatpush1.bf16.msra.mxu0 %v4453_v27  ;;  %v2777_v21 = vld [vmem:[#allocation4 + $0x298] sm:$0xff]  ;;  %vm7004_vm10 = vmmov %vm6995_vm3 }
 0x580   :  { %2692 = vst [vmem:[#allocation4 + $0x2d0] sm:$0xf] %v2678_v24  ;;  %v4471_v28 = vpack.c.bf16 %v2777_v21, %v2770_v51  ;;  %vm7019_vm3 = vmmov %vm7012_vm5 }
 0x582   :  { %4472 = vmatpush3.bf16.msra.mxu1 %v4471_v28 }
 0x583   :  { %v2783_v56 = vld [vmem:[#allocation4 + $0x2c8] sm:$0xf]  ;;  %v2782_v10 = vld [vmem:[#allocation4 + $0x2c0] sm:$0xf]  ;;  %4222 = vmatprep.subr.mxu1 %v6993_v31 }
 0x584   :  { %4160 = vmatprep.subr.msk.mxu0 %vm7002_vm4, %v2783_v56  ;;  %vm7023_vm4 = vmmov %vm7016_vm7 }
 0x585   :  { %4161 = vmatpush1.msk.msra.mxu0 %vm7003_vm13, %v2782_v10 }
 0x586   :  { %4162 = vmatmul.mubr.msk.f32.vlgmr.msra.gmra.mrb[6].mxu0 %vm2785_vm12, %v6278_v7 }
 0x587   :  { %v2784_v44 = vld [vmem:[#allocation4 + $0x2d0] sm:$0xf]  ;;  %3746 = vmatprep.mubr.f32.mxu0 %v6993_v31 }
 0x588   :  { %4223 = vmatpush3.msk.msra.mxu1 %vm7004_vm10, %v2784_v44  ;;  %vm7025_vm10 = vmmov %vm7023_vm4 }
 0x589   :  { %4225 = vmatmul.mubr.msk.f32.vlgmr.msra.gmra.mrb[6].mxu1 %vm2785_vm12, %v6278_v7  ;;  %vm7014_vm12 = vcmask 154624  }
 0x58a   :  { %3823 = vmatprep.mubr.f32.mxu1 %v6993_v31  ;;  %vm7015_vm0 = vmmov %vm7014_vm12 }
 0x58b   :  { %vm7021_vm2 = vmmov %vm7015_vm0 }
 0x58c   :  { %vm7024_vm13 = vmmov %vm7015_vm0 }
 0x630   :  { %v2947_v30 = vpop.f32.mrb[4].mxu1 }
 0x631   :  { %v2949_v62 = vpop.f32.mrb[5].mxu1  ;;  %v3095_v58 = vmul.f32 %v2947_v30, %v7007_v26 }
 0x632   :  { %v3096_v43 = vmul.f32 %v2949_v62, %v7008_v25 }
 0x633   :  { %v3111_v39 = vmul.f32 %v3095_v58, %v3095_v58 }
 0x634   :  { %v3112_v18 = vmul.f32 %v3096_v43, %v3096_v43 }
 0x636   :  { %v2876_v34 = vpop.f32.mrb[4].mxu0 }
 0x637   :  { %v2878_v4 = vpop.f32.mrb[5].mxu0  ;;  %v3093_v14 = vmul.f32 %v2876_v34, %v7005_v38 }
 0x638   :  { %v3094_v46 = vmul.f32 %v2878_v4, %v7006_v19 }
 0x639   :  { %v3109_v15 = vmul.f32 %v3093_v14, %v3093_v14 }
 0x63a   :  { %v3110_v33 = vmul.f32 %v3094_v46, %v3094_v46  ;;  %v3100_v8 = vadd.f32 %v3094_v46, %v3093_v14 }
 0x63c   :  { %v3116_v63 = vadd.f32 %v3110_v33, %v3109_v15  ;;  %v3101_v7 = vadd.f32 %v3100_v8, %v3095_v58 }
 0x63e   :  { %v3117_v55 = vadd.f32 %v3116_v63, %v3111_v39  ;;  %v3102_v13 = vadd.f32 %v3101_v7, %v3096_v43 }
 0x640   :  { %v3118_v40 = vadd.f32 %v3117_v55, %v3112_v18 }
 0x659   :  { %v3018_v48 = vpop.f32.mrb[6].mxu0 }
 0x65a   :  { %v3097_v37 = vmul.f32 %v3018_v48, %v7009_v17  ;;  %v3020_v20 = vpop.f32.mrb[7].mxu0 }
 0x65b   :  { %v3098_v61 = vmul.f32 %v3020_v20, %v7010_v49 }
 0x65c   :  { %v3103_v41 = vadd.f32 %v3102_v13, %v3097_v37  ;;  %v3113_v60 = vmul.f32 %v3097_v37, %v3097_v37  ;;  %v3089_v45 = vpop.f32.mrb[6].mxu1 }
 0x65d   :  { %v3114_v5 = vmul.f32 %v3098_v61, %v3098_v61  ;;  %v3099_v35 = vmul.f32 %v3089_v45, %v7011_v59  ;;  %v4226_v16 = vpop.f32.mrb[7].mxu1 }
 0x65e   :  { %v3119_v47 = vadd.f32 %v3118_v40, %v3113_v60  ;;  %v3104_v57 = vadd.f32 %v3103_v41, %v3098_v61 }
 0x65f   :  { %v3115_v22 = vmul.f32 %v3099_v35, %v3099_v35 }
 0x660   :  { %v3105_v50 = vadd.f32 %v3104_v57, %v3099_v35  ;;  %v3120_v11 = vadd.f32 %v3119_v47, %v3114_v5 }
 0x662   :  { %3106 = vadd.xlane.f32.xlu0 %v3105_v50  ;;  %v3121_v23 = vadd.f32 %v3120_v11, %v3115_v22 }
 0x664   :  { %3122 = vadd.xlane.f32.xlu1 %v3121_v23 }
 0x675   :  { %3241 = vrot.lane.b32.xlu1 %v6993_v31, %s4595_s19 }
 0x678   :  { %3188 = vrot.lane.b32.xlu0 %v6993_v31, %s4594_s23 }
 0x679   :  { %3347 = vrot.lane.b32.xlu1 %v6993_v31, %s4597_s21 }
 0x67c   :  { %3294 = vrot.lane.b32.xlu0 %v6993_v31, %s4596_s20 }
 0x680   :  { %3428 = vrot.lane.b32.xlu0 %v6993_v31, %s4598_s22 }
 0x6ef   :  { %v3107_v36 = vpop.xlane.xlu0 %3106 }
 0x6f0   :  { %v3108_v2 = vmul.f32 0.001953125, %v3107_v36 }
 0x6f1   :  { %v3123_v12 = vpop.xlane.xlu1 %3122 }
 0x6f2   :  { %v3125_v29 = vmul.f32 %v3108_v2, %v3108_v2  ;;  %v3124_v6 = vmul.f32 0.001953125, %v3123_v12 }
 0x6f3   :  { %v6368_v27 = vpop.permute.xlu0 %3188 }
 0x6f4   :  { %v3126_v53 = vsub.f32 %v3124_v6, %v3125_v29 }
 0x6f5   :  { %v6372_v24 = vpop.permute.xlu1 %3241 }
 0x6f6   :  { %v3127_v54 = vadd.f32 1e-05, %v3126_v53 }
 0x6f7   :  { %v6370_v32 = vpop.permute.xlu0 %3294 }
 0x6f8   :  { %4581 = vrsqrt.f32 %v3127_v54 }
 0x6f9   :  { %v6376_v21 = vpop.permute.xlu1 %3347 }
 0x6fb   :  { %v6374_v51 = vpop.permute.xlu0 %3428 }
 0x702   :  { %v4582_v9 = vpop.eup %4581 }
 0x703   :  { %v3130_v3 = vmul.f32 %v4582_v9, %v3129_v0 }
 0x705   :  { %3136 = vperm.xlu0 %4565, %v3130_v3   ;;  %v3132_v42 = vmul.f32 %v3130_v3, %v3108_v2 }
 0x707   :  { %v3133_v52 = vsub.f32 %v3131_v1, %v3132_v42 }
 0x709   :  { %3148 = vperm.xlu1 %4566, %v3133_v52  }
 0x784   :  { %v3137_v28 = vpop.permute.xlu0 %3136 }
 0x785   :  { %v3139_v56 = vmul.f32 %v3137_v28, %v3093_v14  ;;  %v3140_v10 = vmul.f32 %v3137_v28, %v3094_v46  ;;  %v3141_v44 = vmul.f32 %v3137_v28, %v3095_v58  ;;  %v3142_v30 = vmul.f32 %v3137_v28, %v3096_v43 }
 0x786   :  { %v3143_v62 = vmul.f32 %v3137_v28, %v3097_v37  ;;  %v3144_v34 = vmul.f32 %v3137_v28, %v3098_v61  ;;  %v3145_v39 = vmul.f32 %v3137_v28, %v3099_v35 }
 0x788   :  { %v3149_v4 = vpop.permute.xlu1 %3148 }
 0x789   :  { %v3151_v15 = vmul.f32 %v3149_v4, %v7005_v38  ;;  %v3152_v33 = vmul.f32 %v3149_v4, %v7006_v19  ;;  %v3153_v8 = vmul.f32 %v3149_v4, %v7007_v26  ;;  %v3154_v63 = vmul.f32 %v3149_v4, %v7008_v25 }
 0x78a   :  { %v3155_v7 = vmul.f32 %v3149_v4, %v7009_v17  ;;  %v3156_v55 = vmul.f32 %v3149_v4, %v7010_v49  ;;  %v3157_v14 = vmul.f32 %v3149_v4, %v7011_v59 }
 0x78b   :  { %v6385_v46 = vadd.f32 %v3151_v15, %v3139_v56  ;;  %v6387_v58 = vadd.f32 %v3152_v33, %v3140_v10  ;;  %v6389_v43 = vadd.f32 %v3153_v8, %v3141_v44  ;;  %v6391_v18 = vadd.f32 %v3154_v63, %v3142_v30 }
 0x78c   :  { %v6393_v48 = vadd.f32 %v3155_v7, %v3143_v62  ;;  %v6395_v13 = vadd.f32 %v3156_v55, %v3144_v34  ;;  %v6397_v37 = vadd.f32 %v3157_v14, %v3145_v39 }
 0x78d   :  { %3391 = vst [vmem:[#allocation4 + $0xe0] sm:$0xff] %v6385_v46  ;;  %3392 = vst [vmem:[#allocation4 + $0xe8] sm:$0xff] %v6387_v58  ;;  %3192 = vrot.lane.b32.xlu1 %v6387_v58, %s4594_s23  ;;  %3190 = vrot.lane.b32.xlu0 %v6385_v46, %s4594_s23 }
 0x78e   :  { %3393 = vst [vmem:[#allocation4 + $0xf0] sm:$0xff] %v6389_v43  ;;  %3394 = vst [vmem:[#allocation4 + $0xf8] sm:$0xff] %v6391_v18 }
 0x78f   :  { %3395 = vst [vmem:[#allocation4 + $0x100] sm:$0xff] %v6393_v48  ;;  %3396 = vst [vmem:[#allocation4 + $0x108] sm:$0xff] %v6395_v13 }
 0x790   :  { %3397 = vst [vmem:[#allocation4 + $0x110] sm:$0xff] %v6397_v37 }
 0x791   :  { %3245 = vrot.lane.b32.xlu1 %v6387_v58, %s4595_s19  ;;  %3243 = vrot.lane.b32.xlu0 %v6385_v46, %s4595_s19 }
 0x795   :  { %3298 = vrot.lane.b32.xlu1 %v6387_v58, %s4596_s20  ;;  %3296 = vrot.lane.b32.xlu0 %v6385_v46, %s4596_s20 }
 0x799   :  { %3351 = vrot.lane.b32.xlu1 %v6387_v58, %s4597_s21  ;;  %3349 = vrot.lane.b32.xlu0 %v6385_v46, %s4597_s21 }
 0x79d   :  { %3196 = vrot.lane.b32.xlu1 %v6391_v18, %s4594_s23  ;;  %3194 = vrot.lane.b32.xlu0 %v6389_v43, %s4594_s23 }
 0x7a1   :  { %3249 = vrot.lane.b32.xlu1 %v6391_v18, %s4595_s19  ;;  %3247 = vrot.lane.b32.xlu0 %v6389_v43, %s4595_s19 }
 0x7a5   :  { %3418 = vrot.lane.b32.xlu1 %v6389_v43, %s4598_s22  ;;  %3416 = vrot.lane.b32.xlu0 %v6387_v58, %s4598_s22 }
 0x7a9   :  { %3300 = vrot.lane.b32.xlu1 %v6389_v43, %s4596_s20  ;;  %3414 = vrot.lane.b32.xlu0 %v6385_v46, %s4598_s22 }
 0x7ad   :  { %3353 = vrot.lane.b32.xlu1 %v6389_v43, %s4597_s21  ;;  %3302 = vrot.lane.b32.xlu0 %v6391_v18, %s4596_s20 }
 0x7b1   :  { %3469 = vrot.lane.b32.xlu1 %v6387_v58, %s4599_s28  ;;  %3355 = vrot.lane.b32.xlu0 %v6391_v18, %s4597_s21 }
 0x7b5   :  { %3522 = vrot.lane.b32.xlu1 %v6387_v58, %s4600_s29  ;;  %3471 = vrot.lane.b32.xlu0 %v6389_v43, %s4599_s28 }
 0x7b9   :  { %3467 = vrot.lane.b32.xlu1 %v6385_v46, %s4599_s28  ;;  %3524 = vrot.lane.b32.xlu0 %v6389_v43, %s4600_s29 }
 0x7bd   :  { %3420 = vrot.lane.b32.xlu1 %v6391_v18, %s4598_s22  ;;  %3520 = vrot.lane.b32.xlu0 %v6385_v46, %s4600_s29 }
 0x7c1   :  { %3198 = vrot.lane.b32.xlu1 %v6393_v48, %s4594_s23  ;;  %3422 = vrot.lane.b32.xlu0 %v6393_v48, %s4598_s22 }
 0x7c5   :  { %3251 = vrot.lane.b32.xlu1 %v6393_v48, %s4595_s19  ;;  %3200 = vrot.lane.b32.xlu0 %v6395_v13, %s4594_s23 }
 0x7c9   :  { %3575 = vrot.lane.b32.xlu1 %v6387_v58, %s4601_s30  ;;  %3253 = vrot.lane.b32.xlu0 %v6395_v13, %s4595_s19 }
 0x7cd   :  { %3473 = vrot.lane.b32.xlu1 %v6391_v18, %s4599_s28  ;;  %3577 = vrot.lane.b32.xlu0 %v6389_v43, %s4601_s30 }
 0x7d1   :  { %3526 = vrot.lane.b32.xlu1 %v6391_v18, %s4600_s29  ;;  %3475 = vrot.lane.b32.xlu0 %v6393_v48, %s4599_s28 }
 0x7d5   :  { %3573 = vrot.lane.b32.xlu1 %v6385_v46, %s4601_s30  ;;  %3528 = vrot.lane.b32.xlu0 %v6393_v48, %s4600_s29 }
 0x7d9   :  { %3306 = vrot.lane.b32.xlu1 %v6395_v13, %s4596_s20  ;;  %3304 = vrot.lane.b32.xlu0 %v6393_v48, %s4596_s20 }
 0x7dd   :  { %3359 = vrot.lane.b32.xlu1 %v6395_v13, %s4597_s21  ;;  %3357 = vrot.lane.b32.xlu0 %v6393_v48, %s4597_s21 }
 0x7e1   :  { %3255 = vrot.lane.b32.xlu1 %v6397_v37, %s4595_s19  ;;  %3202 = vrot.lane.b32.xlu0 %v6397_v37, %s4594_s23 }
 0x7e5   :  { %3581 = vrot.lane.b32.xlu1 %v6393_v48, %s4601_s30  ;;  %3579 = vrot.lane.b32.xlu0 %v6391_v18, %s4601_s30 }
 0x7e9   :  { %3426 = vrot.lane.b32.xlu1 %v6397_v37, %s4598_s22  ;;  %3424 = vrot.lane.b32.xlu0 %v6395_v13, %s4598_s22 }
 0x7ed   :  { %3361 = vrot.lane.b32.xlu1 %v6397_v37, %s4597_s21  ;;  %3308 = vrot.lane.b32.xlu0 %v6397_v37, %s4596_s20 }
 0x7f1   :  { %3479 = vrot.lane.b32.xlu1 %v6397_v37, %s4599_s28  ;;  %3477 = vrot.lane.b32.xlu0 %v6395_v13, %s4599_s28 }
 0x7f5   :  { %3532 = vrot.lane.b32.xlu1 %v6397_v37, %s4600_s29  ;;  %3530 = vrot.lane.b32.xlu0 %v6395_v13, %s4600_s29 }
 0x7f9   :  { %3583 = vrot.lane.b32.xlu1 %v6395_v13, %s4601_s30  ;;  %3585 = vrot.lane.b32.xlu0 %v6397_v37, %s4601_s30 }
 0x7fd   :  { %3481 = vrot.lane.b32.xlu1 %v6993_v31, %s4599_s28  ;;  %3534 = vrot.lane.b32.xlu0 %v6993_v31, %s4600_s29 }
 0x7ff   :  { %v3193_v20 = vpop.permute.xlu1 %3192  ;;  %v3191_v61 = vpop.permute.xlu0 %3190 }
 0x800   :  { %v3204_v40 = vsel %vm7012_vm5, %v6368_v27, %v3191_v61  ;;  %v3205_v41 = vsel %vm7013_vm11, %v3191_v61, %v3193_v20  ;;  %vm7026_vm5 = vcmask 883712   ;;  %vm7027_vm11 = vmmov %vm7022_vm9 }
 0x801   :  { %3218 = vst [vmem:[#allocation4] sm:$0xff] %v3204_v40  ;;  %3219 = vst [vmem:[#allocation4 + $0x8] sm:$0xff] %v3205_v41  ;;  %3587 = vrot.lane.b32.xlu1 %v6993_v31, %s4601_s30 }
 0x803   :  { %v3246_v60 = vpop.permute.xlu1 %3245  ;;  %v3244_v45 = vpop.permute.xlu0 %3243 }
 0x804   :  { %v3257_v5 = vsel %vm214_vm1, %v6372_v24, %v3244_v45  ;;  %v3258_v35 = vsel %vm214_vm1, %v3244_v45, %v3246_v60 }
 0x805   :  { %3271 = vst [vmem:[#allocation4 + $0x38] sm:$0xff] %v3257_v5  ;;  %3272 = vst [vmem:[#allocation4 + $0x40] sm:$0xff] %v3258_v35  ;;  %v4473_v16 = vpack.c.bf16 %v3258_v35, %v3205_v41  ;;  %v4475_v47 = vpack.c.bf16 %v3257_v5, %v3204_v40 }
 0x807   :  { %v3299_v57 = vpop.permute.xlu1 %3298  ;;  %v3297_v22 = vpop.permute.xlu0 %3296  ;;  %4474 = vmatprep.subr.bf16.mxu0 %v4473_v16 }
 0x808   :  { %v3310_v50 = vsel %vm7014_vm12, %v6370_v32, %v3297_v22  ;;  %v3311_v11 = vsel %vm7015_vm0, %v3297_v22, %v3299_v57  ;;  %4476 = vmatpush1.bf16.msra.mxu0 %v4475_v47  ;;  %vm7028_vm12 = vmmov %vm7026_vm5 }
 0x809   :  { %3324 = vst [vmem:[#allocation4 + $0x70] sm:$0xff] %v3310_v50  ;;  %3325 = vst [vmem:[#allocation4 + $0x78] sm:$0xff] %v3311_v11 }
 0x80a   :  { %vm7029_vm0 = vmmov %vm7019_vm3 }
 0x80b   :  { %v3352_v23 = vpop.permute.xlu1 %3351  ;;  %v3350_v36 = vpop.permute.xlu0 %3349 }
 0x80c   :  { %v3363_v2 = vsel %vm7016_vm7, %v6376_v21, %v3350_v36  ;;  %v3364_v12 = vsel %vm7017_vm8, %v3350_v36, %v3352_v23  ;;  %vm7030_vm7 = vmmov %vm7022_vm9 }
 0x80d   :  { %3377 = vst [vmem:[#allocation4 + $0xa8] sm:$0xff] %v3363_v2  ;;  %3378 = vst [vmem:[#allocation4 + $0xb0] sm:$0xff] %v3364_v12  ;;  %v4477_v29 = vpack.c.bf16 %v3364_v12, %v3311_v11  ;;  %v4479_v6 = vpack.c.bf16 %v3363_v2, %v3310_v50 }
 0x80e   :  { %vm7031_vm8 = vmmov %vm7029_vm0 }
 0x80f   :  { %v6536_v53 = vpop.permute.xlu1 %3196  ;;  %v3195_v54 = vpop.permute.xlu0 %3194  ;;  %4478 = vmatprep.subr.bf16.mxu0 %v4477_v29 }
 0x810   :  { %v3206_v0 = vsel %vm7018_vm14, %v3193_v20, %v3195_v54  ;;  %v3207_v9 = vsel %vm7019_vm3, %v3195_v54, %v6536_v53  ;;  %4480 = vmatpush1.bf16.msra.mxu0 %v4479_v6  ;;  %vm7032_vm14 = vcmask 875520   ;;  %vm7033_vm3 = vmmov %vm7026_vm5 }
 0x811   :  { %3220 = vst [vmem:[#allocation4 + $0x10] sm:$0xff] %v3206_v0  ;;  %3221 = vst [vmem:[#allocation4 + $0x18] sm:$0xff] %v3207_v9 }
 0x813   :  { %v6541_v3 = vpop.permute.xlu1 %3249  ;;  %v3248_v1 = vpop.permute.xlu0 %3247 }
 0x814   :  { %v3259_v42 = vsel %vm214_vm1, %v3246_v60, %v3248_v1  ;;  %v3260_v52 = vsel %vm214_vm1, %v3248_v1, %v6541_v3 }
 0x815   :  { %3273 = vst [vmem:[#allocation4 + $0x48] sm:$0xff] %v3259_v42  ;;  %3274 = vst [vmem:[#allocation4 + $0x50] sm:$0xff] %v3260_v52  ;;  %v4489_v27 = vpack.c.bf16 %v3260_v52, %v3207_v9  ;;  %v4491_v32 = vpack.c.bf16 %v3259_v42, %v3206_v0 }
 0x817   :  { %v3419_v24 = vpop.permute.xlu1 %3418  ;;  %v3417_v21 = vpop.permute.xlu0 %3416  ;;  %4490 = vmatprep.subr.bf16.mxu1 %v4489_v27 }
 0x818   :  { %v3431_v28 = vsel %vm7020_vm15, %v3417_v21, %v3419_v24  ;;  %4492 = vmatpush1.bf16.msra.mxu1 %v4491_v32  ;;  %vm3675_vm15 = vcmask 588800  }
 0x819   :  { %3445 = vst [vmem:[#allocation4 + $0x120] sm:$0xff] %v3431_v28  ;;  %v4481_v56 = vpack.c.bf16 %v3431_v28, %v6387_v58  ;;  %v6592_v28 = vld [vmem:[%s6822_s8] sm:$0xff] }
 0x81b   :  { %v3301_v10 = vpop.permute.xlu1 %3300  ;;  %v3415_v44 = vpop.permute.xlu0 %3414  ;;  %4482 = vmatprep.subr.bf16.mxu0 %v4481_v56 }
 0x81c   :  { %v3312_v30 = vsel %vm7021_vm2, %v3299_v57, %v3301_v10  ;;  %v3430_v62 = vsel %vm7022_vm9, %v3415_v44, %v3417_v21  ;;  %vm7034_vm2 = vmmov %vm7032_vm14 }
 0x81d   :  { %3326 = vst [vmem:[#allocation4 + $0x80] sm:$0xff] %v3312_v30  ;;  %3444 = vst [vmem:[#allocation4 + $0x118] sm:$0xff] %v3430_v62  ;;  %v4483_v34 = vpack.c.bf16 %v3430_v62, %v6385_v46 }
 0x81e   :  { %vm7035_vm9 = vmmov %vm7033_vm3 }
 0x81f   :  { %v3354_v4 = vpop.permute.xlu1 %3353  ;;  %v6551_v15 = vpop.permute.xlu0 %3302  ;;  %4484 = vmatpush1.bf16.msra.mxu0 %v4483_v34 }
 0x820   :  { %v3365_v33 = vsel %vm7023_vm4, %v3352_v23, %v3354_v4  ;;  %v3313_v8 = vsel %vm7024_vm13, %v3301_v10, %v6551_v15  ;;  %vm7036_vm4 = vmmov %vm7024_vm13 }
 0x821   :  { %3379 = vst [vmem:[#allocation4 + $0xb8] sm:$0xff] %v3365_v33  ;;  %3327 = vst [vmem:[#allocation4 + $0x88] sm:$0xff] %v3313_v8  ;;  %v4495_v14 = vpack.c.bf16 %v3365_v33, %v3312_v30 }
 0x822   :  { %vm7037_vm13 = vmmov %vm7036_vm4 }
 0x823   :  { %v3470_v63 = vpop.permute.xlu1 %3469  ;;  %v6556_v39 = vpop.permute.xlu0 %3355 }
 0x824   :  { %v3366_v7 = vsel %vm7025_vm10, %v3354_v4, %v6556_v39 }
 0x825   :  { %3380 = vst [vmem:[#allocation4 + $0xc0] sm:$0xff] %v3366_v7  ;;  %v4493_v55 = vpack.c.bf16 %v3366_v7, %v3313_v8  ;;  %v6602_v8 = vld [vmem:[%s6822_s8 + $0x8] sm:$0xff] }
 0x827   :  { %v3523_v46 = vpop.permute.xlu1 %3522  ;;  %v3472_v58 = vpop.permute.xlu0 %3471  ;;  %4494 = vmatprep.subr.bf16.mxu1 %v4493_v55 }
 0x828   :  { %v3484_v20 = vsel %vm670_vm6, %v3470_v63, %v3472_v58  ;;  %4496 = vmatpush1.bf16.msra.mxu1 %v4495_v14 }
 0x829   :  { %3498 = vst [vmem:[#allocation4 + $0x158] sm:$0xff] %v3484_v20 }
 0x82b   :  { %v3468_v61 = vpop.permute.xlu1 %3467  ;;  %v3525_v40 = vpop.permute.xlu0 %3524 }
 0x82c   :  { %v3483_v41 = vsel %vm670_vm6, %v3468_v61, %v3470_v63  ;;  %v3537_v60 = vsel %vm7026_vm5, %v3523_v46, %v3525_v40  ;;  %vm7038_vm5 = vmmov %vm7025_vm10 }
 0x82d   :  { %3497 = vst [vmem:[#allocation4 + $0x150] sm:$0xff] %v3483_v41  ;;  %3551 = vst [vmem:[#allocation4 + $0x190] sm:$0xff] %v3537_v60  ;;  %v4485_v45 = vpack.c.bf16 %v3537_v60, %v3484_v20 }
 0x82f   :  { %v3421_v5 = vpop.permute.xlu1 %3420  ;;  %v3521_v35 = vpop.permute.xlu0 %3520  ;;  %4486 = vmatprep.subr.bf16.mxu0 %v4485_v45 }
 0x830   :  { %v3432_v16 = vsel %vm7027_vm11, %v3419_v24, %v3421_v5  ;;  %v3536_v47 = vsel %vm7028_vm12, %v3521_v35, %v3523_v46  ;;  %vm7039_vm11 = vmmov %vm7029_vm0 }
 0x831   :  { %3446 = vst [vmem:[#allocation4 + $0x128] sm:$0xff] %v3432_v16  ;;  %3550 = vst [vmem:[#allocation4 + $0x188] sm:$0xff] %v3536_v47  ;;  %v4487_v57 = vpack.c.bf16 %v3536_v47, %v3483_v41  ;;  %v4499_v2 = vpack.c.bf16 %v3432_v16, %v6389_v43 }
 0x832   :  { %vm7040_vm12 = vmmov %vm7034_vm2 }
 0x833   :  { %v3199_v22 = vpop.permute.xlu1 %3198  ;;  %v6565_v50 = vpop.permute.xlu0 %3422  ;;  %4488 = vmatpush1.bf16.msra.mxu0 %v4487_v57 }
 0x834   :  { %v3208_v11 = vsel %vm7029_vm0, %v6536_v53, %v3199_v22  ;;  %v3433_v23 = vsel %vm7030_vm7, %v3421_v5, %v6565_v50  ;;  %vm7041_vm0 = vmmov %vm7034_vm2 }
 0x835   :  { %3222 = vst [vmem:[#allocation4 + $0x20] sm:$0xff] %v3208_v11  ;;  %3447 = vst [vmem:[#allocation4 + $0x130] sm:$0xff] %v3433_v23  ;;  %v4497_v36 = vpack.c.bf16 %v3433_v23, %v6391_v18 }
 0x837   :  { %v3252_v12 = vpop.permute.xlu1 %3251  ;;  %v6573_v29 = vpop.permute.xlu0 %3200  ;;  %4498 = vmatprep.subr.bf16.mxu1 %v4497_v36 }
 0x838   :  { %v3261_v6 = vsel %vm214_vm1, %v6541_v3, %v3252_v12  ;;  %v3209_v54 = vsel %vm7031_vm8, %v3199_v22, %v6573_v29  ;;  %4500 = vmatpush1.bf16.msra.mxu1 %v4499_v2 }
 0x839   :  { %3275 = vst [vmem:[#allocation4 + $0x58] sm:$0xff] %v3261_v6  ;;  %3223 = vst [vmem:[#allocation4 + $0x28] sm:$0xff] %v3209_v54  ;;  %v4507_v62 = vpack.c.bf16 %v3261_v6, %v3208_v11 }
 0x83b   :  { %v3576_v53 = vpop.permute.xlu1 %3575  ;;  %v3254_v0 = vpop.permute.xlu0 %3253 }
 0x83c   :  { %v3262_v9 = vsel %vm214_vm1, %v3252_v12, %v3254_v0 }
 0x83d   :  { %3276 = vst [vmem:[#allocation4 + $0x60] sm:$0xff] %v3262_v9  ;;  %v4505_v44 = vpack.c.bf16 %v3262_v9, %v3209_v54 }
 0x83f   :  { %v3474_v18 = vpop.permute.xlu1 %3473  ;;  %v3578_v43 = vpop.permute.xlu0 %3577 }
 0x840   :  { %v3485_v1 = vsel %vm670_vm6, %v3472_v58, %v3474_v18  ;;  %v3590_v42 = vsel %vm7032_vm14, %v3576_v53, %v3578_v43  ;;  %vm7045_vm14 = vmmov %vm7038_vm5 }
 0x841   :  { %3499 = vst [vmem:[#allocation4 + $0x160] sm:$0xff] %v3485_v1  ;;  %3604 = vst [vmem:[#allocation4 + $0x1c8] sm:$0xff] %v3590_v42  ;;  %3698 = vmatprep.subr.mxu0 %v3590_v42 }
 0x843   :  { %v3527_v3 = vpop.permute.xlu1 %3526  ;;  %v6582_v52 = vpop.permute.xlu0 %3475 }
 0x844   :  { %v3538_v27 = vsel %vm7033_vm3, %v3525_v40, %v3527_v3  ;;  %v3486_v32 = vsel %vm670_vm6, %v3474_v18, %v6582_v52  ;;  %vm7046_vm3 = vmmov %vm7036_vm4 }
 0x845   :  { %3552 = vst [vmem:[#allocation4 + $0x198] sm:$0xff] %v3538_v27  ;;  %3500 = vst [vmem:[#allocation4 + $0x168] sm:$0xff] %v3486_v32  ;;  %v4503_v34 = vpack.c.bf16 %v3538_v27, %v3485_v1 }
 0x847   :  { %v3574_v24 = vpop.permute.xlu1 %3573  ;;  %v6587_v21 = vpop.permute.xlu0 %3528 }
 0x848   :  { %v3589_v56 = vsel %vm7034_vm2, %v3574_v24, %v3576_v53  ;;  %v3539_v10 = vsel %vm7035_vm9, %v3527_v3, %v6587_v21  ;;  %vm7047_vm2 = vmmov %vm7035_vm9 }
 0x849   :  { %3603 = vst [vmem:[#allocation4 + $0x1c0] sm:$0xff] %v3589_v56  ;;  %3553 = vst [vmem:[#allocation4 + $0x1a0] sm:$0xff] %v3539_v10  ;;  %3699 = vmatpush1.msra.mxu0 %v3589_v56  ;;  %v4501_v30 = vpack.c.bf16 %v3539_v10, %v3486_v32 }
 0x84a   :  { %4506 = vmatprep.subr.bf16.mxu0 %v4505_v44  ;;  %4165 = vmatmul.mubr.msk.f32.vlgmr.msra.gmra.mrb[8].mxu0 %vm3675_vm15, %v6592_v28  ;;  %vm7048_vm9 = vmmov %vm7047_vm2 }
 0x84b   :  { %v3307_v4 = vpop.permute.xlu1 %3306  ;;  %v3305_v33 = vpop.permute.xlu0 %3304  ;;  %4502 = vmatprep.subr.bf16.mxu1 %v4501_v30  ;;  %4508 = vmatpush1.bf16.msra.mxu0 %v4507_v62 }
 0x84c   :  { %v3314_v63 = vsel %vm7036_vm4, %v6551_v15, %v3305_v33  ;;  %v3315_v7 = vsel %vm7037_vm13, %v3305_v33, %v3307_v4  ;;  %4504 = vmatpush1.bf16.msra.mxu1 %v4503_v34  ;;  %3752 = vmatprep.mubr.f32.mxu0 %v6993_v31  ;;  %vm7049_vm4 = vmmov %vm7041_vm0 }
 0x84d   :  { %3328 = vst [vmem:[#allocation4 + $0x90] sm:$0xff] %v3314_v63  ;;  %3329 = vst [vmem:[#allocation4 + $0x98] sm:$0xff] %v3315_v7 }
 0x84e   :  { %4166 = vmatmul.mubr.msk.f32.gmra.mrb[10].mxu0 %vm3675_vm15, %v6602_v8  ;;  %vm7050_vm13 = vmmov %vm7041_vm0 }
 0x84f   :  { %v3360_v55 = vpop.permute.xlu1 %3359  ;;  %v3358_v14 = vpop.permute.xlu0 %3357  ;;  %3900 = vmatprep.mubr.f32.mxu0 %v6993_v31 }
 0x850   :  { %v3367_v46 = vsel %vm7025_vm10, %v6556_v39, %v3358_v14  ;;  %v3368_v58 = vsel %vm7038_vm5, %v3358_v14, %v3360_v55  ;;  %vm7051_vm10 = vmmov %vm7047_vm2 }
 0x851   :  { %3381 = vst [vmem:[#allocation4 + $0xc8] sm:$0xff] %v3367_v46  ;;  %3382 = vst [vmem:[#allocation4 + $0xd0] sm:$0xff] %v3368_v58  ;;  %v4509_v15 = vpack.c.bf16 %v3368_v58, %v3315_v7  ;;  %v4511_v20 = vpack.c.bf16 %v3367_v46, %v3314_v63 }
 0x852   :  { %vm7052_vm5 = vmmov %vm7041_vm0 }
 0x853   :  { %v3256_v61 = vpop.permute.xlu1 %3255  ;;  %v3203_v40 = vpop.permute.xlu0 %3202  ;;  %4510 = vmatprep.subr.bf16.mxu0 %v4509_v15 }
 0x854   :  { %v3263_v41 = vsel %vm214_vm1, %v3254_v0, %v3256_v61  ;;  %v3210_v60 = vsel %vm7039_vm11, %v6573_v29, %v3203_v40  ;;  %4512 = vmatpush1.bf16.msra.mxu0 %v4511_v20  ;;  %vm7042_vm1 = vmmov %vm7030_vm7 }
 0x855   :  { %3277 = vst [vmem:[#allocation4 + $0x68] sm:$0xff] %v3263_v41  ;;  %3224 = vst [vmem:[#allocation4 + $0x30] sm:$0xff] %v3210_v60  ;;  %v4521_v16 = vpack.c.bf16 %v3263_v41, %v3210_v60 }
 0x856   :  { %vm7043_vm7 = vmmov %vm7042_vm1 }
 0x857   :  { %v3582_v45 = vpop.permute.xlu1 %3581  ;;  %v3580_v5 = vpop.permute.xlu0 %3579  ;;  %vm7044_vm8 = vmmov %vm7042_vm1 }
 0x858   :  { %v3591_v39 = vsel %vm7040_vm12, %v3578_v43, %v3580_v5  ;;  %v3592_v35 = vsel %vm7041_vm0, %v3580_v5, %v3582_v45 }
 0x859   :  { %3605 = vst [vmem:[#allocation4 + $0x1d0] sm:$0xff] %v3591_v39  ;;  %3606 = vst [vmem:[#allocation4 + $0x1d8] sm:$0xff] %v3592_v35  ;;  %3775 = vmatprep.subr.mxu1 %v3592_v35 }
 0x85a   :  { %3776 = vmatpush1.msra.mxu1 %v3591_v39 }
 0x85b   :  { %v3427_v47 = vpop.permute.xlu1 %3426  ;;  %v3425_v57 = vpop.permute.xlu0 %3424  ;;  %4522 = vmatprep.subr.bf16.mxu1 %v4521_v16  ;;  %4167 = vmatmul.mubr.msk.f32.vlgmr.msra.gmra.mrb[8].mxu1 %vm3675_vm15, %v6592_v28 }
 0x85c   :  { %v3436_v22 = vsel %vm7042_vm1, %v3427_v47, %v6374_v51  ;;  %v3434_v11 = vsel %vm7043_vm7, %v6565_v50, %v3425_v57  ;;  %v3435_v23 = vsel %vm7044_vm8, %v3425_v57, %v3427_v47  ;;  %4524 = vmatpush3.bf16.msra.mxu1 %v4521_v16  ;;  %3829 = vmatprep.mubr.f32.mxu1 %v6993_v31 }
 0x85d   :  { %3450 = vst [vmem:[#allocation4 + $0x148] sm:$0xff] %v3436_v22  ;;  %3448 = vst [vmem:[#allocation4 + $0x138] sm:$0xff] %v3434_v11  ;;  %v4513_v36 = vpack.c.bf16 %v3435_v23, %v6395_v13  ;;  %v4515_v2 = vpack.c.bf16 %v3434_v11, %v6393_v48  ;;  %v4529_v48 = vpack.c.bf16 %v3436_v22, %v6397_v37 }
 0x85e   :  { %3449 = vst [vmem:[#allocation4 + $0x140] sm:$0xff] %v3435_v23 }
 0x85f   :  { %v3362_v12 = vpop.permute.xlu1 %3361  ;;  %v3309_v29 = vpop.permute.xlu0 %3308  ;;  %4514 = vmatprep.subr.bf16.mxu0 %v4513_v36  ;;  %4168 = vmatmul.mubr.msk.f32.gmra.mrb[10].mxu1 %vm3675_vm15, %v6602_v8 }
 0x860   :  { %v3369_v51 = vsel %vm7045_vm14, %v3360_v55, %v3362_v12  ;;  %v3316_v50 = vsel %vm7046_vm3, %v3307_v4, %v3309_v29  ;;  %4516 = vmatpush1.bf16.msra.mxu0 %v4515_v2  ;;  %4245 = vmatprep.mubr.msk.f32.mxu1 %vm3675_vm15, %v6592_v28 }
 0x861   :  { %3383 = vst [vmem:[#allocation4 + $0xd8] sm:$0xff] %v3369_v51  ;;  %3330 = vst [vmem:[#allocation4 + $0xa0] sm:$0xff] %v3316_v50  ;;  %v4525_v6 = vpack.c.bf16 %v3369_v51, %v3316_v50 }
 0x863   :  { %v3480_v13 = vpop.permute.xlu1 %3479  ;;  %v3478_v54 = vpop.permute.xlu0 %3477  ;;  %4526 = vmatprep.subr.bf16.mxu1 %v4525_v6 }
 0x864   :  { %v3487_v53 = vsel %vm670_vm6, %v6582_v52, %v3478_v54  ;;  %v3488_v0 = vsel %vm670_vm6, %v3478_v54, %v3480_v13  ;;  %4528 = vmatpush3.bf16.msra.mxu1 %v4525_v6 }
 0x865   :  { %3501 = vst [vmem:[#allocation4 + $0x170] sm:$0xff] %v3487_v53  ;;  %3502 = vst [vmem:[#allocation4 + $0x178] sm:$0xff] %v3488_v0  ;;  %4530 = vmatprep.subr.bf16.mxu1 %v4529_v48 }
 0x867   :  { %v3533_v9 = vpop.permute.xlu1 %3532  ;;  %v3531_v18 = vpop.permute.xlu0 %3530 }
 0x868   :  { %v3540_v43 = vsel %vm7047_vm2, %v6587_v21, %v3531_v18  ;;  %v3541_v1 = vsel %vm7048_vm9, %v3531_v18, %v3533_v9  ;;  %4532 = vmatpush3.bf16.msra.mxu1 %v4529_v48 }
 0x869   :  { %3554 = vst [vmem:[#allocation4 + $0x1a8] sm:$0xff] %v3540_v43  ;;  %3555 = vst [vmem:[#allocation4 + $0x1b0] sm:$0xff] %v3541_v1  ;;  %v4517_v37 = vpack.c.bf16 %v3541_v1, %v3488_v0  ;;  %v4519_v42 = vpack.c.bf16 %v3540_v43, %v3487_v53 }
 0x86b   :  { %v3584_v3 = vpop.permute.xlu1 %3583  ;;  %v3586_v52 = vpop.permute.xlu0 %3585  ;;  %4518 = vmatprep.subr.bf16.mxu0 %v4517_v37 }
 0x86c   :  { %v3593_v27 = vsel %vm7049_vm4, %v3582_v45, %v3584_v3  ;;  %v3594_v32 = vsel %vm7050_vm13, %v3584_v3, %v3586_v52  ;;  %4520 = vmatpush1.bf16.msra.mxu0 %v4519_v42 }
 0x86d   :  { %3607 = vst [vmem:[#allocation4 + $0x1e0] sm:$0xff] %v3593_v27  ;;  %3608 = vst [vmem:[#allocation4 + $0x1e8] sm:$0xff] %v3594_v32  ;;  %3852 = vmatprep.subr.mxu0 %v3594_v32 }
 0x86f   :  { %v3482_v24 = vpop.permute.xlu1 %3481  ;;  %v3535_v21 = vpop.permute.xlu0 %3534 }
 0x870   :  { %v3489_v56 = vsel %vm670_vm6, %v3480_v13, %v3482_v24  ;;  %v3542_v10 = vsel %vm7051_vm10, %v3533_v9, %v3535_v21  ;;  %3853 = vmatpush1.msra.mxu0 %v3593_v27 }
 0x871   :  { %3503 = vst [vmem:[#allocation4 + $0x180] sm:$0xff] %v3489_v56  ;;  %3556 = vst [vmem:[#allocation4 + $0x1b8] sm:$0xff] %v3542_v10  ;;  %4169 = vmatmul.mubr.msk.f32.vlgmr.msra.gmra.mrb[12].mxu0 %vm3675_vm15, %v6592_v28  ;;  %v4533_v44 = vpack.c.bf16 %v3542_v10, %v3489_v56 }
 0x872   :  { %3906 = vmatprep.mubr.f32.mxu0 %v6993_v31 }
 0x873   :  { %v3588_v30 = vpop.permute.xlu1 %3587  ;;  %4534 = vmatprep.subr.bf16.mxu1 %v4533_v44 }
 0x874   :  { %v3595_v62 = vsel %vm7052_vm5, %v3586_v52, %v3588_v30  ;;  %4536 = vmatpush3.bf16.msra.mxu1 %v4533_v44 }
 0x875   :  { %3609 = vst [vmem:[#allocation4 + $0x1f0] sm:$0xff] %v3595_v62  ;;  %4170 = vmatmul.mubr.msk.f32.gmra.mrb[14].mxu0 %vm3675_vm15, %v6602_v8  ;;  %4243 = vmatprep.subr.mxu1 %v3595_v62 }
 0x878   :  { %4244 = vmatpush3.msra.mxu1 %v3595_v62 }
 0x879   :  { %4246 = vmatmul.mubr.msk.f32.vlgmr.msra.gmra.mrb[12].mxu1 %vm3675_vm15, %v6602_v8 }
 0x91d   :  { %v3748_v34 = vpop.f32.mrb[8].mxu0 }
 0x91e   :  { %v3750_v4 = vpop.f32.mrb[9].mxu0  ;;  %v6655_v14 = vmul.f32 %v3748_v34, %v7005_v38 }
 0x91f   :  { %v6658_v46 = vmul.f32 %v3750_v4, %v7006_v19 }
 0x920   :  { %v4020_v8 = vmul.f32 %v6655_v14, %v6655_v14 }
 0x921   :  { %v3754_v28 = vpop.f32.mrb[10].mxu0  ;;  %v4021_v20 = vmul.f32 %v6658_v46, %v6658_v46  ;;  %v4002_v41 = vadd.f32 %v6658_v46, %v6655_v14 }
 0x922   :  { %v3756_v33 = vpop.f32.mrb[11].mxu0  ;;  %v6661_v58 = vmul.f32 %v3754_v28, %v7005_v38 }
 0x923   :  { %v6664_v15 = vmul.f32 %v3756_v33, %v7006_v19  ;;  %v4034_v39 = vadd.f32 %v4021_v20, %v4020_v8 }
 0x924   :  { %v4027_v45 = vmul.f32 %v6661_v58, %v6661_v58 }
 0x925   :  { %v4010_v61 = vadd.f32 %v6664_v15, %v6661_v58  ;;  %v4028_v5 = vmul.f32 %v6664_v15, %v6664_v15 }
 0x927   :  { %v4042_v11 = vadd.f32 %v4028_v5, %v4027_v45 }
 0x92e   :  { %v3825_v63 = vpop.f32.mrb[8].mxu1 }
 0x92f   :  { %v3827_v31 = vpop.f32.mrb[9].mxu1  ;;  %v6678_v60 = vmul.f32 %v3825_v63, %v7007_v26 }
 0x930   :  { %v6685_v35 = vmul.f32 %v3827_v31, %v7008_v25 }
 0x931   :  { %v4003_v57 = vadd.f32 %v4002_v41, %v6678_v60  ;;  %v4022_v22 = vmul.f32 %v6678_v60, %v6678_v60 }
 0x932   :  { %v3831_v7 = vpop.f32.mrb[10].mxu1  ;;  %v4023_v29 = vmul.f32 %v6685_v35, %v6685_v35 }
 0x933   :  { %v3833_v55 = vpop.f32.mrb[11].mxu1  ;;  %v6673_v40 = vmul.f32 %v3831_v7, %v7007_v26  ;;  %v4035_v50 = vadd.f32 %v4034_v39, %v4022_v22  ;;  %v4004_v6 = vadd.f32 %v4003_v57, %v6685_v35 }
 0x934   :  { %v6689_v47 = vmul.f32 %v3833_v55, %v7008_v25 }
 0x935   :  { %v4011_v16 = vadd.f32 %v4010_v61, %v6673_v40  ;;  %v4029_v23 = vmul.f32 %v6673_v40, %v6673_v40  ;;  %v4036_v42 = vadd.f32 %v4035_v50, %v4023_v29 }
 0x936   :  { %v4030_v54 = vmul.f32 %v6689_v47, %v6689_v47 }
 0x937   :  { %v4012_v51 = vadd.f32 %v4011_v16, %v6689_v47  ;;  %v4043_v13 = vadd.f32 %v4042_v11, %v4029_v23 }
 0x939   :  { %v4044_v3 = vadd.f32 %v4043_v13, %v4030_v54  ;;  %v4064_v13 = vld [vmem:[%s6824_s10] sm:$0xff]  ;;  %v4061_v54 = vld [vmem:[%s6823_s9 + $0x8] sm:$0xff] }
 0x944   :  { %v3902_v36 = vpop.f32.mrb[12].mxu0 }
 0x945   :  { %v3904_v2 = vpop.f32.mrb[13].mxu0  ;;  %v6697_v12 = vmul.f32 %v3902_v36, %v7009_v17 }
 0x946   :  { %v6712_v43 = vmul.f32 %v3904_v2, %v7010_v49 }
 0x947   :  { %v4005_v9 = vadd.f32 %v4004_v6, %v6697_v12  ;;  %v4024_v18 = vmul.f32 %v6697_v12, %v6697_v12 }
 0x948   :  { %v3908_v48 = vpop.f32.mrb[14].mxu0  ;;  %v4025_v44 = vmul.f32 %v6712_v43, %v6712_v43 }
 0x949   :  { %v6706_v53 = vmul.f32 %v3908_v48, %v7009_v17  ;;  %v3910_v0 = vpop.f32.mrb[15].mxu0  ;;  %v4037_v56 = vadd.f32 %v4036_v42, %v4024_v18  ;;  %v4006_v10 = vadd.f32 %v4005_v9, %v6712_v43 }
 0x94a   :  { %v6715_v1 = vmul.f32 %v3910_v0, %v7010_v49 }
 0x94b   :  { %v4013_v37 = vadd.f32 %v4012_v51, %v6706_v53  ;;  %v4031_v52 = vmul.f32 %v6706_v53, %v6706_v53  ;;  %v4038_v63 = vadd.f32 %v4037_v56, %v4025_v44  ;;  %v4060_v51 = vld [vmem:[%s6823_s9] sm:$0xff] }
 0x94c   :  { %v4247_v27 = vpop.f32.mrb[12].mxu1  ;;  %v4032_v4 = vmul.f32 %v6715_v1, %v6715_v1 }
 0x94d   :  { %v4014_v32 = vadd.f32 %v4013_v37, %v6715_v1  ;;  %v6722_v24 = vmul.f32 %v4247_v27, %v7011_v59  ;;  %v3979_v21 = vpop.f32.mrb[13].mxu1  ;;  %v4045_v34 = vadd.f32 %v4044_v3, %v4031_v52  ;;  %v4065_v37 = vld [vmem:[%s6824_s10 + $0x8] sm:$0xff] }
 0x94e   :  { %v3994_v30 = vmul.f32 %v3979_v21, %v7011_v59 }
 0x94f   :  { %v4015_v62 = vadd.f32 %v4014_v32, %v6722_v24  ;;  %v4033_v31 = vmul.f32 %v6722_v24, %v6722_v24  ;;  %v4046_v55 = vadd.f32 %v4045_v34, %v4032_v4 }
 0x950   :  { %v4026_v28 = vmul.f32 %v3994_v30, %v3994_v30  ;;  %v4007_v33 = vadd.f32 %v4006_v10, %v3994_v30 }
 0x951   :  { %4016 = vadd.xlane.f32.xlu1 %v4015_v62  ;;  %v4047_v8 = vadd.f32 %v4046_v55, %v4033_v31 }
 0x952   :  { %4008 = vadd.xlane.f32.xlu0 %v4007_v33  ;;  %v4039_v7 = vadd.f32 %v4038_v63, %v4026_v28 }
 0x956   :  { %4040 = vadd.xlane.f32.xlu0 %v4039_v7 }
 0x95a   :  { %4048 = vadd.xlane.f32.xlu0 %v4047_v8 }
 0x9de   :  { %v4017_v41 = vpop.xlane.xlu1 %4016 }
 0x9df   :  { %v4009_v20 = vpop.xlane.xlu0 %4008  ;;  %v4019_v5 = vmul.f32 0.001953125, %v4017_v41 }
 0x9e0   :  { %v4018_v61 = vmul.f32 0.001953125, %v4009_v20 }
 0x9e1   :  { %v4053_v11 = vmul.f32 %v4019_v5, %v4019_v5 }
 0x9e2   :  { %v4052_v39 = vmul.f32 %v4018_v61, %v4018_v61 }
 0x9e3   :  { %v4041_v45 = vpop.xlane.xlu0 %4040 }
 0x9e4   :  { %v4050_v16 = vmul.f32 0.001953125, %v4041_v45 }
 0x9e6   :  { %v4054_v57 = vsub.f32 %v4050_v16, %v4052_v39 }
 0x9e7   :  { %v4049_v22 = vpop.xlane.xlu0 %4048 }
 0x9e8   :  { %v4056_v23 = vadd.f32 1e-05, %v4054_v57  ;;  %v4051_v36 = vmul.f32 0.001953125, %v4049_v22 }
 0x9ea   :  { %4583 = vrsqrt.f32 %v4056_v23  ;;  %v4055_v2 = vsub.f32 %v4051_v36, %v4053_v11 }
 0x9ec   :  { %v4057_v29 = vadd.f32 1e-05, %v4055_v2 }
 0x9ee   :  { %4585 = vrsqrt.f32 %v4057_v29 }
 0x9f4   :  { %v4584_v50 = vpop.eup %4583 }
 0x9f5   :  { %v4062_v6 = vmul.f32 %v4584_v50, %v4060_v51 }
 0x9f7   :  { %4072 = vperm.xlu1 %4566, %v4062_v6   ;;  %v4066_v48 = vmul.f32 %v4062_v6, %v4018_v61 }
 0x9f8   :  { %v4586_v0 = vpop.eup %4585 }
 0x9f9   :  { %v4068_v9 = vsub.f32 %v4064_v13, %v4066_v48  ;;  %v4063_v18 = vmul.f32 %v4586_v0, %v4061_v54 }
 0x9fb   :  { %4096 = vperm.xlu1 %4566, %v4068_v9   ;;  %4077 = vperm.xlu0 %4565, %v4063_v18   ;;  %v4067_v42 = vmul.f32 %v4063_v18, %v4019_v5 }
 0x9fd   :  { %v4069_v3 = vsub.f32 %v4065_v37, %v4067_v42 }
 0x9ff   :  { %4101 = vperm.xlu1 %4566, %v4069_v3  }
 0xa76   :  { %v4073_v52 = vpop.permute.xlu1 %4072 }
 0xa77   :  { %v4080_v27 = vmul.f32 %v4073_v52, %v6655_v14  ;;  %v4081_v32 = vmul.f32 %v4073_v52, %v6658_v46  ;;  %v4082_v21 = vmul.f32 %v4073_v52, %v6678_v60  ;;  %v4083_v56 = vmul.f32 %v4073_v52, %v6685_v35 }
 0xa78   :  { %v4084_v10 = vmul.f32 %v4073_v52, %v6697_v12  ;;  %v4085_v44 = vmul.f32 %v4073_v52, %v6712_v43  ;;  %v4086_v62 = vmul.f32 %v4073_v52, %v3994_v30 }
 0xa7a   :  { %v4097_v34 = vpop.permute.xlu1 %4096  ;;  %v4078_v4 = vpop.permute.xlu0 %4077 }
 0xa7b   :  { %v4104_v28 = vmul.f32 %v4097_v34, %v7005_v38  ;;  %v4105_v33 = vmul.f32 %v4097_v34, %v7006_v19  ;;  %v4106_v63 = vmul.f32 %v4097_v34, %v7007_v26  ;;  %v4107_v14 = vmul.f32 %v4097_v34, %v7008_v25 }
 0xa7c   :  { %v4108_v46 = vmul.f32 %v4097_v34, %v7009_v17  ;;  %v4109_v60 = vmul.f32 %v4097_v34, %v7010_v49  ;;  %v4110_v35 = vmul.f32 %v4097_v34, %v7011_v59  ;;  %v4087_v12 = vmul.f32 %v4078_v4, %v6661_v58 }
 0xa7d   :  { %v4118_v43 = vadd.f32 %v4104_v28, %v4080_v27  ;;  %v4119_v30 = vadd.f32 %v4105_v33, %v4081_v32  ;;  %v4120_v31 = vadd.f32 %v4106_v63, %v4082_v21  ;;  %v4121_v7 = vadd.f32 %v4107_v14, %v4083_v56 }
 0xa7e   :  { %v4122_v55 = vadd.f32 %v4108_v46, %v4084_v10  ;;  %v4123_v8 = vadd.f32 %v4109_v60, %v4085_v44  ;;  %v4124_v20 = vadd.f32 %v4110_v35, %v4086_v62  ;;  %v4088_v61 = vmul.f32 %v4078_v4, %v6664_v15  ;;  %v4102_v41 = vpop.permute.xlu1 %4101 }
 0xa7f   :  { %4132 = vst [vmem:[%s6825_s11] sm:$0xff] %v4118_v43  ;;  %4133 = vst [vmem:[%s6825_s11 + $0x8] sm:$0xff] %v4119_v30  ;;  %v4089_v58 = vmul.f32 %v4078_v4, %v6673_v40  ;;  %v4090_v15 = vmul.f32 %v4078_v4, %v6689_v47  ;;  %v4091_v45 = vmul.f32 %v4078_v4, %v6706_v53 }
 0xa80   :  { %4134 = vst [vmem:[%s6825_s11 + $0x10] sm:$0xff] %v4120_v31  ;;  %4135 = vst [vmem:[%s6825_s11 + $0x18] sm:$0xff] %v4121_v7  ;;  %v4092_v5 = vmul.f32 %v4078_v4, %v6715_v1  ;;  %v4093_v40 = vmul.f32 %v4078_v4, %v6722_v24  ;;  %v4111_v47 = vmul.f32 %v4102_v41, %v7005_v38 }
 0xa81   :  { %4136 = vst [vmem:[%s6825_s11 + $0x20] sm:$0xff] %v4122_v55  ;;  %4137 = vst [vmem:[%s6825_s11 + $0x28] sm:$0xff] %v4123_v8  ;;  %v4112_v53 = vmul.f32 %v4102_v41, %v7006_v19  ;;  %v4113_v1 = vmul.f32 %v4102_v41, %v7007_v26  ;;  %v4114_v39 = vmul.f32 %v4102_v41, %v7008_v25 }
 0xa82   :  { %4138 = vst [vmem:[%s6825_s11 + $0x30] sm:$0xff] %v4124_v20  ;;  %v4115_v16 = vmul.f32 %v4102_v41, %v7009_v17  ;;  %v4116_v57 = vmul.f32 %v4102_v41, %v7010_v49  ;;  %v4117_v22 = vmul.f32 %v4102_v41, %v7011_v59  ;;  %v4125_v11 = vadd.f32 %v4111_v47, %v4087_v12 }
 0xa83   :  { %v4126_v23 = vadd.f32 %v4112_v53, %v4088_v61  ;;  %v4127_v36 = vadd.f32 %v4113_v1, %v4089_v58  ;;  %v4128_v2 = vadd.f32 %v4114_v39, %v4090_v15 }
 0xa84   :  { %v4129_v29 = vadd.f32 %v4115_v16, %v4091_v45  ;;  %v4130_v24 = vadd.f32 %v4116_v57, %v4092_v5  ;;  %v4131_v51 = vadd.f32 %v4117_v22, %v4093_v40  ;;  %4139 = vst [vmem:[%s6825_s11 + $0x38] sm:$0xff] %v4125_v11 }
 0xa85   :  { %4140 = vst [vmem:[%s6825_s11 + $0x40] sm:$0xff] %v4126_v23  ;;  %4141 = vst [vmem:[%s6825_s11 + $0x48] sm:$0xff] %v4127_v36 }
 0xa86   :  { %4142 = vst [vmem:[%s6825_s11 + $0x50] sm:$0xff] %v4128_v2  ;;  %4143 = vst [vmem:[%s6825_s11 + $0x58] sm:$0xff] %v4129_v29 }
 0xa87   :  { %4144 = vst [vmem:[%s6825_s11 + $0x60] sm:$0xff] %v4130_v24  ;;  %4145 = vst [vmem:[%s6825_s11 + $0x68] sm:$0xff] %v4131_v51 }

</bundles_post_ra>
